<compile_context>
chip_gen: v7x
topology: tpu7x:2x2x1
jax: 0.10.0
libtpu: 0.0.40
codegen_flags: <defaults>
</compile_context>

<pallas_src>
import functools
import math

import jax
import jax.numpy as jnp
from jax import lax
from jax.experimental import pallas as pl
from jax.experimental.pallas import tpu as pltpu

_LOG2E = math.log2(math.e)
_MASK_FILL = -10000.0 * _LOG2E          # masked_fill value, log2 domain


def _round_up(x, m):
    return ((x + m - 1) // m) * m


def _pick_tile(dim, target, align):
    """Largest `align`-aligned divisor of `dim` that is <= target (dim % align == 0)."""
    t = (min(target, dim) // align) * align
    while t > align:
        if dim % t == 0:
            return t
        t -= align
    return align


def _largest_divisor_leq(n, cap):
    cap = max(1, min(cap, n))
    for d in range(cap, 0, -1):
        if n % d == 0:
            return d
    return 1


def _vmem_capacity_bytes():
    try:
        cap = int(pltpu.get_tpu_info().vmem_capacity_bytes)
        if cap >= (16 << 20):
            return cap
    except Exception:
        pass
    return 64 << 20                      # conservative fallback (v7x per-TC)


def _flash_body(q_ref, k_ref, v_ref, b_ref, o_ref, q_scr, m_scr, l_scr, acc_scr, *,
                scale, compute_dtype, kv_valid, tile_kv, exact_recip):
    """One (bh-block, q-tile, kv-tile) step of flash attention (log2-domain online softmax)."""
    ki = pl.program_id(2)

    @pl.when(ki == 0)
    def _init():
        # Cache the scaled+cast q tile once per (bh, qi) pass; reused every kv step.
        q_scr[...] = (q_ref[...] * scale).astype(compute_dtype)
        m_scr[...] = jnp.full(m_scr.shape, -jnp.inf, dtype=jnp.float32)
        l_scr[...] = jnp.zeros(l_scr.shape, dtype=jnp.float32)
        acc_scr[...] = jnp.zeros(acc_scr.shape, dtype=jnp.float32)

    k = k_ref[...]                                                 # (Bt, tkv, D)
    v = v_ref[...]                                                 # (Bt, tkv, D)

    # s = (q * log2e / sqrt(d)) @ k^T  -> scores in the log2 domain.
    s = jnp.einsum("bqd,bkd->bqk", q_scr[...], k,
                   preferred_element_type=jnp.float32)             # (Bt, tq, tkv) f32

    if b_ref is not None:
        # masked_fill(mask == 0, -10000) == min(score, fill) for realistic scores.
        # fill plane: +inf (keep) / -10000*log2e (masked) / -inf (kv padding).
        s = jnp.minimum(s, b_ref[...])
    elif kv_valid is not None:
        # No user mask but L was padded: mask the kv tail columns.
        col = ki * tile_kv + lax.broadcasted_iota(jnp.int32, (1, 1, tile_kv), 2)
        s = jnp.where(col < kv_valid, s, jnp.float32(-1e30))

    m_prev = m_scr[...]                                            # (Bt, tq, 1)
    m_new = jnp.maximum(m_prev, jnp.max(s, axis=-1, keepdims=True))
    alpha = jnp.exp2(m_prev - m_new)
    p = jnp.exp2(s - m_new)                                        # (Bt, tq, tkv)
    l_scr[...] = alpha * l_scr[...] + jnp.sum(p, axis=-1, keepdims=True)
    pv = jnp.einsum("bqk,bkd->bqd", p.astype(compute_dtype), v,
                    preferred_element_type=jnp.float32)            # (Bt, tq, D)
    acc_scr[...] = alpha * acc_scr[...] + pv
    m_scr[...] = m_new

    @pl.when(ki == pl.num_programs(2) - 1)
    def _finalize():
        inv_l = pl.reciprocal(l_scr[...], approx=not exact_recip)  # EUP slot
        o_ref[...] = (acc_scr[...] * inv_l).astype(o_ref.dtype)


def _masked_kernel(q_ref, k_ref, v_ref, b_ref, o_ref, q_scr, m_scr, l_scr, acc_scr, *,
                   scale, compute_dtype, kv_valid, tile_kv, exact_recip):
    _flash_body(q_ref, k_ref, v_ref, b_ref, o_ref, q_scr, m_scr, l_scr, acc_scr,
                scale=scale, compute_dtype=compute_dtype, kv_valid=kv_valid,
                tile_kv=tile_kv, exact_recip=exact_recip)


def _unmasked_kernel(q_ref, k_ref, v_ref, o_ref, q_scr, m_scr, l_scr, acc_scr, *,
                     scale, compute_dtype, kv_valid, tile_kv, exact_recip):
    _flash_body(q_ref, k_ref, v_ref, None, o_ref, q_scr, m_scr, l_scr, acc_scr,
                scale=scale, compute_dtype=compute_dtype, kv_valid=kv_valid,
                tile_kv=tile_kv, exact_recip=exact_recip)


def scale_dot_product_attention(q, k, v, mask=None, *,
                                block_q=None, block_kv=256, block_bh=None,
                                compute_dtype=jnp.bfloat16):
    """q, k, v: [B, H, L, D]. mask: optional, broadcastable to [B, H, L, L] (0 = masked)."""
    B, H, L, D = q.shape
    assert k.shape == (B, H, L, D) and v.shape == (B, H, L, D)
    BH = B * H
    out_dtype = q.dtype
    compute_dtype = jnp.dtype(compute_dtype)
    scale = _LOG2E / math.sqrt(D)        # fold 1/sqrt(d) and log2(e) into q

    vmem_phys = _vmem_capacity_bytes()
    if block_q is None:
        block_q = 512 if vmem_phys >= (100 << 20) else 256   # v5e/v6e vs v7x

    # Pad L to a multiple of 128 so aligned tiles always exist; tiles are divisors
    # of the padded length (no O(L^2) full-L fallback for ragged L).
    Lp = _round_up(L, 128)
    pad = Lp - L
    tkv = _pick_tile(Lp, block_kv, 128)
    tq = _pick_tile(Lp, block_q, 32)

    # Heads per grid block: keep the f32 score tile ~2 MiB, but guarantee at least
    # 2 "parallel" grid blocks so both v7x TensorCores get work.
    if block_bh is None:
        cap = max(1, (2 << 20) // (tq * tkv * 4))
        block_bh = _largest_divisor_leq(H, cap)
    Bt = block_bh
    assert H % Bt == 0, "block_bh must divide the number of heads"
    n_qb = Lp // tq
    if Bt > 1 and BH >= 2 and (BH // Bt) * n_qb < 2:
        Bt = _largest_divisor_leq(H, max(1, BH // 2))

    def _prep(x):
        xf = x.reshape(BH, L, D)
        if xf.dtype != compute_dtype:
            xf = xf.astype(compute_dtype)          # cast once; halves k/v re-read DMA
        if pad:
            xf = jnp.pad(xf, ((0, 0), (0, pad), (0, 0)))
        return xf

    qf, kf, vf = _prep(q), _prep(k), _prep(v)

    grid = (BH // Bt, n_qb, Lp // tkv)

    q_spec = pl.BlockSpec((Bt, tq, D), lambda i, qi, ki: (i, qi, 0))
    k_spec = pl.BlockSpec((Bt, tkv, D), lambda i, qi, ki: (i, ki, 0))
    v_spec = pl.BlockSpec((Bt, tkv, D), lambda i, qi, ki: (i, ki, 0))
    # TODO(synk): for D < 128 a [B, L, H*D] lane-dense in/out layout would avoid
    # ~50% lane padding on every q/k/v/out stream; kept [B, H, L, D] to match the module.
    o_spec = pl.BlockSpec((Bt, tq, D), lambda i, qi, ki: (i, qi, 0))

    csize = compute_dtype.itemsize
    osize = jnp.dtype(out_dtype).itemsize
    scratch = [
        pltpu.VMEM((Bt, tq, D), compute_dtype),    # scaled q tile (filled at ki==0)
        pltpu.VMEM((Bt, tq, 1), jnp.float32),      # running max (log2 domain)
        pltpu.VMEM((Bt, tq, 1), jnp.float32),      # running denominator
        pltpu.VMEM((Bt, tq, D), jnp.float32),      # output accumulator
    ]

    common = dict(scale=scale, compute_dtype=compute_dtype,
                  kv_valid=(L if pad else None), tile_kv=tkv,
                  exact_recip=(compute_dtype == jnp.float32))

    # VMEM estimate with 128-lane padding of D<128 blocks and the (Bt,tq,1) scratch.
    Dp = _round_up(D, 128)
    est = 2 * Bt * (tq + 2 * tkv) * Dp * csize                  # dbl-buffered q/k/v blocks
    est += 2 * Bt * tq * Dp * osize                             # dbl-buffered out block
    est += Bt * tq * Dp * (csize + 4) + 2 * Bt * tq * 128 * 4   # scratch (lane padded)
    est += 3 * Bt * tq * tkv * 4                                # s / p / select temps

    if mask is None:
        kernel = functools.partial(_unmasked_kernel, **common)
        in_arrays = (qf, kf, vf)
        in_specs = [q_spec, k_spec, v_spec]
    else:
        m = jnp.asarray(mask)
        while m.ndim < 4:
            m = m[None]
        hm = m.shape[1]
        assert hm in (1, H), "mask head dim must be 1 or H"
        keep = jnp.broadcast_to(m, (B, hm, L, L)) != 0
        fill = jnp.where(keep, jnp.float32(jnp.inf),
                         jnp.float32(_MASK_FILL)).astype(compute_dtype)
        if pad:
            # kv tail columns -> -inf (excluded); padded q rows -> 0 (finite, discarded).
            fill = jnp.pad(fill, ((0, 0), (0, 0), (0, 0), (0, pad)),
                           constant_values=-jnp.inf)
            fill = jnp.pad(fill, ((0, 0), (0, 0), (0, pad), (0, 0)),
                           constant_values=0.0)
        if hm == 1:
            # Head-shared mask: one (Lp, Lp) plane per batch, no H replication.
            ff = fill.reshape(B, Lp, Lp)
            b_spec = pl.BlockSpec((1, tq, tkv),
                                  lambda i, qi, ki: ((i * Bt) // H, qi, ki))
            est += 2 * tq * tkv * csize
        else:
            ff = fill.reshape(BH, Lp, Lp)
            b_spec = pl.BlockSpec((Bt, tq, tkv), lambda i, qi, ki: (i, qi, ki))
            est += 2 * Bt * tq * tkv * csize
        kernel = functools.partial(_masked_kernel, **common)
        in_arrays = (qf, kf, vf, ff)
        in_specs = [q_spec, k_spec, v_spec, b_spec]

    # Honest scoped-VMEM request, capped at 75% of physical VMEM (48 MiB on v7x).
    vmem_limit = int(min(max(est + (8 << 20), 32 << 20), (vmem_phys * 3) // 4))

    out = pl.pallas_call(
        kernel,
        out_shape=jax.ShapeDtypeStruct((BH, Lp, D), out_dtype),
        grid_spec=pltpu.PrefetchScalarGridSpec(
            num_scalar_prefetch=0,
            grid=grid,
            in_specs=in_specs,
            out_specs=o_spec,
            scratch_shapes=scratch,
        ),
        compiler_params=pltpu.CompilerParams(
            dimension_semantics=("parallel", "parallel", "arbitrary"),
            vmem_limit_bytes=vmem_limit,
        ),
    )(*in_arrays)

    if pad:
        out = out[:, :L, :]
    return out.reshape(B, H, L, D)


def _reference(q, k, v, mask=None):
    d = k.shape[-1]
    score = jnp.einsum("bhqd,bhkd->bhqk", q, k) / math.sqrt(d)
    if mask is not None:
        score = jnp.where(mask == 0, -10000.0, score)
    p = jax.nn.softmax(score, axis=-1)
    return jnp.einsum("bhqk,bhkd->bhqd", p, v)


if __name__ == "__main__":
    B, H, L, D = 2, 4, 8, 32
    key = jax.random.PRNGKey(0)
    kq, kk, kv_, k2 = jax.random.split(key, 4)
    q = jax.random.normal(kq, (B, H, L, D), dtype=jnp.float32)
    k = jax.random.normal(kk, (B, H, L, D), dtype=jnp.float32)
    v = jax.random.normal(kv_, (B, H, L, D), dtype=jnp.float32)

    # Causal mask, head-shared [B, 1, L, L] (0 = masked) and its per-head view.
    causal = jnp.tril(jnp.ones((L, L), dtype=jnp.int32))
    mask_b1 = jnp.broadcast_to(causal, (B, 1, L, L))
    mask_bh = jnp.broadcast_to(causal, (B, H, L, L))

    ref_nm = _reference(q, k, v)
    ref_m = _reference(q, k, v, mask_bh)

    # 1) no-mask path, exact f32 compute (preserves the module's numerics)
    out_nm = jax.block_until_ready(
        scale_dot_product_attention(q, k, v, compute_dtype=jnp.float32))
    assert jnp.allclose(out_nm, ref_nm, atol=2e-3, rtol=2e-3), "no-mask f32 mismatch"

    # 2) head-shared mask (de-replicated fill plane), default bf16 MXU inputs
    out_m1 = jax.block_until_ready(scale_dot_product_attention(q, k, v, mask_b1))
    assert jnp.allclose(out_m1, ref_m, atol=5e-2, rtol=5e-2), "head-shared mask mismatch"

    # 3) per-head mask, default bf16 MXU inputs with f32 accumulation
    out_m2 = jax.block_until_ready(scale_dot_product_attention(q, k, v, mask_bh))
    assert jnp.allclose(out_m2, ref_m, atol=5e-2, rtol=5e-2), "per-head mask mismatch"

    # 4) ragged L with multiple q/kv tiles: exercises padding, tail masking and
    #    multi-step online softmax (f32 compute for a tight tolerance).
    B2, H2, L2 = 1, 2, 160
    q2 = jax.random.normal(jax.random.fold_in(k2, 0), (B2, H2, L2, D), dtype=jnp.float32)
    k2a = jax.random.normal(jax.random.fold_in(k2, 1), (B2, H2, L2, D), dtype=jnp.float32)
    v2 = jax.random.normal(jax.random.fold_in(k2, 2), (B2, H2, L2, D), dtype=jnp.float32)
    mask2 = jnp.tril(jnp.ones((L2, L2), dtype=jnp.int32))[None, None]
    ref2 = _reference(q2, k2a, v2, mask2)
    out2 = jax.block_until_ready(
        scale_dot_product_attention(q2, k2a, v2, mask2,
                                    block_q=128, block_kv=128,
                                    compute_dtype=jnp.float32))
    assert jnp.allclose(out2, ref2, atol=2e-3, rtol=2e-3), "ragged-L multi-block mismatch"

    print("KERNEL_OK")
</pallas_src>

<mosaic_0001>
module attributes {stable_mosaic.version = 11 : i64} {
  func.func @_unmasked_kernel(%arg0: i32, %arg1: i32, %arg2: i32, %arg3: memref<4x128x32xf32, #tpu.memory_space<vmem>>, %arg4: memref<4x128x32xf32, #tpu.memory_space<vmem>>, %arg5: memref<4x128x32xf32, #tpu.memory_space<vmem>>, %arg6: memref<4x128x32xf32, #tpu.memory_space<vmem>>, %arg7: memref<4x128x32xf32, #tpu.memory_space<vmem>>, %arg8: memref<4x128x1xf32, #tpu.memory_space<vmem>>, %arg9: memref<4x128x1xf32, #tpu.memory_space<vmem>>, %arg10: memref<4x128x32xf32, #tpu.memory_space<vmem>>) attributes {dimension_semantics = [#tpu.dimension_semantics<parallel>, #tpu.dimension_semantics<parallel>, #tpu.dimension_semantics<arbitrary>], iteration_bounds = array<i64: 2, 1, 1>, scalar_prefetch = 0 : i64, scratch_operands = 4 : i64, tpu.core_type = #tpu.core_type<tc>, window_params = [{transform_indices = @transform_0, window_bounds = array<i64: 4, 128, 32>}, {transform_indices = @transform_1, window_bounds = array<i64: 4, 128, 32>}, {transform_indices = @transform_2, window_bounds = array<i64: 4, 128, 32>}, {transform_indices = @transform_3, window_bounds = array<i64: 4, 128, 32>}]} {
    %c0_i32 = arith.constant 0 : i32
    %0 = arith.cmpi eq, %arg2, %c0_i32 : i32
    %1 = arith.extui %0 : i1 to i32
    %c0_i32_0 = arith.constant 0 : i32
    %2 = arith.cmpi ne, %1, %c0_i32_0 : i32
    scf.if %2 {
      %c0_33 = arith.constant 0 : index
      %c0_34 = arith.constant 0 : index
      %c0_35 = arith.constant 0 : index
      %42 = vector.load %arg3[%c0_33, %c0_34, %c0_35] : memref<4x128x32xf32, #tpu.memory_space<vmem>>, vector<4x128x32xf32>
      %cst_36 = arith.constant 0.255034864 : f32
      %43 = vector.broadcast %cst_36 : f32 to vector<4x128x32xf32>
      %44 = arith.mulf %42, %43 : vector<4x128x32xf32>
      %c0_37 = arith.constant 0 : index
      %c0_38 = arith.constant 0 : index
      %c0_39 = arith.constant 0 : index
      %45 = vector.load %arg7[%c0_37, %c0_38, %c0_39] : memref<4x128x32xf32, #tpu.memory_space<vmem>>, vector<4x128x32xf32>
      tpu.vector_store %arg7[%c0_37, %c0_38, %c0_39], %44 {strides = array<i32>} : memref<4x128x32xf32, #tpu.memory_space<vmem>>, vector<4x128x32xf32>,
      %cst_40 = arith.constant 0xFF800000 : f32
      %46 = vector.broadcast %cst_40 : f32 to vector<4x128x1xf32>
      %c0_41 = arith.constant 0 : index
      %c0_42 = arith.constant 0 : index
      %c0_43 = arith.constant 0 : index
      %47 = vector.load %arg8[%c0_41, %c0_42, %c0_43] : memref<4x128x1xf32, #tpu.memory_space<vmem>>, vector<4x128x1xf32>
      tpu.vector_store %arg8[%c0_41, %c0_42, %c0_43], %46 {strides = array<i32>} : memref<4x128x1xf32, #tpu.memory_space<vmem>>, vector<4x128x1xf32>,
      %cst_44 = arith.constant 0.000000e+00 : f32
      %48 = vector.broadcast %cst_44 : f32 to vector<4x128x1xf32>
      %c0_45 = arith.constant 0 : index
      %c0_46 = arith.constant 0 : index
      %c0_47 = arith.constant 0 : index
      %49 = vector.load %arg9[%c0_45, %c0_46, %c0_47] : memref<4x128x1xf32, #tpu.memory_space<vmem>>, vector<4x128x1xf32>
      tpu.vector_store %arg9[%c0_45, %c0_46, %c0_47], %48 {strides = array<i32>} : memref<4x128x1xf32, #tpu.memory_space<vmem>>, vector<4x128x1xf32>,
      %cst_48 = arith.constant 0.000000e+00 : f32
      %50 = vector.broadcast %cst_48 : f32 to vector<4x128x32xf32>
      %c0_49 = arith.constant 0 : index
      %c0_50 = arith.constant 0 : index
      %c0_51 = arith.constant 0 : index
      %51 = vector.load %arg10[%c0_49, %c0_50, %c0_51] : memref<4x128x32xf32, #tpu.memory_space<vmem>>, vector<4x128x32xf32>
      tpu.vector_store %arg10[%c0_49, %c0_50, %c0_51], %50 {strides = array<i32>} : memref<4x128x32xf32, #tpu.memory_space<vmem>>, vector<4x128x32xf32>,
    } else {
    }
    %c0 = arith.constant 0 : index
    %c0_1 = arith.constant 0 : index
    %c0_2 = arith.constant 0 : index
    %3 = vector.load %arg4[%c0, %c0_1, %c0_2] : memref<4x128x32xf32, #tpu.memory_space<vmem>>, vector<4x128x32xf32>
    %c0_3 = arith.constant 0 : index
    %c0_4 = arith.constant 0 : index
    %c0_5 = arith.constant 0 : index
    %4 = vector.load %arg5[%c0_3, %c0_4, %c0_5] : memref<4x128x32xf32, #tpu.memory_space<vmem>>, vector<4x128x32xf32>
    %c0_6 = arith.constant 0 : index
    %c0_7 = arith.constant 0 : index
    %c0_8 = arith.constant 0 : index
    %5 = vector.load %arg7[%c0_6, %c0_7, %c0_8] : memref<4x128x32xf32, #tpu.memory_space<vmem>>, vector<4x128x32xf32>
    "tpu.trace_start"() <{level = 10 : i32, message = "bqd,bkd->bqk"}> : () -> ()
    %cst = arith.constant dense<0.000000e+00> : vector<4x128x128xf32>
    %6 = tpu.matmul %5, %3, %cst {dimension_numbers = #tpu.dot_dimension_numbers<[2], [2], [1], [1], [0, 0, 0, 1, 1, 1], [0], [0]>} : vector<4x128x32xf32>, vector<4x128x32xf32>, vector<4x128x128xf32> -> vector<4x128x128xf32>
    "tpu.trace_stop"() : () -> ()
    %c128_i32 = arith.constant 128 : i32
    %7 = arith.muli %arg2, %c128_i32 : i32
    %8 = tpu.iota {dimensions = array<i32: 2>} : vector<1x1x128xi32>
    %9 = vector.broadcast %7 : i32 to vector<1x1x128xi32>
    %10 = arith.addi %9, %8 : vector<1x1x128xi32>
    %c8_i32 = arith.constant 8 : i32
    %11 = vector.broadcast %c8_i32 : i32 to vector<1x1x128xi32>
    %12 = arith.cmpi slt, %10, %11 : vector<1x1x128xi32>
    %cst_9 = arith.constant -1.000000e+30 : f32
    %13 = vector.shape_cast %12 : vector<1x1x128xi1> to vector<1x1x128xi1>
    %14 = vector.broadcast %13 : vector<1x1x128xi1> to vector<4x128x128xi1>
    %15 = vector.broadcast %cst_9 : f32 to vector<4x128x128xf32>
    %16 = arith.select %14, %6, %15 : vector<4x128x128xi1>, vector<4x128x128xf32>
    %c0_10 = arith.constant 0 : index
    %c0_11 = arith.constant 0 : index
    %c0_12 = arith.constant 0 : index
    %17 = vector.load %arg8[%c0_10, %c0_11, %c0_12] : memref<4x128x1xf32, #tpu.memory_space<vmem>>, vector<4x128x1xf32>
    %cst_13 = arith.constant dense<0xFF800000> : vector<4x128xf32>
    %18 = vector.multi_reduction <maximumf>, %16, %cst_13 [2] : vector<4x128x128xf32> to vector<4x128xf32>
    %19 = vector.shape_cast %18 : vector<4x128xf32> to vector<4x128x1xf32>
    %20 = arith.maximumf %17, %19 : vector<4x128x1xf32>
    %21 = arith.subf %17, %20 : vector<4x128x1xf32>
    %22 = math.exp2 %21 : vector<4x128x1xf32>
    %23 = vector.broadcast %20 : vector<4x128x1xf32> to vector<4x128x128xf32>
    %24 = arith.subf %16, %23 : vector<4x128x128xf32>
    %25 = math.exp2 %24 : vector<4x128x128xf32>
    %c0_14 = arith.constant 0 : index
    %c0_15 = arith.constant 0 : index
    %c0_16 = arith.constant 0 : index
    %26 = vector.load %arg9[%c0_14, %c0_15, %c0_16] : memref<4x128x1xf32, #tpu.memory_space<vmem>>, vector<4x128x1xf32>
    %27 = arith.mulf %22, %26 : vector<4x128x1xf32>
    %cst_17 = arith.constant dense<0.000000e+00> : vector<4x128xf32>
    %28 = vector.multi_reduction <add>, %25, %cst_17 [2] : vector<4x128x128xf32> to vector<4x128xf32>
    %29 = vector.shape_cast %28 : vector<4x128xf32> to vector<4x128x1xf32>
    %30 = arith.addf %27, %29 : vector<4x128x1xf32>
    %c0_18 = arith.constant 0 : index
    %c0_19 = arith.constant 0 : index
    %c0_20 = arith.constant 0 : index
    %31 = vector.load %arg9[%c0_18, %c0_19, %c0_20] : memref<4x128x1xf32, #tpu.memory_space<vmem>>, vector<4x128x1xf32>
    tpu.vector_store %arg9[%c0_18, %c0_19, %c0_20], %30 {strides = array<i32>} : memref<4x128x1xf32, #tpu.memory_space<vmem>>, vector<4x128x1xf32>,
    "tpu.trace_start"() <{level = 10 : i32, message = "bqk,bkd->bqd"}> : () -> ()
    %cst_21 = arith.constant dense<0.000000e+00> : vector<4x128x32xf32>
    %32 = tpu.matmul %25, %4, %cst_21 {dimension_numbers = #tpu.dot_dimension_numbers<[2], [1], [1], [2], [0, 0, 0, 1, 1, 2], [0], [0]>} : vector<4x128x128xf32>, vector<4x128x32xf32>, vector<4x128x32xf32> -> vector<4x128x32xf32>
    "tpu.trace_stop"() : () -> ()
    %c0_22 = arith.constant 0 : index
    %c0_23 = arith.constant 0 : index
    %c0_24 = arith.constant 0 : index
    %33 = vector.load %arg10[%c0_22, %c0_23, %c0_24] : memref<4x128x32xf32, #tpu.memory_space<vmem>>, vector<4x128x32xf32>
    %34 = vector.broadcast %22 : vector<4x128x1xf32> to vector<4x128x32xf32>
    %35 = arith.mulf %34, %33 : vector<4x128x32xf32>
    %36 = arith.addf %35, %32 : vector<4x128x32xf32>
    %c0_25 = arith.constant 0 : index
    %c0_26 = arith.constant 0 : index
    %c0_27 = arith.constant 0 : index
    %37 = vector.load %arg10[%c0_25, %c0_26, %c0_27] : memref<4x128x32xf32, #tpu.memory_space<vmem>>, vector<4x128x32xf32>
    tpu.vector_store %arg10[%c0_25, %c0_26, %c0_27], %36 {strides = array<i32>} : memref<4x128x32xf32, #tpu.memory_space<vmem>>, vector<4x128x32xf32>,
    %c0_28 = arith.constant 0 : index
    %c0_29 = arith.constant 0 : index
    %c0_30 = arith.constant 0 : index
    %38 = vector.load %arg8[%c0_28, %c0_29, %c0_30] : memref<4x128x1xf32, #tpu.memory_space<vmem>>, vector<4x128x1xf32>
    tpu.vector_store %arg8[%c0_28, %c0_29, %c0_30], %20 {strides = array<i32>} : memref<4x128x1xf32, #tpu.memory_space<vmem>>, vector<4x128x1xf32>,
    %c0_i32_31 = arith.constant 0 : i32
    %39 = arith.cmpi eq, %arg2, %c0_i32_31 : i32
    %40 = arith.extui %39 : i1 to i32
    %c0_i32_32 = arith.constant 0 : i32
    %41 = arith.cmpi ne, %40, %c0_i32_32 : i32
    scf.if %41 {
      %c0_33 = arith.constant 0 : index
      %c0_34 = arith.constant 0 : index
      %c0_35 = arith.constant 0 : index
      %42 = vector.load %arg9[%c0_33, %c0_34, %c0_35] : memref<4x128x1xf32, #tpu.memory_space<vmem>>, vector<4x128x1xf32>
      %43 = tpu.reciprocal %42 : vector<4x128x1xf32> -> vector<4x128x1xf32>
      %c0_36 = arith.constant 0 : index
      %c0_37 = arith.constant 0 : index
      %c0_38 = arith.constant 0 : index
      %44 = vector.load %arg10[%c0_36, %c0_37, %c0_38] : memref<4x128x32xf32, #tpu.memory_space<vmem>>, vector<4x128x32xf32>
      %45 = vector.broadcast %43 : vector<4x128x1xf32> to vector<4x128x32xf32>
      %46 = arith.mulf %44, %45 : vector<4x128x32xf32>
      %c0_39 = arith.constant 0 : index
      %c0_40 = arith.constant 0 : index
      %c0_41 = arith.constant 0 : index
      %47 = vector.load %arg6[%c0_39, %c0_40, %c0_41] : memref<4x128x32xf32, #tpu.memory_space<vmem>>, vector<4x128x32xf32>
      tpu.vector_store %arg6[%c0_39, %c0_40, %c0_41], %46 {strides = array<i32>} : memref<4x128x32xf32, #tpu.memory_space<vmem>>, vector<4x128x32xf32>,
    } else {
    }
    return
  }
  func.func @transform_0(%arg0: i32, %arg1: i32, %arg2: i32) -> (i32, i32, i32) {
    %c0_i32 = arith.constant 0 : i32
    %c0_i32_0 = arith.constant 0 : i32
    return %arg0, %arg1, %c0_i32 : i32, i32, i32
  }
  func.func @transform_1(%arg0: i32, %arg1: i32, %arg2: i32) -> (i32, i32, i32) {
    %c0_i32 = arith.constant 0 : i32
    %c0_i32_0 = arith.constant 0 : i32
    return %arg0, %arg2, %c0_i32 : i32, i32, i32
  }
  func.func @transform_2(%arg0: i32, %arg1: i32, %arg2: i32) -> (i32, i32, i32) {
    %c0_i32 = arith.constant 0 : i32
    %c0_i32_0 = arith.constant 0 : i32
    return %arg0, %arg2, %c0_i32 : i32, i32, i32
  }
  func.func @transform_3(%arg0: i32, %arg1: i32, %arg2: i32) -> (i32, i32, i32) {
    %c0_i32 = arith.constant 0 : i32
    %c0_i32_0 = arith.constant 0 : i32
    return %arg0, %arg1, %c0_i32 : i32, i32, i32
  }
}

</mosaic_0001>

<bundles_post_ra>
// kernel: tpu_custom_call.1
= control target key start
LH: loop header
LB: loop body
LE: loop exit
PB: predicated region body
PF: predicated region fallthrough
CT: control target
= control target key end

     0   :  { %s6770_s12 = smov 0   ;;  %s6772_s13 = smov 0   ;;  %s9741_s0 = inlined_call_operand.vmem [shape: f32[8,128,32], index: 0, kind: input, shape index: {}]   ;;  %s9742_s1 = inlined_call_operand.vmem [shape: f32[8,128,32], index: 1, kind: input, shape index: {}]   ;;  %s9743_s2 = inlined_call_operand.vmem [shape: f32[8,128,32], index: 2, kind: input, shape index: {}]   ;;  %s9744_s3 = inlined_call_operand.vmem [shape: f32[8,128,32], index: 3, kind: output, shape index: {}]  }
   0x1   :  { %s6774_s14 = smov 0  }
   0x2 LB: > { %s32_s15 = sadd.s32 1, %s6741_s13  ;;  %p5139_p0 = scmp.ge.s32.totalorder %s6745_s14, 1  ;;  %s6745_s14 = sphi %s6774_s14, %s13_s14   ;;  %s6741_s13 = sphi %s6772_s13, %s10259_s13   ;;  %s6737_s12 = sphi %s6770_s12, %s10258_s12  }
   0x3   : > { %p34_p1 = scmp.ge.s32.totalorder %s32_s15, 2  ;;  %p205_p2 = scmp.lt.s32.totalorder %s6745_s14, 3 }
   0x5   : > { %s10261_s15 = smov (%p34_p1, %s32_s15), 0  ;;  %p206_p3 = pnand %p5139_p0, %p205_p2 }
   0x7   : > { %209 = sbr.rel (%p206_p3) target bundleno = 1172 (0x494), region = 32 }
   0xe   : > { %s5140_s16 = sshll.u32 %s6737_s12, 2  ;;  %vm439_vm0 = vcmask 261120   ;;  %vm504_vm3 = vcmask 7168  }
   0xf   : > { %p261_p4 = scmp.lt.s32.totalorder %s5140_s16, 7  ;;  %vm6798_vm1 = vmpackc.low %vm439_vm0, %vm439_vm0 }
  0x11   : > { %s10263_s16 = smov (!%p261_p4, %s5140_s16), 7 }
  0x12   : > { %s6788_s17 = sshll.u32 %s10263_s16, 7 }
  0x13   : > { %s6794_s20 = scalar_lea.vmem %s9742_s1, %s6788_s17  ;;  %s6828_s23 = scalar_lea.vmem %s9741_s0, %s6788_s17 }
  0x14   : > { %v697_v1 = vld [vmem:[%s6794_s20] sm:$0xff]  ;;  %v698_v2 = vld [vmem:[%s6794_s20 + $0x8] sm:$0xff]  ;;  %v699_v6 = vld [vmem:[%s6794_s20 + $0x10] sm:$0xff]  ;;  %s7939_s26 = scalar_lea.vmem %s9743_s2, %s6788_s17  ;;  %s9592_s29 = scalar_lea.vmem %s9744_s3, %s6788_s17 }
  0x15   : > { %v713_v3 = vld [vmem:[%s6794_s20 + $0x80] sm:$0xff]  ;;  %v5990_v4 = vpack.c.bf16 %v698_v2, %v697_v1  ;;  %v714_v5 = vld [vmem:[%s6794_s20 + $0x88] sm:$0xff]  ;;  %v700_v7 = vld [vmem:[%s6794_s20 + $0x18] sm:$0xff] }
  0x16   : > { %v6038_v8 = vpack.c.bf16 %v714_v5, %v713_v3  ;;  %v5996_v9 = vpack.c.bf16 %v700_v7, %v699_v6  ;;  %v715_v10 = vld [vmem:[%s6794_s20 + $0x90] sm:$0xff]  ;;  %v716_v11 = vld [vmem:[%s6794_s20 + $0x98] sm:$0xff]  ;;  %v701_v13 = vld [vmem:[%s6794_s20 + $0x20] sm:$0xff] }
  0x17   : > { %5992 = vmatprep.subr.msk.bf16.mxu0 %vm6798_vm1, %v5990_v4  ;;  %v6044_v12 = vpack.c.bf16 %v716_v11, %v715_v10  ;;  %v702_v14 = vld [vmem:[%s6794_s20 + $0x28] sm:$0xff]  ;;  %v717_v15 = vld [vmem:[%s6794_s20 + $0xa0] sm:$0xff]  ;;  %v703_v27 = vld [vmem:[%s6794_s20 + $0x30] sm:$0xff] }
  0x18   : > { %6040 = vmatprep.subr.msk.bf16.mxu1 %vm6798_vm1, %v6038_v8  ;;  %5995 = vmatpush3.bf16.xpose.msk.msra.mxu0 %vm6798_vm1, %v5990_v4  ;;  %v718_v16 = vld [vmem:[%s6794_s20 + $0xa8] sm:$0xff]  ;;  %v6002_v17 = vpack.c.bf16 %v702_v14, %v701_v13  ;;  %v311_v19 = vld [vmem:[%s6828_s23] sm:$0xff]  ;;  %v313_v28 = vld [vmem:[%s6828_s23 + $0x10] sm:$0xff] }
  0x19   : > { %6043 = vmatpush3.bf16.xpose.msk.msra.mxu1 %vm6798_vm1, %v6038_v8  ;;  %5998 = vmatprep.subr.msk.bf16.mxu0 %vm6798_vm1, %v5996_v9  ;;  %v6050_v18 = vpack.c.bf16 %v718_v16, %v717_v15  ;;  %v375_v20 = vmul.f32 0.25503486, %v311_v19  ;;  %v327_v21 = vld [vmem:[%s6828_s23 + $0x80] sm:$0xff]  ;;  %v312_v22 = vld [vmem:[%s6828_s23 + $0x8] sm:$0xff]  ;;  %v704_v29 = vld [vmem:[%s6794_s20 + $0x38] sm:$0xff] }
  0x1a   : > { %6046 = vmatprep.subr.msk.bf16.mxu1 %vm6798_vm1, %v6044_v12  ;;  %v328_v23 = vld [vmem:[%s6828_s23 + $0x88] sm:$0xff]  ;;  %v391_v24 = vmul.f32 0.25503486, %v327_v21  ;;  %v376_v25 = vmul.f32 0.25503486, %v312_v22  ;;  %v719_v30 = vld [vmem:[%s6794_s20 + $0xb0] sm:$0xff]  ;;  %v6008_v39 = vpack.c.bf16 %v704_v29, %v703_v27 }
  0x1b   : > { %v392_v26 = vmul.f32 0.25503486, %v328_v23  ;;  %440 = vst.msk [vmem:[#allocation2] sm:$0xff] %vm439_vm0, %v375_v20  ;;  %v377_v31 = vmul.f32 0.25503486, %v313_v28  ;;  %v314_v32 = vld [vmem:[%s6828_s23 + $0x18] sm:$0xff] }
  0x1c   : > { %456 = vst.msk [vmem:[#allocation2 + $0x80] sm:$0xff] %vm439_vm0, %v391_v24  ;;  %441 = vst.msk [vmem:[#allocation2 + $0x8] sm:$0xff] %vm439_vm0, %v376_v25  ;;  %v720_v33 = vld [vmem:[%s6794_s20 + $0xb8] sm:$0xff]  ;;  %v378_v34 = vmul.f32 0.25503486, %v314_v32  ;;  %v329_v35 = vld [vmem:[%s6828_s23 + $0x90] sm:$0xff] }
  0x1d   : > { %457 = vst.msk [vmem:[#allocation2 + $0x88] sm:$0xff] %vm439_vm0, %v392_v26  ;;  %v330_v36 = vld [vmem:[%s6828_s23 + $0x98] sm:$0xff]  ;;  %442 = vst.msk [vmem:[#allocation2 + $0x10] sm:$0xff] %vm439_vm0, %v377_v31  ;;  %v393_v37 = vmul.f32 0.25503486, %v329_v35  ;;  %v315_v40 = vld [vmem:[%s6828_s23 + $0x20] sm:$0xff]  ;;  %v6056_v42 = vpack.c.bf16 %v720_v33, %v719_v30 }
  0x1e   : > { %v394_v38 = vmul.f32 0.25503486, %v330_v36  ;;  %443 = vst.msk [vmem:[#allocation2 + $0x18] sm:$0xff] %vm439_vm0, %v378_v34  ;;  %v316_v41 = vld [vmem:[%s6828_s23 + $0x28] sm:$0xff]  ;;  %v379_v43 = vmul.f32 0.25503486, %v315_v40 }
  0x1f   : > { %458 = vst.msk [vmem:[#allocation2 + $0x90] sm:$0xff] %vm439_vm0, %v393_v37  ;;  %v380_v44 = vmul.f32 0.25503486, %v316_v41  ;;  %v331_v45 = vld [vmem:[%s6828_s23 + $0xa0] sm:$0xff]  ;;  %v332_v46 = vld [vmem:[%s6828_s23 + $0xa8] sm:$0xff]  ;;  %v317_v53 = vld [vmem:[%s6828_s23 + $0x30] sm:$0xff] }
  0x20   : > { %6001 = vmatpush3.bf16.xpose.msk.msra.mxu0 %vm6798_vm1, %v5996_v9  ;;  %459 = vst.msk [vmem:[#allocation2 + $0x98] sm:$0xff] %vm439_vm0, %v394_v38  ;;  %444 = vst.msk [vmem:[#allocation2 + $0x20] sm:$0xff] %vm439_vm0, %v379_v43  ;;  %v395_v48 = vmul.f32 0.25503486, %v331_v45  ;;  %v396_v49 = vmul.f32 0.25503486, %v332_v46 }
  0x21   : > { %6049 = vmatpush3.bf16.xpose.msk.msra.mxu1 %vm6798_vm1, %v6044_v12  ;;  %6004 = vmatprep.subr.msk.bf16.mxu0 %vm6798_vm1, %v6002_v17  ;;  %445 = vst.msk [vmem:[#allocation2 + $0x28] sm:$0xff] %vm439_vm0, %v380_v44  ;;  %v705_v50 = vld [vmem:[%s6794_s20 + $0x40] sm:$0xff]  ;;  %v706_v52 = vld [vmem:[%s6794_s20 + $0x48] sm:$0xff]  ;;  %v318_v54 = vld [vmem:[%s6828_s23 + $0x38] sm:$0xff]  ;;  %v381_v57 = vmul.f32 0.25503486, %v317_v53 }
  0x22   : > { %6052 = vmatprep.subr.msk.bf16.mxu1 %vm6798_vm1, %v6050_v18  ;;  %v825_v47 = vld [vmem:[#allocation2] sm:$0xff]  ;;  %460 = vst.msk [vmem:[#allocation2 + $0xa0] sm:$0xff] %vm439_vm0, %v395_v48  ;;  %461 = vst.msk [vmem:[#allocation2 + $0xa8] sm:$0xff] %vm439_vm0, %v396_v49  ;;  %v722_v56 = vld [vmem:[%s6794_s20 + $0xc8] sm:$0xff]  ;;  %v382_v58 = vmul.f32 0.25503486, %v318_v54  ;;  %v6014_v61 = vpack.c.bf16 %v706_v52, %v705_v50 }
  0x23   : > { %v841_v51 = vld [vmem:[#allocation2 + $0x80] sm:$0xff]  ;;  %5574 = vmatprep.mubr.msk.f32.mxu0 %vm439_vm0, %v825_v47  ;;  %v333_v59 = vld [vmem:[%s6828_s23 + $0xb0] sm:$0xff]  ;;  %v334_v60 = vld [vmem:[%s6828_s23 + $0xb8] sm:$0xff]  ;;  %446 = vst.msk [vmem:[#allocation2 + $0x30] sm:$0xff] %vm439_vm0, %v381_v57 }
  0x24   : > { %v721_v55 = vld [vmem:[%s6794_s20 + $0xc0] sm:$0xff]  ;;  %5630 = vmatprep.mubr.msk.f32.mxu1 %vm439_vm0, %v841_v51  ;;  %447 = vst.msk [vmem:[#allocation2 + $0x38] sm:$0xff] %vm439_vm0, %v382_v58  ;;  %v397_v62 = vmul.f32 0.25503486, %v333_v59  ;;  %v398_v63 = vmul.f32 0.25503486, %v334_v60 }
  0x25   : > { %v6062_v1 = vpack.c.bf16 %v722_v56, %v721_v55  ;;  %v319_v2 = vld [vmem:[%s6828_s23 + $0x40] sm:$0xff]  ;;  %v320_v4 = vld [vmem:[%s6828_s23 + $0x48] sm:$0xff]  ;;  %v707_v9 = vld [vmem:[%s6794_s20 + $0x50] sm:$0xff] }
  0x26   : > { %462 = vst.msk [vmem:[#allocation2 + $0xb0] sm:$0xff] %vm439_vm0, %v397_v62  ;;  %463 = vst.msk [vmem:[#allocation2 + $0xb8] sm:$0xff] %vm439_vm0, %v398_v63  ;;  %v383_v3 = vmul.f32 0.25503486, %v319_v2  ;;  %v384_v5 = vmul.f32 0.25503486, %v320_v4 }
  0x27   : > { %v335_v6 = vld [vmem:[%s6828_s23 + $0xc0] sm:$0xff]  ;;  %v336_v8 = vld [vmem:[%s6828_s23 + $0xc8] sm:$0xff]  ;;  %v708_v10 = vld [vmem:[%s6794_s20 + $0x58] sm:$0xff] }
  0x28   : > { %6007 = vmatpush3.bf16.xpose.msk.msra.mxu0 %vm6798_vm1, %v6002_v17  ;;  %448 = vst.msk [vmem:[#allocation2 + $0x40] sm:$0xff] %vm439_vm0, %v383_v3  ;;  %v399_v7 = vmul.f32 0.25503486, %v335_v6  ;;  %449 = vst.msk [vmem:[#allocation2 + $0x48] sm:$0xff] %vm439_vm0, %v384_v5  ;;  %v400_v11 = vmul.f32 0.25503486, %v336_v8  ;;  %v6020_v19 = vpack.c.bf16 %v708_v10, %v707_v9 }
  0x29   : > { %6055 = vmatpush3.bf16.xpose.msk.msra.mxu1 %vm6798_vm1, %v6050_v18  ;;  %6010 = vmatprep.subr.msk.bf16.mxu0 %vm6798_vm1, %v6008_v39  ;;  %v321_v12 = vld [vmem:[%s6828_s23 + $0x50] sm:$0xff]  ;;  %v724_v14 = vld [vmem:[%s6794_s20 + $0xd8] sm:$0xff]  ;;  %v323_v24 = vld [vmem:[%s6828_s23 + $0x60] sm:$0xff] }
  0x2a   : > { %6058 = vmatprep.subr.msk.bf16.mxu1 %vm6798_vm1, %v6056_v42  ;;  %v723_v13 = vld [vmem:[%s6794_s20 + $0xd0] sm:$0xff]  ;;  %464 = vst.msk [vmem:[#allocation2 + $0xc0] sm:$0xff] %vm439_vm0, %v399_v7  ;;  %v385_v15 = vmul.f32 0.25503486, %v321_v12  ;;  %v322_v16 = vld [vmem:[%s6828_s23 + $0x58] sm:$0xff]  ;;  %465 = vst.msk [vmem:[#allocation2 + $0xc8] sm:$0xff] %vm439_vm0, %v400_v11 }
  0x2b   : > { %v386_v17 = vmul.f32 0.25503486, %v322_v16  ;;  %v337_v18 = vld [vmem:[%s6828_s23 + $0xd0] sm:$0xff]  ;;  %v338_v21 = vld [vmem:[%s6828_s23 + $0xd8] sm:$0xff]  ;;  %v6068_v22 = vpack.c.bf16 %v724_v14, %v723_v13  ;;  %v387_v25 = vmul.f32 0.25503486, %v323_v24 }
  0x2c   : > { %450 = vst.msk [vmem:[#allocation2 + $0x50] sm:$0xff] %vm439_vm0, %v385_v15  ;;  %v401_v20 = vmul.f32 0.25503486, %v337_v18  ;;  %v402_v23 = vmul.f32 0.25503486, %v338_v21  ;;  %v324_v26 = vld [vmem:[%s6828_s23 + $0x68] sm:$0xff] }
  0x2d   : > { %451 = vst.msk [vmem:[#allocation2 + $0x58] sm:$0xff] %vm439_vm0, %v386_v17  ;;  %v388_v27 = vmul.f32 0.25503486, %v324_v26  ;;  %v339_v28 = vld [vmem:[%s6828_s23 + $0xe0] sm:$0xff]  ;;  %v340_v29 = vld [vmem:[%s6828_s23 + $0xe8] sm:$0xff]  ;;  %452 = vst.msk [vmem:[#allocation2 + $0x60] sm:$0xff] %vm439_vm0, %v387_v25 }
  0x2e   : > { %466 = vst.msk [vmem:[#allocation2 + $0xd0] sm:$0xff] %vm439_vm0, %v401_v20  ;;  %467 = vst.msk [vmem:[#allocation2 + $0xd8] sm:$0xff] %vm439_vm0, %v402_v23  ;;  %v403_v30 = vmul.f32 0.25503486, %v339_v28  ;;  %v404_v31 = vmul.f32 0.25503486, %v340_v29 }
  0x2f   : > { %v709_v32 = vld [vmem:[%s6794_s20 + $0x60] sm:$0xff]  ;;  %v710_v33 = vld [vmem:[%s6794_s20 + $0x68] sm:$0xff]  ;;  %453 = vst.msk [vmem:[#allocation2 + $0x68] sm:$0xff] %vm439_vm0, %v388_v27  ;;  %v325_v34 = vld [vmem:[%s6828_s23 + $0x70] sm:$0xff] }
  0x30   : > { %6013 = vmatpush3.bf16.xpose.msk.msra.mxu0 %vm6798_vm1, %v6008_v39  ;;  %v725_v35 = vld [vmem:[%s6794_s20 + $0xe0] sm:$0xff]  ;;  %v726_v36 = vld [vmem:[%s6794_s20 + $0xe8] sm:$0xff]  ;;  %468 = vst.msk [vmem:[#allocation2 + $0xe0] sm:$0xff] %vm439_vm0, %v403_v30  ;;  %469 = vst.msk [vmem:[#allocation2 + $0xe8] sm:$0xff] %vm439_vm0, %v404_v31  ;;  %v389_v37 = vmul.f32 0.25503486, %v325_v34  ;;  %v6026_v41 = vpack.c.bf16 %v710_v33, %v709_v32 }
  0x31   : > { %6061 = vmatpush3.bf16.xpose.msk.msra.mxu1 %vm6798_vm1, %v6056_v42  ;;  %6016 = vmatprep.subr.msk.bf16.mxu0 %vm6798_vm1, %v6014_v61  ;;  %v326_v38 = vld [vmem:[%s6828_s23 + $0x78] sm:$0xff]  ;;  %v341_v40 = vld [vmem:[%s6828_s23 + $0xf0] sm:$0xff]  ;;  %v6074_v44 = vpack.c.bf16 %v726_v36, %v725_v35  ;;  %v343_v46 = vld [vmem:[%s6828_s23 + $0x100] sm:$0xff] }
  0x32   : > { %6064 = vmatprep.subr.msk.bf16.mxu1 %vm6798_vm1, %v6062_v1  ;;  %v390_v39 = vmul.f32 0.25503486, %v326_v38  ;;  %454 = vst.msk [vmem:[#allocation2 + $0x70] sm:$0xff] %vm439_vm0, %v389_v37  ;;  %v405_v42 = vmul.f32 0.25503486, %v341_v40  ;;  %v342_v43 = vld [vmem:[%s6828_s23 + $0xf8] sm:$0xff] }
  0x33   : > { %v406_v45 = vmul.f32 0.25503486, %v342_v43  ;;  %v407_v47 = vmul.f32 0.25503486, %v343_v46  ;;  %v344_v48 = vld [vmem:[%s6828_s23 + $0x108] sm:$0xff]  ;;  %v359_v49 = vld [vmem:[%s6828_s23 + $0x180] sm:$0xff] }
  0x34   : > { %455 = vst.msk [vmem:[#allocation2 + $0x78] sm:$0xff] %vm439_vm0, %v390_v39  ;;  %470 = vst.msk [vmem:[#allocation2 + $0xf0] sm:$0xff] %vm439_vm0, %v405_v42  ;;  %v711_v50 = vld [vmem:[%s6794_s20 + $0x70] sm:$0xff]  ;;  %v408_v51 = vmul.f32 0.25503486, %v344_v48  ;;  %v360_v53 = vld [vmem:[%s6828_s23 + $0x188] sm:$0xff] }
  0x35   : > { %471 = vst.msk [vmem:[#allocation2 + $0xf8] sm:$0xff] %vm439_vm0, %v406_v45  ;;  %v423_v52 = vmul.f32 0.25503486, %v359_v49  ;;  %v712_v54 = vld [vmem:[%s6794_s20 + $0x78] sm:$0xff]  ;;  %472 = vst.msk [vmem:[#allocation2 + $0x100] sm:$0xff] %vm439_vm0, %v407_v47  ;;  %v345_v56 = vld [vmem:[%s6828_s23 + $0x110] sm:$0xff] }
  0x36   : > { %v424_v55 = vmul.f32 0.25503486, %v360_v53  ;;  %v346_v57 = vld [vmem:[%s6828_s23 + $0x118] sm:$0xff]  ;;  %v727_v58 = vld [vmem:[%s6794_s20 + $0xf0] sm:$0xff]  ;;  %473 = vst.msk [vmem:[#allocation2 + $0x108] sm:$0xff] %vm439_vm0, %v408_v51  ;;  %v348_v4 = vld [vmem:[%s6828_s23 + $0x128] sm:$0xff]  ;;  %v6032_v5 = vpack.c.bf16 %v712_v54, %v711_v50 }
  0x37   : > { %v728_v59 = vld [vmem:[%s6794_s20 + $0xf8] sm:$0xff]  ;;  %488 = vst.msk [vmem:[#allocation2 + $0x180] sm:$0xff] %vm439_vm0, %v423_v52  ;;  %v409_v60 = vmul.f32 0.25503486, %v345_v56  ;;  %v361_v62 = vld [vmem:[%s6828_s23 + $0x190] sm:$0xff]  ;;  %v363_v8 = vld [vmem:[%s6828_s23 + $0x1a0] sm:$0xff] }
  0x38   : > { %6019 = vmatpush3.bf16.xpose.msk.msra.mxu0 %vm6798_vm1, %v6014_v61  ;;  %v410_v61 = vmul.f32 0.25503486, %v346_v57  ;;  %489 = vst.msk [vmem:[#allocation2 + $0x188] sm:$0xff] %vm439_vm0, %v424_v55  ;;  %v362_v63 = vld [vmem:[%s6828_s23 + $0x198] sm:$0xff]  ;;  %v425_v2 = vmul.f32 0.25503486, %v361_v62  ;;  %v6080_v9 = vpack.c.bf16 %v728_v59, %v727_v58 }
  0x39   : > { %6067 = vmatpush3.bf16.xpose.msk.msra.mxu1 %vm6798_vm1, %v6062_v1  ;;  %6022 = vmatprep.subr.msk.bf16.mxu0 %vm6798_vm1, %v6020_v19  ;;  %v347_v1 = vld [vmem:[%s6828_s23 + $0x120] sm:$0xff]  ;;  %474 = vst.msk [vmem:[#allocation2 + $0x110] sm:$0xff] %vm439_vm0, %v409_v60  ;;  %v426_v3 = vmul.f32 0.25503486, %v362_v63  ;;  %v412_v7 = vmul.f32 0.25503486, %v348_v4 }
  0x3a   : > { %6070 = vmatprep.subr.msk.bf16.mxu1 %vm6798_vm1, %v6068_v22  ;;  %475 = vst.msk [vmem:[#allocation2 + $0x118] sm:$0xff] %vm439_vm0, %v410_v61  ;;  %v411_v6 = vmul.f32 0.25503486, %v347_v1  ;;  %490 = vst.msk [vmem:[#allocation2 + $0x190] sm:$0xff] %vm439_vm0, %v425_v2  ;;  %v427_v10 = vmul.f32 0.25503486, %v363_v8 }
  0x3b   : > { %491 = vst.msk [vmem:[#allocation2 + $0x198] sm:$0xff] %vm439_vm0, %v426_v3  ;;  %v364_v11 = vld [vmem:[%s6828_s23 + $0x1a8] sm:$0xff]  ;;  %v349_v12 = vld [vmem:[%s6828_s23 + $0x130] sm:$0xff]  ;;  %477 = vst.msk [vmem:[#allocation2 + $0x128] sm:$0xff] %vm439_vm0, %v412_v7 }
  0x3c   : > { %476 = vst.msk [vmem:[#allocation2 + $0x120] sm:$0xff] %vm439_vm0, %v411_v6  ;;  %v428_v13 = vmul.f32 0.25503486, %v364_v11  ;;  %v413_v14 = vmul.f32 0.25503486, %v349_v12  ;;  %v350_v15 = vld [vmem:[%s6828_s23 + $0x138] sm:$0xff] }
  0x3d   : > { %492 = vst.msk [vmem:[#allocation2 + $0x1a0] sm:$0xff] %vm439_vm0, %v427_v10  ;;  %v414_v16 = vmul.f32 0.25503486, %v350_v15  ;;  %v365_v17 = vld [vmem:[%s6828_s23 + $0x1b0] sm:$0xff]  ;;  %v366_v18 = vld [vmem:[%s6828_s23 + $0x1b8] sm:$0xff]  ;;  %v351_v23 = vld [vmem:[%s6828_s23 + $0x140] sm:$0xff] }
  0x3e   : > { %493 = vst.msk [vmem:[#allocation2 + $0x1a8] sm:$0xff] %vm439_vm0, %v428_v13  ;;  %478 = vst.msk [vmem:[#allocation2 + $0x130] sm:$0xff] %vm439_vm0, %v413_v14  ;;  %v429_v20 = vmul.f32 0.25503486, %v365_v17  ;;  %v430_v21 = vmul.f32 0.25503486, %v366_v18 }
  0x3f   : > { %479 = vst.msk [vmem:[#allocation2 + $0x138] sm:$0xff] %vm439_vm0, %v414_v16  ;;  %v352_v24 = vld [vmem:[%s6828_s23 + $0x148] sm:$0xff]  ;;  %v745_v25 = vld [vmem:[%s6794_s20 + $0x180] sm:$0xff]  ;;  %v415_v27 = vmul.f32 0.25503486, %v351_v23  ;;  %v353_v31 = vld [vmem:[%s6828_s23 + $0x150] sm:$0xff] }
  0x40   : > { %6025 = vmatpush3.bf16.xpose.msk.msra.mxu0 %vm6798_vm1, %v6020_v19  ;;  %v729_v19 = vld [vmem:[%s6794_s20 + $0x100] sm:$0xff]  ;;  %v746_v26 = vld [vmem:[%s6794_s20 + $0x188] sm:$0xff]  ;;  %494 = vst.msk [vmem:[#allocation2 + $0x1b0] sm:$0xff] %vm439_vm0, %v429_v20  ;;  %495 = vst.msk [vmem:[#allocation2 + $0x1b8] sm:$0xff] %vm439_vm0, %v430_v21  ;;  %v416_v28 = vmul.f32 0.25503486, %v352_v24 }
  0x41   : > { %6073 = vmatpush3.bf16.xpose.msk.msra.mxu1 %vm6798_vm1, %v6068_v22  ;;  %6028 = vmatprep.subr.msk.bf16.mxu0 %vm6798_vm1, %v6026_v41  ;;  %v730_v22 = vld [vmem:[%s6794_s20 + $0x108] sm:$0xff]  ;;  %v367_v29 = vld [vmem:[%s6828_s23 + $0x1c0] sm:$0xff]  ;;  %480 = vst.msk [vmem:[#allocation2 + $0x140] sm:$0xff] %vm439_vm0, %v415_v27  ;;  %v6134_v35 = vpack.c.bf16 %v746_v26, %v745_v25  ;;  %v417_v36 = vmul.f32 0.25503486, %v353_v31  ;;  %v354_v37 = vld [vmem:[%s6828_s23 + $0x158] sm:$0xff] }
  0x42   : > { %6076 = vmatprep.subr.msk.bf16.mxu1 %vm6798_vm1, %v6074_v44  ;;  %v368_v30 = vld [vmem:[%s6828_s23 + $0x1c8] sm:$0xff]  ;;  %v6086_v32 = vpack.c.bf16 %v730_v22, %v729_v19  ;;  %481 = vst.msk [vmem:[#allocation2 + $0x148] sm:$0xff] %vm439_vm0, %v416_v28  ;;  %v431_v33 = vmul.f32 0.25503486, %v367_v29  ;;  %v418_v38 = vmul.f32 0.25503486, %v354_v37 }
  0x43   : > { %v432_v34 = vmul.f32 0.25503486, %v368_v30  ;;  %v369_v39 = vld [vmem:[%s6828_s23 + $0x1d0] sm:$0xff]  ;;  %v370_v40 = vld [vmem:[%s6828_s23 + $0x1d8] sm:$0xff]  ;;  %482 = vst.msk [vmem:[#allocation2 + $0x150] sm:$0xff] %vm439_vm0, %v417_v36  ;;  %v355_v45 = vld [vmem:[%s6828_s23 + $0x160] sm:$0xff] }
  0x44   : > { %496 = vst.msk [vmem:[#allocation2 + $0x1c0] sm:$0xff] %vm439_vm0, %v431_v33  ;;  %v434_v42 = vmul.f32 0.25503486, %v370_v40  ;;  %v731_v43 = vld [vmem:[%s6794_s20 + $0x110] sm:$0xff]  ;;  %483 = vst.msk [vmem:[#allocation2 + $0x158] sm:$0xff] %vm439_vm0, %v418_v38  ;;  %v356_v46 = vld [vmem:[%s6828_s23 + $0x168] sm:$0xff] }
  0x45   : > { %497 = vst.msk [vmem:[#allocation2 + $0x1c8] sm:$0xff] %vm439_vm0, %v432_v34  ;;  %v747_v47 = vld [vmem:[%s6794_s20 + $0x190] sm:$0xff]  ;;  %v748_v48 = vld [vmem:[%s6794_s20 + $0x198] sm:$0xff]  ;;  %v419_v49 = vmul.f32 0.25503486, %v355_v45  ;;  %v371_v51 = vld [vmem:[%s6828_s23 + $0x1e0] sm:$0xff] }
  0x46   : > { %499 = vst.msk [vmem:[#allocation2 + $0x1d8] sm:$0xff] %vm439_vm0, %v434_v42  ;;  %v420_v50 = vmul.f32 0.25503486, %v356_v46  ;;  %v372_v52 = vld [vmem:[%s6828_s23 + $0x1e8] sm:$0xff]  ;;  %v357_v53 = vld [vmem:[%s6828_s23 + $0x170] sm:$0xff]  ;;  %v358_v59 = vld [vmem:[%s6828_s23 + $0x178] sm:$0xff]  ;;  %v6140_v4 = vpack.c.bf16 %v748_v48, %v747_v47 }
  0x47   : > { %v826_v54 = vld [vmem:[#allocation2 + $0x8] sm:$0xff]  ;;  %484 = vst.msk [vmem:[#allocation2 + $0x160] sm:$0xff] %vm439_vm0, %v419_v49  ;;  %v435_v56 = vmul.f32 0.25503486, %v371_v51  ;;  %v436_v57 = vmul.f32 0.25503486, %v372_v52 }
  0x48   : > { %6031 = vmatpush3.bf16.xpose.msk.msra.mxu0 %vm6798_vm1, %v6026_v41  ;;  %v433_v41 = vmul.f32 0.25503486, %v369_v39  ;;  %v842_v55 = vld [vmem:[#allocation2 + $0x88] sm:$0xff]  ;;  %485 = vst.msk [vmem:[#allocation2 + $0x168] sm:$0xff] %vm439_vm0, %v420_v50  ;;  %v421_v58 = vmul.f32 0.25503486, %v357_v53 }
  0x49   : > { %6079 = vmatpush3.bf16.xpose.msk.msra.mxu1 %vm6798_vm1, %v6074_v44  ;;  %6034 = vmatprep.subr.msk.bf16.mxu0 %vm6798_vm1, %v6032_v5  ;;  %v732_v44 = vld [vmem:[%s6794_s20 + $0x118] sm:$0xff]  ;;  %v373_v60 = vld [vmem:[%s6828_s23 + $0x1f0] sm:$0xff]  ;;  %500 = vst.msk [vmem:[#allocation2 + $0x1e0] sm:$0xff] %vm439_vm0, %v435_v56  ;;  %501 = vst.msk [vmem:[#allocation2 + $0x1e8] sm:$0xff] %vm439_vm0, %v436_v57  ;;  %v422_v1 = vmul.f32 0.25503486, %v358_v59 }
  0x4a   : > { %6082 = vmatprep.subr.msk.bf16.mxu1 %vm6798_vm1, %v6080_v9  ;;  %498 = vst.msk [vmem:[#allocation2 + $0x1d0] sm:$0xff] %vm439_vm0, %v433_v41  ;;  %v374_v61 = vld [vmem:[%s6828_s23 + $0x1f8] sm:$0xff]  ;;  %v827_v62 = vld [vmem:[#allocation2 + $0x10] sm:$0xff]  ;;  %v6092_v63 = vpack.c.bf16 %v732_v44, %v731_v43  ;;  %v437_v2 = vmul.f32 0.25503486, %v373_v60  ;;  %486 = vst.msk [vmem:[#allocation2 + $0x170] sm:$0xff] %vm439_vm0, %v421_v58 }
  0x4b   : > { %v843_v3 = vld [vmem:[#allocation2 + $0x90] sm:$0xff]  ;;  %v828_v6 = vld [vmem:[#allocation2 + $0x18] sm:$0xff]  ;;  %487 = vst.msk [vmem:[#allocation2 + $0x178] sm:$0xff] %vm439_vm0, %v422_v1  ;;  %v829_v8 = vld [vmem:[#allocation2 + $0x20] sm:$0xff] }
  0x4c   : > { %502 = vst.msk [vmem:[#allocation2 + $0x1f0] sm:$0xff] %vm439_vm0, %v437_v2  ;;  %v844_v7 = vld [vmem:[#allocation2 + $0x98] sm:$0xff]  ;;  %v734_v10 = vld [vmem:[%s6794_s20 + $0x128] sm:$0xff]  ;;  %v845_v11 = vld [vmem:[#allocation2 + $0xa0] sm:$0xff] }
  0x4d   : > { %v749_v12 = vld [vmem:[%s6794_s20 + $0x1a0] sm:$0xff]  ;;  %v750_v13 = vld [vmem:[%s6794_s20 + $0x1a8] sm:$0xff]  ;;  %v831_v18 = vld [vmem:[#allocation2 + $0x30] sm:$0xff] }
  0x4e   : > { %v830_v14 = vld [vmem:[#allocation2 + $0x28] sm:$0xff]  ;;  %v6146_v17 = vpack.c.bf16 %v750_v13, %v749_v12  ;;  %v832_v19 = vld [vmem:[#allocation2 + $0x38] sm:$0xff]  ;;  %v847_v20 = vld [vmem:[#allocation2 + $0xb0] sm:$0xff] }
  0x4f   : > { %v846_v16 = vld [vmem:[#allocation2 + $0xa8] sm:$0xff]  ;;  %v848_v21 = vld [vmem:[#allocation2 + $0xb8] sm:$0xff]  ;;  %v833_v22 = vld [vmem:[#allocation2 + $0x40] sm:$0xff] }
  0x50   : > { %6037 = vmatpush3.bf16.xpose.msk.msra.mxu0 %vm6798_vm1, %v6032_v5  ;;  %v438_v5 = vmul.f32 0.25503486, %v374_v61  ;;  %v735_v23 = vld [vmem:[%s6794_s20 + $0x130] sm:$0xff]  ;;  %v736_v24 = vld [vmem:[%s6794_s20 + $0x138] sm:$0xff]  ;;  %v849_v25 = vld [vmem:[#allocation2 + $0xc0] sm:$0xff] }
  0x51   : > { %6085 = vmatpush3.bf16.xpose.msk.msra.mxu1 %vm6798_vm1, %v6080_v9  ;;  %6088 = vmatprep.subr.msk.bf16.mxu0 %vm6798_vm1, %v6086_v32  ;;  %v733_v9 = vld [vmem:[%s6794_s20 + $0x120] sm:$0xff]  ;;  %v751_v26 = vld [vmem:[%s6794_s20 + $0x1b0] sm:$0xff]  ;;  %v752_v27 = vld [vmem:[%s6794_s20 + $0x1b8] sm:$0xff]  ;;  %v6104_v29 = vpack.c.bf16 %v736_v24, %v735_v23 }
  0x52   : > { %6136 = vmatprep.subr.msk.bf16.mxu1 %vm6798_vm1, %v6134_v35  ;;  %503 = vst.msk [vmem:[#allocation2 + $0x1f8] sm:$0xff] %vm439_vm0, %v438_v5  ;;  %v6098_v15 = vpack.c.bf16 %v734_v10, %v733_v9  ;;  %v834_v28 = vld [vmem:[#allocation2 + $0x48] sm:$0xff]  ;;  %v6152_v31 = vpack.c.bf16 %v752_v27, %v751_v26  ;;  %v836_v33 = vld [vmem:[#allocation2 + $0x58] sm:$0xff]  ;;  %v851_v34 = vld [vmem:[#allocation2 + $0xd0] sm:$0xff] }
  0x53   : > { %v850_v30 = vld [vmem:[#allocation2 + $0xc8] sm:$0xff]  ;;  %v837_v36 = vld [vmem:[#allocation2 + $0x60] sm:$0xff]  ;;  %v839_v46 = vld [vmem:[#allocation2 + $0x70] sm:$0xff] }
  0x54   : > { %v737_v37 = vld [vmem:[%s6794_s20 + $0x140] sm:$0xff]  ;;  %v738_v38 = vld [vmem:[%s6794_s20 + $0x148] sm:$0xff]  ;;  %v840_v47 = vld [vmem:[#allocation2 + $0x78] sm:$0xff] }
  0x55   : > { %v853_v39 = vld [vmem:[#allocation2 + $0xe0] sm:$0xff]  ;;  %v754_v41 = vld [vmem:[%s6794_s20 + $0x1c8] sm:$0xff]  ;;  %v6110_v43 = vpack.c.bf16 %v738_v38, %v737_v37  ;;  %v855_v48 = vld [vmem:[#allocation2 + $0xf0] sm:$0xff] }
  0x56   : > { %v753_v40 = vld [vmem:[%s6794_s20 + $0x1c0] sm:$0xff]  ;;  %v838_v42 = vld [vmem:[#allocation2 + $0x68] sm:$0xff]  ;;  %v856_v49 = vld [vmem:[#allocation2 + $0xf8] sm:$0xff] }
  0x57   : > { %5575 = vmatmul.mubr.msk.f32.vlgmr.msra.gmra.mrb[0].mxu0 %vm439_vm0, %v826_v54  ;;  %v854_v44 = vld [vmem:[#allocation2 + $0xe8] sm:$0xff]  ;;  %v6158_v45 = vpack.c.bf16 %v754_v41, %v753_v40  ;;  %v857_v50 = vld [vmem:[#allocation2 + $0x100] sm:$0xff]  ;;  %v739_v51 = vld [vmem:[%s6794_s20 + $0x150] sm:$0xff] }
  0x58   : > { %5631 = vmatmul.mubr.msk.f32.vlgmr.msra.gmra.mrb[0].mxu1 %vm439_vm0, %v842_v55  ;;  %6091 = vmatpush3.bf16.xpose.msk.msra.mxu0 %vm6798_vm1, %v6086_v32  ;;  %v835_v32 = vld [vmem:[#allocation2 + $0x50] sm:$0xff]  ;;  %v740_v52 = vld [vmem:[%s6794_s20 + $0x158] sm:$0xff]  ;;  %v873_v53 = vld [vmem:[#allocation2 + $0x180] sm:$0xff] }
  0x59   : > { %5577 = vmatprep.mubr.msk.f32.mxu0 %vm439_vm0, %v827_v62  ;;  %6139 = vmatpush3.bf16.xpose.msk.msra.mxu1 %vm6798_vm1, %v6134_v35  ;;  %v852_v35 = vld [vmem:[#allocation2 + $0xd8] sm:$0xff]  ;;  %v755_v54 = vld [vmem:[%s6794_s20 + $0x1d0] sm:$0xff]  ;;  %v6116_v56 = vpack.c.bf16 %v740_v52, %v739_v51  ;;  %v741_v58 = vld [vmem:[%s6794_s20 + $0x160] sm:$0xff] }
  0x5a   : > { %5633 = vmatprep.mubr.msk.f32.mxu1 %vm439_vm0, %v843_v3  ;;  %6094 = vmatprep.subr.msk.bf16.mxu0 %vm6798_vm1, %v6092_v63  ;;  %v756_v55 = vld [vmem:[%s6794_s20 + $0x1d8] sm:$0xff]  ;;  %v742_v59 = vld [vmem:[%s6794_s20 + $0x168] sm:$0xff]  ;;  %v757_v60 = vld [vmem:[%s6794_s20 + $0x1e0] sm:$0xff] }
  0x5b   : > { %5578 = vmatmul.mubr.msk.f32.gmra.mrb[2].mxu0 %vm439_vm0, %v828_v6  ;;  %6142 = vmatprep.subr.msk.bf16.mxu1 %vm6798_vm1, %v6140_v4  ;;  %v6164_v57 = vpack.c.bf16 %v756_v55, %v755_v54  ;;  %v758_v61 = vld [vmem:[%s6794_s20 + $0x1e8] sm:$0xff]  ;;  %v6122_v62 = vpack.c.bf16 %v742_v59, %v741_v58  ;;  %v743_v1 = vld [vmem:[%s6794_s20 + $0x170] sm:$0xff]  ;;  %v744_v2 = vld [vmem:[%s6794_s20 + $0x178] sm:$0xff] }
  0x5c   : > { %5634 = vmatmul.mubr.msk.f32.gmra.mrb[2].mxu1 %vm439_vm0, %v844_v7  ;;  %5580 = vmatprep.mubr.msk.f32.mxu0 %vm439_vm0, %v829_v8  ;;  %v759_v3 = vld [vmem:[%s6794_s20 + $0x1f0] sm:$0xff]  ;;  %v6128_v5 = vpack.c.bf16 %v744_v2, %v743_v1  ;;  %v858_v7 = vld [vmem:[#allocation2 + $0x108] sm:$0xff]  ;;  %v876_v12 = vld [vmem:[#allocation2 + $0x198] sm:$0xff] }
  0x5d   : > { %5636 = vmatprep.mubr.msk.f32.mxu1 %vm439_vm0, %v845_v11  ;;  %v874_v8 = vld [vmem:[#allocation2 + $0x188] sm:$0xff]  ;;  %v859_v9 = vld [vmem:[#allocation2 + $0x110] sm:$0xff]  ;;  %v860_v11 = vld [vmem:[#allocation2 + $0x118] sm:$0xff] }
  0x5e   : > { %v875_v10 = vld [vmem:[#allocation2 + $0x190] sm:$0xff]  ;;  %v861_v13 = vld [vmem:[#allocation2 + $0x120] sm:$0xff]  ;;  %v862_v0 = vld [vmem:[#allocation2 + $0x128] sm:$0xff] }
  0x5f   : > { %5581 = vmatmul.mubr.msk.f32.gmra.mrb[4].mxu0 %vm439_vm0, %v830_v14  ;;  %v877_v14 = vld [vmem:[#allocation2 + $0x1a0] sm:$0xff]  ;;  %v882_v23 = vld [vmem:[#allocation2 + $0x1c8] sm:$0xff]  ;;  %v867_v24 = vld [vmem:[#allocation2 + $0x150] sm:$0xff] }
  0x60   : > { %6097 = vmatpush3.bf16.xpose.msk.msra.mxu0 %vm6798_vm1, %v6092_v63  ;;  %5637 = vmatmul.mubr.msk.f32.gmra.mrb[4].mxu1 %vm439_vm0, %v846_v16  ;;  %v6170_v63 = vpack.c.bf16 %v758_v61, %v757_v60  ;;  %v863_v16 = vld [vmem:[#allocation2 + $0x130] sm:$0xff]  ;;  %v868_v26 = vld [vmem:[#allocation2 + $0x158] sm:$0xff] }
  0x61   : > { %6145 = vmatpush3.bf16.xpose.msk.msra.mxu1 %vm6798_vm1, %v6140_v4  ;;  %6100 = vmatprep.subr.msk.bf16.mxu0 %vm6798_vm1, %v6098_v15  ;;  %v760_v4 = vld [vmem:[%s6794_s20 + $0x1f8] sm:$0xff] }
  0x62   : > { %6148 = vmatprep.subr.msk.bf16.mxu1 %vm6798_vm1, %v6146_v17  ;;  %5583 = vmatprep.mubr.msk.f32.mxu0 %vm439_vm0, %v831_v18  ;;  %v6176_v6 = vpack.c.bf16 %v760_v4, %v759_v3  ;;  %v864_v18 = vld [vmem:[#allocation2 + $0x138] sm:$0xff] }
  0x63   : > { %5584 = vmatmul.mubr.msk.f32.gmra.mrb[6].mxu0 %vm439_vm0, %v832_v19  ;;  %5639 = vmatprep.mubr.msk.f32.mxu1 %vm439_vm0, %v847_v20  ;;  %v880_v19 = vld [vmem:[#allocation2 + $0x1b8] sm:$0xff]  ;;  %v865_v20 = vld [vmem:[#allocation2 + $0x140] sm:$0xff] }
  0x64   : > { %5640 = vmatmul.mubr.msk.f32.gmra.mrb[6].mxu1 %vm439_vm0, %v848_v21  ;;  %5586 = vmatprep.mubr.msk.f32.mxu0 %vm439_vm0, %v833_v22  ;;  %v881_v21 = vld [vmem:[#allocation2 + $0x1c0] sm:$0xff]  ;;  %v866_v22 = vld [vmem:[#allocation2 + $0x148] sm:$0xff]  ;;  %v884_v27 = vld [vmem:[#allocation2 + $0x1d8] sm:$0xff] }
  0x65   : > { %5642 = vmatprep.mubr.msk.f32.mxu1 %vm439_vm0, %v849_v25  ;;  %v883_v25 = vld [vmem:[#allocation2 + $0x1d0] sm:$0xff] }
  0x67   : > { %5587 = vmatmul.mubr.msk.f32.gmra.mrb[8].mxu0 %vm439_vm0, %v834_v28  ;;  %v869_v28 = vld [vmem:[#allocation2 + $0x160] sm:$0xff] }
  0x68   : > { %6103 = vmatpush3.bf16.xpose.msk.msra.mxu0 %vm6798_vm1, %v6098_v15  ;;  %5643 = vmatmul.mubr.msk.f32.gmra.mrb[8].mxu1 %vm439_vm0, %v850_v30  ;;  %v878_v15 = vld [vmem:[#allocation2 + $0x1a8] sm:$0xff] }
  0x69   : > { %6151 = vmatpush3.bf16.xpose.msk.msra.mxu1 %vm6798_vm1, %v6146_v17  ;;  %6106 = vmatprep.subr.msk.bf16.mxu0 %vm6798_vm1, %v6104_v29  ;;  %v879_v17 = vld [vmem:[#allocation2 + $0x1b0] sm:$0xff]  ;;  %v870_v30 = vld [vmem:[#allocation2 + $0x168] sm:$0xff] }
  0x6a   : > { %6154 = vmatprep.subr.msk.bf16.mxu1 %vm6798_vm1, %v6152_v31  ;;  %5589 = vmatprep.mubr.msk.f32.mxu0 %vm439_vm0, %v835_v32  ;;  %v871_v32 = vld [vmem:[#allocation2 + $0x170] sm:$0xff] }
  0x6b   : > { %5590 = vmatmul.mubr.msk.f32.gmra.mrb[10].mxu0 %vm439_vm0, %v836_v33  ;;  %5645 = vmatprep.mubr.msk.f32.mxu1 %vm439_vm0, %v851_v34  ;;  %v887_v33 = vld [vmem:[#allocation2 + $0x1f0] sm:$0xff]  ;;  %v872_v34 = vld [vmem:[#allocation2 + $0x178] sm:$0xff] }
  0x6c   : > { %5646 = vmatmul.mubr.msk.f32.gmra.mrb[10].mxu1 %vm439_vm0, %v852_v35  ;;  %5592 = vmatprep.mubr.msk.f32.mxu0 %vm439_vm0, %v837_v36  ;;  %v888_v35 = vld [vmem:[#allocation2 + $0x1f8] sm:$0xff]  ;;  %v1855_v36 = vlaneseq }
  0x6d   : > { %5648 = vmatprep.mubr.msk.f32.mxu1 %vm439_vm0, %v853_v39  ;;  %v6747_v39 = vmov -inf  }
  0x6e   : > { %v7192_v37 = vand.u32 127, %v1855_v36  ;;  %522 = vst.msk [vmem:[#allocation3 + $0x88] sm:$0xff] %vm504_vm3, %v6747_v39  ;;  %505 = vst.msk [vmem:[#allocation3] sm:$0xff] %vm504_vm3, %v6747_v39 }
  0x6f   : > { %5593 = vmatmul.mubr.msk.f32.gmra.mrb[12].mxu0 %vm439_vm0, %v838_v42  ;;  %506 = vst.msk [vmem:[#allocation3 + $0x8] sm:$0xff] %vm504_vm3, %v6747_v39  ;;  %507 = vst.msk [vmem:[#allocation3 + $0x10] sm:$0xff] %vm504_vm3, %v6747_v39 }
  0x70   : > { %6109 = vmatpush3.bf16.xpose.msk.msra.mxu0 %vm6798_vm1, %v6104_v29  ;;  %5649 = vmatmul.mubr.msk.f32.gmra.mrb[12].mxu1 %vm439_vm0, %v854_v44  ;;  %v885_v29 = vld [vmem:[#allocation2 + $0x1e0] sm:$0xff]  ;;  %vm1859_vm2 = vcmp.lt.s32.totalorder %v7192_v37, 8  ;;  %508 = vst.msk [vmem:[#allocation3 + $0x18] sm:$0xff] %vm504_vm3, %v6747_v39  ;;  %509 = vst.msk [vmem:[#allocation3 + $0x20] sm:$0xff] %vm504_vm3, %v6747_v39 }
  0x71   : > { %6157 = vmatpush3.bf16.xpose.msk.msra.mxu1 %vm6798_vm1, %v6152_v31  ;;  %6112 = vmatprep.subr.msk.bf16.mxu0 %vm6798_vm1, %v6110_v43  ;;  %v886_v31 = vld [vmem:[#allocation2 + $0x1e8] sm:$0xff]  ;;  %510 = vst.msk [vmem:[#allocation3 + $0x28] sm:$0xff] %vm504_vm3, %v6747_v39  ;;  %511 = vst.msk [vmem:[#allocation3 + $0x30] sm:$0xff] %vm504_vm3, %v6747_v39  ;;  %v761_v37 = vld [vmem:[%s7939_s26] sm:$0xff] }
  0x72   : > { %6160 = vmatprep.subr.msk.bf16.mxu1 %vm6798_vm1, %v6158_v45  ;;  %5595 = vmatprep.mubr.msk.f32.mxu0 %vm439_vm0, %v839_v46  ;;  %512 = vst.msk [vmem:[#allocation3 + $0x38] sm:$0xff] %vm504_vm3, %v6747_v39  ;;  %513 = vst.msk [vmem:[#allocation3 + $0x40] sm:$0xff] %vm504_vm3, %v6747_v39 }
  0x73   : > { %5596 = vmatmul.mubr.msk.f32.gmra.mrb[14].mxu0 %vm439_vm0, %v840_v47  ;;  %5651 = vmatprep.mubr.msk.f32.mxu1 %vm439_vm0, %v855_v48  ;;  %514 = vst.msk [vmem:[#allocation3 + $0x48] sm:$0xff] %vm504_vm3, %v6747_v39  ;;  %515 = vst.msk [vmem:[#allocation3 + $0x50] sm:$0xff] %vm504_vm3, %v6747_v39 }
  0x74   : > { %5652 = vmatmul.mubr.msk.f32.gmra.mrb[14].mxu1 %vm439_vm0, %v856_v49  ;;  %5686 = vmatprep.mubr.msk.f32.mxu0 %vm439_vm0, %v857_v50  ;;  %516 = vst.msk [vmem:[#allocation3 + $0x58] sm:$0xff] %vm504_vm3, %v6747_v39  ;;  %517 = vst.msk [vmem:[#allocation3 + $0x60] sm:$0xff] %vm504_vm3, %v6747_v39 }
  0x75   : > { %5742 = vmatprep.mubr.msk.f32.mxu1 %vm439_vm0, %v873_v53  ;;  %518 = vst.msk [vmem:[#allocation3 + $0x68] sm:$0xff] %vm504_vm3, %v6747_v39  ;;  %519 = vst.msk [vmem:[#allocation3 + $0x70] sm:$0xff] %vm504_vm3, %v6747_v39 }
  0x76   : > { %520 = vst.msk [vmem:[#allocation3 + $0x78] sm:$0xff] %vm504_vm3, %v6747_v39  ;;  %521 = vst.msk [vmem:[#allocation3 + $0x80] sm:$0xff] %vm504_vm3, %v6747_v39 }
  0x77   : > { %523 = vst.msk [vmem:[#allocation3 + $0x90] sm:$0xff] %vm504_vm3, %v6747_v39  ;;  %524 = vst.msk [vmem:[#allocation3 + $0x98] sm:$0xff] %vm504_vm3, %v6747_v39 }
  0x78   : > { %6115 = vmatpush3.bf16.xpose.msk.msra.mxu0 %vm6798_vm1, %v6110_v43  ;;  %525 = vst.msk [vmem:[#allocation3 + $0xa0] sm:$0xff] %vm504_vm3, %v6747_v39  ;;  %526 = vst.msk [vmem:[#allocation3 + $0xa8] sm:$0xff] %vm504_vm3, %v6747_v39 }
  0x79   : > { %6163 = vmatpush3.bf16.xpose.msk.msra.mxu1 %vm6798_vm1, %v6158_v45  ;;  %6118 = vmatprep.subr.msk.bf16.mxu0 %vm6798_vm1, %v6116_v56  ;;  %527 = vst.msk [vmem:[#allocation3 + $0xb0] sm:$0xff] %vm504_vm3, %v6747_v39  ;;  %528 = vst.msk [vmem:[#allocation3 + $0xb8] sm:$0xff] %vm504_vm3, %v6747_v39 }
  0x7a   : > { %6166 = vmatprep.subr.msk.bf16.mxu1 %vm6798_vm1, %v6164_v57  ;;  %529 = vst.msk [vmem:[#allocation3 + $0xc0] sm:$0xff] %vm504_vm3, %v6747_v39  ;;  %530 = vst.msk [vmem:[#allocation3 + $0xc8] sm:$0xff] %vm504_vm3, %v6747_v39 }
  0x7b   : > { %531 = vst.msk [vmem:[#allocation3 + $0xd0] sm:$0xff] %vm504_vm3, %v6747_v39  ;;  %532 = vst.msk [vmem:[#allocation3 + $0xd8] sm:$0xff] %vm504_vm3, %v6747_v39 }
  0x7c   : > { %533 = vst.msk [vmem:[#allocation3 + $0xe0] sm:$0xff] %vm504_vm3, %v6747_v39  ;;  %534 = vst.msk [vmem:[#allocation3 + $0xe8] sm:$0xff] %vm504_vm3, %v6747_v39 }
  0x7d   : > { %535 = vst.msk [vmem:[#allocation3 + $0xf0] sm:$0xff] %vm504_vm3, %v6747_v39  ;;  %536 = vst.msk [vmem:[#allocation3 + $0xf8] sm:$0xff] %vm504_vm3, %v6747_v39 }
  0x7e   : > { %537 = vst.msk [vmem:[#allocation3 + $0x100] sm:$0xff] %vm504_vm3, %v6747_v39  ;;  %538 = vst.msk [vmem:[#allocation3 + $0x108] sm:$0xff] %vm504_vm3, %v6747_v39 }
  0x7f   : > { %539 = vst.msk [vmem:[#allocation3 + $0x110] sm:$0xff] %vm504_vm3, %v6747_v39  ;;  %540 = vst.msk [vmem:[#allocation3 + $0x118] sm:$0xff] %vm504_vm3, %v6747_v39 }
  0x80   : > { %6121 = vmatpush3.bf16.xpose.msk.msra.mxu0 %vm6798_vm1, %v6116_v56  ;;  %541 = vst.msk [vmem:[#allocation3 + $0x120] sm:$0xff] %vm504_vm3, %v6747_v39  ;;  %542 = vst.msk [vmem:[#allocation3 + $0x128] sm:$0xff] %vm504_vm3, %v6747_v39 }
  0x81   : > { %6169 = vmatpush3.bf16.xpose.msk.msra.mxu1 %vm6798_vm1, %v6164_v57  ;;  %6124 = vmatprep.subr.msk.bf16.mxu0 %vm6798_vm1, %v6122_v62  ;;  %543 = vst.msk [vmem:[#allocation3 + $0x130] sm:$0xff] %vm504_vm3, %v6747_v39  ;;  %544 = vst.msk [vmem:[#allocation3 + $0x138] sm:$0xff] %vm504_vm3, %v6747_v39 }
  0x82   : > { %6172 = vmatprep.subr.msk.bf16.mxu1 %vm6798_vm1, %v6170_v63  ;;  %545 = vst.msk [vmem:[#allocation3 + $0x140] sm:$0xff] %vm504_vm3, %v6747_v39  ;;  %546 = vst.msk [vmem:[#allocation3 + $0x148] sm:$0xff] %vm504_vm3, %v6747_v39 }
  0x83   : > { %547 = vst.msk [vmem:[#allocation3 + $0x150] sm:$0xff] %vm504_vm3, %v6747_v39  ;;  %548 = vst.msk [vmem:[#allocation3 + $0x158] sm:$0xff] %vm504_vm3, %v6747_v39 }
  0x84   : > { %549 = vst.msk [vmem:[#allocation3 + $0x160] sm:$0xff] %vm504_vm3, %v6747_v39  ;;  %550 = vst.msk [vmem:[#allocation3 + $0x168] sm:$0xff] %vm504_vm3, %v6747_v39 }
  0x85   : > { %551 = vst.msk [vmem:[#allocation3 + $0x170] sm:$0xff] %vm504_vm3, %v6747_v39  ;;  %552 = vst.msk [vmem:[#allocation3 + $0x178] sm:$0xff] %vm504_vm3, %v6747_v39 }
  0x86   : > { %553 = vst.msk [vmem:[#allocation3 + $0x180] sm:$0xff] %vm504_vm3, %v6747_v39  ;;  %554 = vst.msk [vmem:[#allocation3 + $0x188] sm:$0xff] %vm504_vm3, %v6747_v39 }
  0x87   : > { %555 = vst.msk [vmem:[#allocation3 + $0x190] sm:$0xff] %vm504_vm3, %v6747_v39  ;;  %556 = vst.msk [vmem:[#allocation3 + $0x198] sm:$0xff] %vm504_vm3, %v6747_v39 }
  0x88   : > { %6127 = vmatpush3.bf16.xpose.msk.msra.mxu0 %vm6798_vm1, %v6122_v62  ;;  %557 = vst.msk [vmem:[#allocation3 + $0x1a0] sm:$0xff] %vm504_vm3, %v6747_v39  ;;  %558 = vst.msk [vmem:[#allocation3 + $0x1a8] sm:$0xff] %vm504_vm3, %v6747_v39 }
  0x89   : > { %6175 = vmatpush3.bf16.xpose.msk.msra.mxu1 %vm6798_vm1, %v6170_v63  ;;  %6130 = vmatprep.subr.msk.bf16.mxu0 %vm6798_vm1, %v6128_v5  ;;  %559 = vst.msk [vmem:[#allocation3 + $0x1b0] sm:$0xff] %vm504_vm3, %v6747_v39  ;;  %560 = vst.msk [vmem:[#allocation3 + $0x1b8] sm:$0xff] %vm504_vm3, %v6747_v39 }
  0x8a   : > { %6178 = vmatprep.subr.msk.bf16.mxu1 %vm6798_vm1, %v6176_v6  ;;  %561 = vst.msk [vmem:[#allocation3 + $0x1c0] sm:$0xff] %vm504_vm3, %v6747_v39  ;;  %562 = vst.msk [vmem:[#allocation3 + $0x1c8] sm:$0xff] %vm504_vm3, %v6747_v39 }
  0x8b   : > { %563 = vst.msk [vmem:[#allocation3 + $0x1d0] sm:$0xff] %vm504_vm3, %v6747_v39  ;;  %564 = vst.msk [vmem:[#allocation3 + $0x1d8] sm:$0xff] %vm504_vm3, %v6747_v39 }
  0x8c   : > { %565 = vst.msk [vmem:[#allocation3 + $0x1e0] sm:$0xff] %vm504_vm3, %v6747_v39  ;;  %566 = vst.msk [vmem:[#allocation3 + $0x1e8] sm:$0xff] %vm504_vm3, %v6747_v39 }
  0x8d   : > { %567 = vst.msk [vmem:[#allocation3 + $0x1f0] sm:$0xff] %vm504_vm3, %v6747_v39  ;;  %568 = vst.msk [vmem:[#allocation3 + $0x1f8] sm:$0xff] %vm504_vm3, %v6747_v39 }
  0x90   : > { %6133 = vmatpush3.bf16.xpose.msk.msra.mxu0 %vm6798_vm1, %v6128_v5 }
  0x91   : > { %6181 = vmatpush3.bf16.xpose.msk.msra.mxu1 %vm6798_vm1, %v6176_v6  ;;  %v6748_v6 = vmov 0  }
  0x92   : > { %6337 = vset.pattern.permute.xlu1 %v6748_v6  ;;  %6338 = vset.pattern.permute.xlu0 %v6748_v6 }
  0x97   : > { %5687 = vmatmul.mubr.msk.f32.vlgmr.msra.gmra.mrb[16].mxu0 %vm439_vm0, %v858_v7 }
  0x98   : > { %5743 = vmatmul.mubr.msk.f32.vlgmr.msra.gmra.mrb[16].mxu1 %vm439_vm0, %v874_v8  ;;  %5689 = vmatprep.mubr.msk.f32.mxu0 %vm439_vm0, %v859_v9 }
  0x99   : > { %5745 = vmatprep.mubr.msk.f32.mxu1 %vm439_vm0, %v875_v10 }
  0x9b   : > { %5690 = vmatmul.mubr.msk.f32.gmra.mrb[18].mxu0 %vm439_vm0, %v860_v11 }
  0x9c   : > { %5746 = vmatmul.mubr.msk.f32.gmra.mrb[18].mxu1 %vm439_vm0, %v876_v12  ;;  %5692 = vmatprep.mubr.msk.f32.mxu0 %vm439_vm0, %v861_v13 }
  0x9d   : > { %5748 = vmatprep.mubr.msk.f32.mxu1 %vm439_vm0, %v877_v14 }
  0x9f   : > { %5693 = vmatmul.mubr.msk.f32.gmra.mrb[20].mxu0 %vm439_vm0, %v862_v0 }
  0xa0   : > { %5749 = vmatmul.mubr.msk.f32.gmra.mrb[20].mxu1 %vm439_vm0, %v878_v15  ;;  %5695 = vmatprep.mubr.msk.f32.mxu0 %vm439_vm0, %v863_v16  ;;  %v6749_v15 = vmov 0.0  }
  0xa1   : > { %5751 = vmatprep.mubr.msk.f32.mxu1 %vm439_vm0, %v879_v17  ;;  %650 = vst.msk [vmem:[#allocation5 + $0x88] sm:$0xff] %vm439_vm0, %v6749_v15  ;;  %633 = vst.msk [vmem:[#allocation5] sm:$0xff] %vm439_vm0, %v6749_v15 }
  0xa2   : > { %569 = vst.msk [vmem:[#allocation4] sm:$0xff] %vm504_vm3, %v6749_v15  ;;  %570 = vst.msk [vmem:[#allocation4 + $0x8] sm:$0xff] %vm504_vm3, %v6749_v15 }
  0xa3   : > { %5696 = vmatmul.mubr.msk.f32.gmra.mrb[22].mxu0 %vm439_vm0, %v864_v18  ;;  %571 = vst.msk [vmem:[#allocation4 + $0x10] sm:$0xff] %vm504_vm3, %v6749_v15  ;;  %572 = vst.msk [vmem:[#allocation4 + $0x18] sm:$0xff] %vm504_vm3, %v6749_v15 }
  0xa4   : > { %5752 = vmatmul.mubr.msk.f32.gmra.mrb[22].mxu1 %vm439_vm0, %v880_v19  ;;  %5698 = vmatprep.mubr.msk.f32.mxu0 %vm439_vm0, %v865_v20  ;;  %573 = vst.msk [vmem:[#allocation4 + $0x20] sm:$0xff] %vm504_vm3, %v6749_v15  ;;  %574 = vst.msk [vmem:[#allocation4 + $0x28] sm:$0xff] %vm504_vm3, %v6749_v15 }
  0xa5   : > { %5754 = vmatprep.mubr.msk.f32.mxu1 %vm439_vm0, %v881_v21  ;;  %575 = vst.msk [vmem:[#allocation4 + $0x30] sm:$0xff] %vm504_vm3, %v6749_v15  ;;  %576 = vst.msk [vmem:[#allocation4 + $0x38] sm:$0xff] %vm504_vm3, %v6749_v15 }
  0xa6   : > { %577 = vst.msk [vmem:[#allocation4 + $0x40] sm:$0xff] %vm504_vm3, %v6749_v15  ;;  %578 = vst.msk [vmem:[#allocation4 + $0x48] sm:$0xff] %vm504_vm3, %v6749_v15 }
  0xa7   : > { %5699 = vmatmul.mubr.msk.f32.gmra.mrb[24].mxu0 %vm439_vm0, %v866_v22  ;;  %579 = vst.msk [vmem:[#allocation4 + $0x50] sm:$0xff] %vm504_vm3, %v6749_v15  ;;  %580 = vst.msk [vmem:[#allocation4 + $0x58] sm:$0xff] %vm504_vm3, %v6749_v15 }
  0xa8   : > { %5755 = vmatmul.mubr.msk.f32.gmra.mrb[24].mxu1 %vm439_vm0, %v882_v23  ;;  %5701 = vmatprep.mubr.msk.f32.mxu0 %vm439_vm0, %v867_v24  ;;  %581 = vst.msk [vmem:[#allocation4 + $0x60] sm:$0xff] %vm504_vm3, %v6749_v15  ;;  %582 = vst.msk [vmem:[#allocation4 + $0x68] sm:$0xff] %vm504_vm3, %v6749_v15 }
  0xa9   : > { %5757 = vmatprep.mubr.msk.f32.mxu1 %vm439_vm0, %v883_v25  ;;  %583 = vst.msk [vmem:[#allocation4 + $0x70] sm:$0xff] %vm504_vm3, %v6749_v15  ;;  %584 = vst.msk [vmem:[#allocation4 + $0x78] sm:$0xff] %vm504_vm3, %v6749_v15 }
  0xaa   : > { %585 = vst.msk [vmem:[#allocation4 + $0x80] sm:$0xff] %vm504_vm3, %v6749_v15  ;;  %586 = vst.msk [vmem:[#allocation4 + $0x88] sm:$0xff] %vm504_vm3, %v6749_v15 }
  0xab   : > { %5702 = vmatmul.mubr.msk.f32.gmra.mrb[26].mxu0 %vm439_vm0, %v868_v26  ;;  %587 = vst.msk [vmem:[#allocation4 + $0x90] sm:$0xff] %vm504_vm3, %v6749_v15  ;;  %588 = vst.msk [vmem:[#allocation4 + $0x98] sm:$0xff] %vm504_vm3, %v6749_v15 }
  0xac   : > { %5758 = vmatmul.mubr.msk.f32.gmra.mrb[26].mxu1 %vm439_vm0, %v884_v27  ;;  %5704 = vmatprep.mubr.msk.f32.mxu0 %vm439_vm0, %v869_v28  ;;  %589 = vst.msk [vmem:[#allocation4 + $0xa0] sm:$0xff] %vm504_vm3, %v6749_v15  ;;  %590 = vst.msk [vmem:[#allocation4 + $0xa8] sm:$0xff] %vm504_vm3, %v6749_v15 }
  0xad   : > { %5760 = vmatprep.mubr.msk.f32.mxu1 %vm439_vm0, %v885_v29  ;;  %591 = vst.msk [vmem:[#allocation4 + $0xb0] sm:$0xff] %vm504_vm3, %v6749_v15  ;;  %592 = vst.msk [vmem:[#allocation4 + $0xb8] sm:$0xff] %vm504_vm3, %v6749_v15 }
  0xae   : > { %593 = vst.msk [vmem:[#allocation4 + $0xc0] sm:$0xff] %vm504_vm3, %v6749_v15  ;;  %594 = vst.msk [vmem:[#allocation4 + $0xc8] sm:$0xff] %vm504_vm3, %v6749_v15 }
  0xaf   : > { %5705 = vmatmul.mubr.msk.f32.gmra.mrb[28].mxu0 %vm439_vm0, %v870_v30  ;;  %595 = vst.msk [vmem:[#allocation4 + $0xd0] sm:$0xff] %vm504_vm3, %v6749_v15  ;;  %596 = vst.msk [vmem:[#allocation4 + $0xd8] sm:$0xff] %vm504_vm3, %v6749_v15 }
  0xb0   : > { %5761 = vmatmul.mubr.msk.f32.gmra.mrb[28].mxu1 %vm439_vm0, %v886_v31  ;;  %5707 = vmatprep.mubr.msk.f32.mxu0 %vm439_vm0, %v871_v32  ;;  %597 = vst.msk [vmem:[#allocation4 + $0xe0] sm:$0xff] %vm504_vm3, %v6749_v15  ;;  %598 = vst.msk [vmem:[#allocation4 + $0xe8] sm:$0xff] %vm504_vm3, %v6749_v15 }
  0xb1   : > { %5763 = vmatprep.mubr.msk.f32.mxu1 %vm439_vm0, %v887_v33  ;;  %599 = vst.msk [vmem:[#allocation4 + $0xf0] sm:$0xff] %vm504_vm3, %v6749_v15  ;;  %600 = vst.msk [vmem:[#allocation4 + $0xf8] sm:$0xff] %vm504_vm3, %v6749_v15 }
  0xb2   : > { %601 = vst.msk [vmem:[#allocation4 + $0x100] sm:$0xff] %vm504_vm3, %v6749_v15  ;;  %602 = vst.msk [vmem:[#allocation4 + $0x108] sm:$0xff] %vm504_vm3, %v6749_v15 }
  0xb3   : > { %5708 = vmatmul.mubr.msk.f32.gmra.mrb[30].mxu0 %vm439_vm0, %v872_v34  ;;  %603 = vst.msk [vmem:[#allocation4 + $0x110] sm:$0xff] %vm504_vm3, %v6749_v15  ;;  %604 = vst.msk [vmem:[#allocation4 + $0x118] sm:$0xff] %vm504_vm3, %v6749_v15 }
  0xb4   : > { %5764 = vmatmul.mubr.msk.f32.gmra.mrb[30].mxu1 %vm439_vm0, %v888_v35  ;;  %605 = vst.msk [vmem:[#allocation4 + $0x120] sm:$0xff] %vm504_vm3, %v6749_v15  ;;  %606 = vst.msk [vmem:[#allocation4 + $0x128] sm:$0xff] %vm504_vm3, %v6749_v15 }
  0xb5   : > { %607 = vst.msk [vmem:[#allocation4 + $0x130] sm:$0xff] %vm504_vm3, %v6749_v15  ;;  %608 = vst.msk [vmem:[#allocation4 + $0x138] sm:$0xff] %vm504_vm3, %v6749_v15 }
  0xb6   : > { %609 = vst.msk [vmem:[#allocation4 + $0x140] sm:$0xff] %vm504_vm3, %v6749_v15  ;;  %610 = vst.msk [vmem:[#allocation4 + $0x148] sm:$0xff] %vm504_vm3, %v6749_v15 }
  0xb7   : > { %611 = vst.msk [vmem:[#allocation4 + $0x150] sm:$0xff] %vm504_vm3, %v6749_v15  ;;  %612 = vst.msk [vmem:[#allocation4 + $0x158] sm:$0xff] %vm504_vm3, %v6749_v15 }
  0xb8   : > { %613 = vst.msk [vmem:[#allocation4 + $0x160] sm:$0xff] %vm504_vm3, %v6749_v15  ;;  %614 = vst.msk [vmem:[#allocation4 + $0x168] sm:$0xff] %vm504_vm3, %v6749_v15 }
  0xb9   : > { %615 = vst.msk [vmem:[#allocation4 + $0x170] sm:$0xff] %vm504_vm3, %v6749_v15  ;;  %616 = vst.msk [vmem:[#allocation4 + $0x178] sm:$0xff] %vm504_vm3, %v6749_v15 }
  0xba   : > { %617 = vst.msk [vmem:[#allocation4 + $0x180] sm:$0xff] %vm504_vm3, %v6749_v15  ;;  %618 = vst.msk [vmem:[#allocation4 + $0x188] sm:$0xff] %vm504_vm3, %v6749_v15 }
  0xbb   : > { %619 = vst.msk [vmem:[#allocation4 + $0x190] sm:$0xff] %vm504_vm3, %v6749_v15  ;;  %620 = vst.msk [vmem:[#allocation4 + $0x198] sm:$0xff] %vm504_vm3, %v6749_v15 }
  0xbc   : > { %621 = vst.msk [vmem:[#allocation4 + $0x1a0] sm:$0xff] %vm504_vm3, %v6749_v15  ;;  %622 = vst.msk [vmem:[#allocation4 + $0x1a8] sm:$0xff] %vm504_vm3, %v6749_v15 }
  0xbd   : > { %623 = vst.msk [vmem:[#allocation4 + $0x1b0] sm:$0xff] %vm504_vm3, %v6749_v15  ;;  %624 = vst.msk [vmem:[#allocation4 + $0x1b8] sm:$0xff] %vm504_vm3, %v6749_v15 }
  0xbe   : > { %625 = vst.msk [vmem:[#allocation4 + $0x1c0] sm:$0xff] %vm504_vm3, %v6749_v15  ;;  %626 = vst.msk [vmem:[#allocation4 + $0x1c8] sm:$0xff] %vm504_vm3, %v6749_v15 }
  0xbf   : > { %627 = vst.msk [vmem:[#allocation4 + $0x1d0] sm:$0xff] %vm504_vm3, %v6749_v15  ;;  %628 = vst.msk [vmem:[#allocation4 + $0x1d8] sm:$0xff] %vm504_vm3, %v6749_v15 }
  0xc0   : > { %629 = vst.msk [vmem:[#allocation4 + $0x1e0] sm:$0xff] %vm504_vm3, %v6749_v15  ;;  %630 = vst.msk [vmem:[#allocation4 + $0x1e8] sm:$0xff] %vm504_vm3, %v6749_v15 }
  0xc1   : > { %631 = vst.msk [vmem:[#allocation4 + $0x1f0] sm:$0xff] %vm504_vm3, %v6749_v15  ;;  %632 = vst.msk [vmem:[#allocation4 + $0x1f8] sm:$0xff] %vm504_vm3, %v6749_v15 }
  0xc2   : > { %634 = vst.msk [vmem:[#allocation5 + $0x8] sm:$0xff] %vm439_vm0, %v6749_v15  ;;  %635 = vst.msk [vmem:[#allocation5 + $0x10] sm:$0xff] %vm439_vm0, %v6749_v15 }
  0xc3   : > { %636 = vst.msk [vmem:[#allocation5 + $0x18] sm:$0xff] %vm439_vm0, %v6749_v15  ;;  %637 = vst.msk [vmem:[#allocation5 + $0x20] sm:$0xff] %vm439_vm0, %v6749_v15 }
  0xc4   : > { %638 = vst.msk [vmem:[#allocation5 + $0x28] sm:$0xff] %vm439_vm0, %v6749_v15  ;;  %639 = vst.msk [vmem:[#allocation5 + $0x30] sm:$0xff] %vm439_vm0, %v6749_v15 }
  0xc5   : > { %640 = vst.msk [vmem:[#allocation5 + $0x38] sm:$0xff] %vm439_vm0, %v6749_v15  ;;  %641 = vst.msk [vmem:[#allocation5 + $0x40] sm:$0xff] %vm439_vm0, %v6749_v15 }
  0xc6   : > { %642 = vst.msk [vmem:[#allocation5 + $0x48] sm:$0xff] %vm439_vm0, %v6749_v15  ;;  %643 = vst.msk [vmem:[#allocation5 + $0x50] sm:$0xff] %vm439_vm0, %v6749_v15 }
  0xc7   : > { %644 = vst.msk [vmem:[#allocation5 + $0x58] sm:$0xff] %vm439_vm0, %v6749_v15  ;;  %645 = vst.msk [vmem:[#allocation5 + $0x60] sm:$0xff] %vm439_vm0, %v6749_v15 }
  0xc8   : > { %646 = vst.msk [vmem:[#allocation5 + $0x68] sm:$0xff] %vm439_vm0, %v6749_v15  ;;  %647 = vst.msk [vmem:[#allocation5 + $0x70] sm:$0xff] %vm439_vm0, %v6749_v15 }
  0xc9   : > { %648 = vst.msk [vmem:[#allocation5 + $0x78] sm:$0xff] %vm439_vm0, %v6749_v15  ;;  %649 = vst.msk [vmem:[#allocation5 + $0x80] sm:$0xff] %vm439_vm0, %v6749_v15 }
  0xca   : > { %651 = vst.msk [vmem:[#allocation5 + $0x90] sm:$0xff] %vm439_vm0, %v6749_v15  ;;  %652 = vst.msk [vmem:[#allocation5 + $0x98] sm:$0xff] %vm439_vm0, %v6749_v15 }
  0xcb   : > { %653 = vst.msk [vmem:[#allocation5 + $0xa0] sm:$0xff] %vm439_vm0, %v6749_v15  ;;  %654 = vst.msk [vmem:[#allocation5 + $0xa8] sm:$0xff] %vm439_vm0, %v6749_v15 }
  0xcc   : > { %655 = vst.msk [vmem:[#allocation5 + $0xb0] sm:$0xff] %vm439_vm0, %v6749_v15  ;;  %656 = vst.msk [vmem:[#allocation5 + $0xb8] sm:$0xff] %vm439_vm0, %v6749_v15 }
  0xcd   : > { %657 = vst.msk [vmem:[#allocation5 + $0xc0] sm:$0xff] %vm439_vm0, %v6749_v15  ;;  %658 = vst.msk [vmem:[#allocation5 + $0xc8] sm:$0xff] %vm439_vm0, %v6749_v15 }
  0xce   : > { %659 = vst.msk [vmem:[#allocation5 + $0xd0] sm:$0xff] %vm439_vm0, %v6749_v15  ;;  %660 = vst.msk [vmem:[#allocation5 + $0xd8] sm:$0xff] %vm439_vm0, %v6749_v15 }
  0xcf   : > { %661 = vst.msk [vmem:[#allocation5 + $0xe0] sm:$0xff] %vm439_vm0, %v6749_v15  ;;  %662 = vst.msk [vmem:[#allocation5 + $0xe8] sm:$0xff] %vm439_vm0, %v6749_v15 }
  0xd0   : > { %663 = vst.msk [vmem:[#allocation5 + $0xf0] sm:$0xff] %vm439_vm0, %v6749_v15  ;;  %664 = vst.msk [vmem:[#allocation5 + $0xf8] sm:$0xff] %vm439_vm0, %v6749_v15 }
  0xd1   : > { %665 = vst.msk [vmem:[#allocation5 + $0x100] sm:$0xff] %vm439_vm0, %v6749_v15  ;;  %666 = vst.msk [vmem:[#allocation5 + $0x108] sm:$0xff] %vm439_vm0, %v6749_v15 }
  0xd2   : > { %667 = vst.msk [vmem:[#allocation5 + $0x110] sm:$0xff] %vm439_vm0, %v6749_v15  ;;  %668 = vst.msk [vmem:[#allocation5 + $0x118] sm:$0xff] %vm439_vm0, %v6749_v15 }
  0xd3   : > { %669 = vst.msk [vmem:[#allocation5 + $0x120] sm:$0xff] %vm439_vm0, %v6749_v15  ;;  %670 = vst.msk [vmem:[#allocation5 + $0x128] sm:$0xff] %vm439_vm0, %v6749_v15 }
  0xd4   : > { %671 = vst.msk [vmem:[#allocation5 + $0x130] sm:$0xff] %vm439_vm0, %v6749_v15  ;;  %672 = vst.msk [vmem:[#allocation5 + $0x138] sm:$0xff] %vm439_vm0, %v6749_v15 }
  0xd5   : > { %673 = vst.msk [vmem:[#allocation5 + $0x140] sm:$0xff] %vm439_vm0, %v6749_v15  ;;  %674 = vst.msk [vmem:[#allocation5 + $0x148] sm:$0xff] %vm439_vm0, %v6749_v15 }
  0xd6   : > { %675 = vst.msk [vmem:[#allocation5 + $0x150] sm:$0xff] %vm439_vm0, %v6749_v15  ;;  %676 = vst.msk [vmem:[#allocation5 + $0x158] sm:$0xff] %vm439_vm0, %v6749_v15 }
  0xd7   : > { %677 = vst.msk [vmem:[#allocation5 + $0x160] sm:$0xff] %vm439_vm0, %v6749_v15  ;;  %678 = vst.msk [vmem:[#allocation5 + $0x168] sm:$0xff] %vm439_vm0, %v6749_v15 }
  0xd8   : > { %679 = vst.msk [vmem:[#allocation5 + $0x170] sm:$0xff] %vm439_vm0, %v6749_v15  ;;  %680 = vst.msk [vmem:[#allocation5 + $0x178] sm:$0xff] %vm439_vm0, %v6749_v15 }
  0xd9   : > { %681 = vst.msk [vmem:[#allocation5 + $0x180] sm:$0xff] %vm439_vm0, %v6749_v15  ;;  %682 = vst.msk [vmem:[#allocation5 + $0x188] sm:$0xff] %vm439_vm0, %v6749_v15 }
  0xda   : > { %683 = vst.msk [vmem:[#allocation5 + $0x190] sm:$0xff] %vm439_vm0, %v6749_v15  ;;  %684 = vst.msk [vmem:[#allocation5 + $0x198] sm:$0xff] %vm439_vm0, %v6749_v15 }
  0xdb   : > { %685 = vst.msk [vmem:[#allocation5 + $0x1a0] sm:$0xff] %vm439_vm0, %v6749_v15  ;;  %686 = vst.msk [vmem:[#allocation5 + $0x1a8] sm:$0xff] %vm439_vm0, %v6749_v15 }
  0xdc   : > { %687 = vst.msk [vmem:[#allocation5 + $0x1b0] sm:$0xff] %vm439_vm0, %v6749_v15  ;;  %688 = vst.msk [vmem:[#allocation5 + $0x1b8] sm:$0xff] %vm439_vm0, %v6749_v15 }
  0xdd   : > { %689 = vst.msk [vmem:[#allocation5 + $0x1c0] sm:$0xff] %vm439_vm0, %v6749_v15  ;;  %690 = vst.msk [vmem:[#allocation5 + $0x1c8] sm:$0xff] %vm439_vm0, %v6749_v15 }
  0xde   : > { %691 = vst.msk [vmem:[#allocation5 + $0x1d0] sm:$0xff] %vm439_vm0, %v6749_v15  ;;  %692 = vst.msk [vmem:[#allocation5 + $0x1d8] sm:$0xff] %vm439_vm0, %v6749_v15 }
  0xdf   : > { %693 = vst.msk [vmem:[#allocation5 + $0x1e0] sm:$0xff] %vm439_vm0, %v6749_v15  ;;  %694 = vst.msk [vmem:[#allocation5 + $0x1e8] sm:$0xff] %vm439_vm0, %v6749_v15 }
  0xe0   : > { %695 = vst.msk [vmem:[#allocation5 + $0x1f0] sm:$0xff] %vm439_vm0, %v6749_v15  ;;  %696 = vst.msk [vmem:[#allocation5 + $0x1f8] sm:$0xff] %vm439_vm0, %v6749_v15 }
 0x12a   : > { %v7195_v38 = vpop.f32.mrb[0].mxu0 }
 0x12b   : > { %v5632_v40 = vpop.f32.mrb[0].mxu1  ;;  %v1052_v41 = vpop.f32.mrb[1].mxu0  ;;  %v7328_v42 = vsel %vm1859_vm2, %v7195_v38, -1e+30 }
 0x12c   : > { %v7332_v43 = vsel %vm1859_vm2, %v5632_v40, -1e+30  ;;  %1992 = vmax.xlane.f32.xlu0 %v7328_v42  ;;  %v1293_v44 = vpop.f32.mrb[1].mxu1  ;;  %v7338_v46 = vsel %vm1859_vm2, %v1052_v41, -1e+30 }
 0x12d   : > { %2024 = vmax.xlane.f32.xlu1 %v7332_v43  ;;  %v7352_v53 = vsel %vm1859_vm2, %v1293_v44, -1e+30 }
 0x12e   : > { %v5579_v45 = vpop.f32.mrb[2].mxu0 }
 0x12f   : > { %v7342_v47 = vsel %vm1859_vm2, %v5579_v45, -1e+30  ;;  %v1062_v48 = vpop.f32.mrb[3].mxu0  ;;  %v5635_v49 = vpop.f32.mrb[2].mxu1 }
 0x130   : > { %1990 = vmax.xlane.f32.xlu0 %v7338_v46  ;;  %v1303_v50 = vpop.f32.mrb[3].mxu1  ;;  %v7348_v51 = vsel %vm1859_vm2, %v5635_v49, -1e+30  ;;  %v7365_v61 = vsel %vm1859_vm2, %v1062_v48, -1e+30 }
 0x131   : > { %1996 = vmax.xlane.f32.xlu1 %v7342_v47  ;;  %v7358_v57 = vsel %vm1859_vm2, %v1303_v50, -1e+30 }
 0x132   : > { %v5582_v52 = vpop.f32.mrb[4].mxu0 }
 0x133   : > { %v1072_v54 = vpop.f32.mrb[5].mxu0  ;;  %v5638_v55 = vpop.f32.mrb[4].mxu1  ;;  %v7376_v1 = vsel %vm1859_vm2, %v5582_v52, -1e+30 }
 0x134   : > { %2022 = vmax.xlane.f32.xlu0 %v7352_v53  ;;  %v1313_v56 = vpop.f32.mrb[5].mxu1  ;;  %v7372_v63 = vsel %vm1859_vm2, %v1072_v54, -1e+30  ;;  %9895 = vst [vmem:[#allocation7_spill] sm:$0xff] %v7376_v1  ;;  %v7394_v8 = vsel %vm1859_vm2, %v5638_v55, -1e+30 }
 0x135   : > { %2028 = vmax.xlane.f32.xlu1 %v7348_v51  ;;  %9894 = vst [vmem:[#allocation6_spill] sm:$0xff] %v7372_v63  ;;  %v7390_v7 = vsel %vm1859_vm2, %v1313_v56, -1e+30  ;;  %9897 = vst [vmem:[#allocation9_spill] sm:$0xff] %v7394_v8 }
 0x136   : > { %v5585_v58 = vpop.f32.mrb[6].mxu0  ;;  %9896 = vst [vmem:[#allocation8_spill] sm:$0xff] %v7390_v7 }
 0x137   : > { %v1082_v59 = vpop.f32.mrb[7].mxu0  ;;  %v7360_v60 = vpop.f32.mrb[6].mxu1  ;;  %v7412_v14 = vsel %vm1859_vm2, %v5585_v58, -1e+30 }
 0x138   : > { %2026 = vmax.xlane.f32.xlu0 %v7358_v57  ;;  %v7367_v62 = vpop.f32.mrb[7].mxu1  ;;  %v7408_v13 = vsel %vm1859_vm2, %v1082_v59, -1e+30  ;;  %9899 = vst [vmem:[#allocation11_spill] sm:$0xff] %v7412_v14  ;;  %v7682_v20 = vsel %vm1859_vm2, %v7360_v60, -1e+30 }
 0x139   : > { %1994 = vmax.xlane.f32.xlu1 %v7365_v61  ;;  %9898 = vst [vmem:[#allocation10_spill] sm:$0xff] %v7408_v13  ;;  %v7677_v19 = vsel %vm1859_vm2, %v7367_v62, -1e+30  ;;  %9901 = vst [vmem:[#allocation13_spill] sm:$0xff] %v7682_v20 }
 0x13a   : > { %v7378_v2 = vpop.f32.mrb[8].mxu0  ;;  %9900 = vst [vmem:[#allocation12_spill] sm:$0xff] %v7677_v19 }
 0x13b   : > { %v7380_v3 = vpop.f32.mrb[9].mxu0  ;;  %v7382_v4 = vpop.f32.mrb[8].mxu1  ;;  %v7694_v26 = vsel %vm1859_vm2, %v7378_v2, -1e+30 }
 0x13c   : > { %1998 = vmax.xlane.f32.xlu0 %v7372_v63  ;;  %v7385_v5 = vpop.f32.mrb[9].mxu1  ;;  %v7689_v25 = vsel %vm1859_vm2, %v7380_v3, -1e+30  ;;  %9903 = vst [vmem:[#allocation15_spill] sm:$0xff] %v7694_v26  ;;  %v7706_v28 = vsel %vm1859_vm2, %v7382_v4, -1e+30 }
 0x13d   : > { %2000 = vmax.xlane.f32.xlu1 %v7376_v1  ;;  %9902 = vst [vmem:[#allocation14_spill] sm:$0xff] %v7689_v25  ;;  %v7701_v27 = vsel %vm1859_vm2, %v7385_v5, -1e+30  ;;  %9905 = vst [vmem:[#allocation17_spill] sm:$0xff] %v7706_v28 }
 0x13e   : > { %v7396_v9 = vpop.f32.mrb[10].mxu0  ;;  %9904 = vst [vmem:[#allocation16_spill] sm:$0xff] %v7701_v27 }
 0x13f   : > { %v7398_v10 = vpop.f32.mrb[11].mxu0  ;;  %v7400_v11 = vpop.f32.mrb[10].mxu1  ;;  %v7718_v30 = vsel %vm1859_vm2, %v7396_v9, -1e+30 }
 0x140   : > { %2030 = vmax.xlane.f32.xlu0 %v7390_v7  ;;  %v7403_v12 = vpop.f32.mrb[11].mxu1  ;;  %v7713_v29 = vsel %vm1859_vm2, %v7398_v10, -1e+30  ;;  %9907 = vst [vmem:[#allocation19_spill] sm:$0xff] %v7718_v30  ;;  %v7730_v32 = vsel %vm1859_vm2, %v7400_v11, -1e+30 }
 0x141   : > { %2032 = vmax.xlane.f32.xlu1 %v7394_v8  ;;  %9906 = vst [vmem:[#allocation18_spill] sm:$0xff] %v7713_v29  ;;  %v7725_v31 = vsel %vm1859_vm2, %v7403_v12, -1e+30  ;;  %9909 = vst [vmem:[#allocation21_spill] sm:$0xff] %v7730_v32  ;;  %v8288_v7 = vld [vmem:[#allocation3 + $0x188] sm:$0xff]  ;;  %v8290_v8 = vld [vmem:[#allocation3 + $0x180] sm:$0xff] }
 0x142   : > { %v7414_v0 = vpop.f32.mrb[12].mxu0  ;;  %9908 = vst [vmem:[#allocation20_spill] sm:$0xff] %v7725_v31  ;;  %9960 = vst [vmem:[#allocation72_spill] sm:$0xff] %v8290_v8 }
 0x143   : > { %v1112_v16 = vpop.f32.mrb[13].mxu0  ;;  %v5650_v17 = vpop.f32.mrb[12].mxu1  ;;  %v7741_v34 = vsel %vm1859_vm2, %v7414_v0, -1e+30 }
 0x144   : > { %2002 = vmax.xlane.f32.xlu0 %v7408_v13  ;;  %v1353_v18 = vpop.f32.mrb[13].mxu1  ;;  %v7736_v33 = vsel %vm1859_vm2, %v1112_v16, -1e+30  ;;  %9911 = vst [vmem:[#allocation23_spill] sm:$0xff] %v7741_v34  ;;  %v7751_v36 = vsel %vm1859_vm2, %v5650_v17, -1e+30 }
 0x145   : > { %2004 = vmax.xlane.f32.xlu1 %v7412_v14  ;;  %9910 = vst [vmem:[#allocation22_spill] sm:$0xff] %v7736_v33  ;;  %v7747_v35 = vsel %vm1859_vm2, %v1353_v18, -1e+30  ;;  %9913 = vst [vmem:[#allocation25_spill] sm:$0xff] %v7751_v36  ;;  %v8223_v13 = vld [vmem:[#allocation3 + $0x70] sm:$0xff] }
 0x146   : > { %v5597_v21 = vpop.f32.mrb[14].mxu0  ;;  %9912 = vst [vmem:[#allocation24_spill] sm:$0xff] %v7747_v35  ;;  %v8247_v14 = vld [vmem:[#allocation3 + $0xf0] sm:$0xff] }
 0x147   : > { %v1122_v22 = vpop.f32.mrb[15].mxu0  ;;  %v5653_v23 = vpop.f32.mrb[14].mxu1  ;;  %v7761_v39 = vsel %vm1859_vm2, %v5597_v21, -1e+30 }
 0x148   : > { %2034 = vmax.xlane.f32.xlu0 %v7677_v19  ;;  %v1363_v24 = vpop.f32.mrb[15].mxu1  ;;  %v7757_v38 = vsel %vm1859_vm2, %v1122_v22, -1e+30  ;;  %9915 = vst [vmem:[#allocation27_spill] sm:$0xff] %v7761_v39  ;;  %v7771_v41 = vsel %vm1859_vm2, %v5653_v23, -1e+30 }
 0x149   : > { %2036 = vmax.xlane.f32.xlu1 %v7682_v20  ;;  %9914 = vst [vmem:[#allocation26_spill] sm:$0xff] %v7757_v38  ;;  %v7767_v40 = vsel %vm1859_vm2, %v1363_v24, -1e+30  ;;  %9917 = vst [vmem:[#allocation29_spill] sm:$0xff] %v7771_v41 }
 0x14a   : > { %9916 = vst [vmem:[#allocation28_spill] sm:$0xff] %v7767_v40 }
 0x14c   : > { %2006 = vmax.xlane.f32.xlu0 %v7689_v25  ;;  %v8206_v25 = vld [vmem:[#allocation3 + $0xe8] sm:$0xff] }
 0x14d   : > { %2008 = vmax.xlane.f32.xlu1 %v7694_v26 }
 0x150   : > { %2038 = vmax.xlane.f32.xlu0 %v7701_v27 }
 0x151   : > { %2040 = vmax.xlane.f32.xlu1 %v7706_v28 }
 0x154   : > { %2010 = vmax.xlane.f32.xlu0 %v7713_v29 }
 0x155   : > { %2012 = vmax.xlane.f32.xlu1 %v7718_v30 }
 0x158   : > { %2042 = vmax.xlane.f32.xlu0 %v7725_v31 }
 0x159   : > { %2044 = vmax.xlane.f32.xlu1 %v7730_v32  ;;  %v8135_v32 = vld [vmem:[#allocation3 + $0x50] sm:$0xff] }
 0x15c   : > { %2014 = vmax.xlane.f32.xlu0 %v7736_v33 }
 0x15d   : > { %2016 = vmax.xlane.f32.xlu1 %v7741_v34 }
 0x160   : > { %2046 = vmax.xlane.f32.xlu0 %v7747_v35 }
 0x161   : > { %2048 = vmax.xlane.f32.xlu1 %v7751_v36  ;;  %v8120_v36 = vld [vmem:[#allocation3 + $0xc8] sm:$0xff] }
 0x164   : > { %2018 = vmax.xlane.f32.xlu0 %v7757_v38  ;;  %v8111_v38 = vld [vmem:[#allocation3 + $0xc0] sm:$0xff] }
 0x165   : > { %2020 = vmax.xlane.f32.xlu1 %v7761_v39 }
 0x168   : > { %2050 = vmax.xlane.f32.xlu0 %v7767_v40 }
 0x169   : > { %2052 = vmax.xlane.f32.xlu1 %v7771_v41 }
 0x16a   : > { %v5688_v44 = vpop.f32.mrb[16].mxu0 }
 0x16b   : > { %v1534_v45 = vpop.f32.mrb[17].mxu0  ;;  %v5744_v48 = vpop.f32.mrb[16].mxu1  ;;  %v7777_v49 = vsel %vm1859_vm2, %v5688_v44, -1e+30 }
 0x16c   : > { %9918 = vst [vmem:[#allocation30_spill] sm:$0xff] %v7777_v49  ;;  %v7781_v50 = vsel %vm1859_vm2, %v1534_v45, -1e+30  ;;  %v1775_v52 = vpop.f32.mrb[17].mxu1  ;;  %v7791_v55 = vsel %vm1859_vm2, %v5744_v48, -1e+30 }
 0x16d   : > { %9919 = vst [vmem:[#allocation31_spill] sm:$0xff] %v7781_v50  ;;  %2054 = vmax.xlane.f32.xlu0 %v7781_v50  ;;  %2056 = vmax.xlane.f32.xlu1 %v7777_v49  ;;  %v7787_v54 = vsel %vm1859_vm2, %v1775_v52, -1e+30  ;;  %9921 = vst [vmem:[#allocation33_spill] sm:$0xff] %v7791_v55  ;;  %v8046_v50 = vld [vmem:[#allocation3 + $0xa8] sm:$0xff] }
 0x16e   : > { %9920 = vst [vmem:[#allocation32_spill] sm:$0xff] %v7787_v54  ;;  %v5691_v56 = vpop.f32.mrb[18].mxu0 }
 0x16f   : > { %v1544_v58 = vpop.f32.mrb[19].mxu0  ;;  %v5747_v59 = vpop.f32.mrb[18].mxu1  ;;  %v7801_v2 = vsel %vm1859_vm2, %v5691_v56, -1e+30 }
 0x170   : > { %v1785_v60 = vpop.f32.mrb[19].mxu1  ;;  %v7797_v62 = vsel %vm1859_vm2, %v1544_v58, -1e+30  ;;  %9923 = vst [vmem:[#allocation35_spill] sm:$0xff] %v7801_v2  ;;  %v7811_v10 = vsel %vm1859_vm2, %v5747_v59, -1e+30 }
 0x171   : > { %2086 = vmax.xlane.f32.xlu0 %v7787_v54  ;;  %2088 = vmax.xlane.f32.xlu1 %v7791_v55  ;;  %9922 = vst [vmem:[#allocation34_spill] sm:$0xff] %v7797_v62  ;;  %v7807_v9 = vsel %vm1859_vm2, %v1785_v60, -1e+30  ;;  %9925 = vst [vmem:[#allocation37_spill] sm:$0xff] %v7811_v10  ;;  %v8041_v55 = vld [vmem:[#allocation3 + $0xa0] sm:$0xff] }
 0x172   : > { %v5694_v3 = vpop.f32.mrb[20].mxu0  ;;  %9924 = vst [vmem:[#allocation36_spill] sm:$0xff] %v7807_v9 }
 0x173   : > { %v1554_v4 = vpop.f32.mrb[21].mxu0  ;;  %v5750_v5 = vpop.f32.mrb[20].mxu1  ;;  %v7821_v17 = vsel %vm1859_vm2, %v5694_v3, -1e+30 }
 0x174   : > { %v1795_v6 = vpop.f32.mrb[21].mxu1  ;;  %v7817_v16 = vsel %vm1859_vm2, %v1554_v4, -1e+30  ;;  %9927 = vst [vmem:[#allocation39_spill] sm:$0xff] %v7821_v17  ;;  %v7831_v44 = vsel %vm1859_vm2, %v5750_v5, -1e+30 }
 0x175   : > { %2058 = vmax.xlane.f32.xlu0 %v7797_v62  ;;  %2060 = vmax.xlane.f32.xlu1 %v7801_v2  ;;  %9926 = vst [vmem:[#allocation38_spill] sm:$0xff] %v7817_v16  ;;  %v7827_v24 = vsel %vm1859_vm2, %v1795_v6, -1e+30  ;;  %9929 = vst [vmem:[#allocation41_spill] sm:$0xff] %v7831_v44 }
 0x176   : > { %v5697_v11 = vpop.f32.mrb[22].mxu0  ;;  %9928 = vst [vmem:[#allocation40_spill] sm:$0xff] %v7827_v24 }
 0x177   : > { %v1564_v12 = vpop.f32.mrb[23].mxu0  ;;  %v5753_v0 = vpop.f32.mrb[22].mxu1  ;;  %v7841_v59 = vsel %vm1859_vm2, %v5697_v11, -1e+30 }
 0x178   : > { %v1805_v15 = vpop.f32.mrb[23].mxu1  ;;  %v7837_v58 = vsel %vm1859_vm2, %v1564_v12, -1e+30  ;;  %9931 = vst [vmem:[#allocation43_spill] sm:$0xff] %v7841_v59  ;;  %v7851_v12 = vsel %vm1859_vm2, %v5753_v0, -1e+30 }
 0x179   : > { %2090 = vmax.xlane.f32.xlu0 %v7807_v9  ;;  %2092 = vmax.xlane.f32.xlu1 %v7811_v10  ;;  %9930 = vst [vmem:[#allocation42_spill] sm:$0xff] %v7837_v58  ;;  %v7847_v6 = vsel %vm1859_vm2, %v1805_v15, -1e+30  ;;  %9933 = vst [vmem:[#allocation45_spill] sm:$0xff] %v7851_v12  ;;  %v774_v10 = vld [vmem:[%s7939_s26 + $0x68] sm:$0xff] }
 0x17a   : > { %v5700_v18 = vpop.f32.mrb[24].mxu0  ;;  %9932 = vst [vmem:[#allocation44_spill] sm:$0xff] %v7847_v6 }
 0x17b   : > { %v1574_v21 = vpop.f32.mrb[25].mxu0  ;;  %v5756_v22 = vpop.f32.mrb[24].mxu1  ;;  %v7861_v15 = vsel %vm1859_vm2, %v5700_v18, -1e+30 }
 0x17c   : > { %v1815_v23 = vpop.f32.mrb[25].mxu1  ;;  %9935 = vst [vmem:[#allocation47_spill] sm:$0xff] %v7861_v15 }
 0x17d   : > { %2062 = vmax.xlane.f32.xlu0 %v7817_v16  ;;  %2064 = vmax.xlane.f32.xlu1 %v7821_v17  ;;  %v7867_v0 = vsel %vm1859_vm2, %v1815_v23, -1e+30 }
 0x17e   : > { %v5703_v45 = vpop.f32.mrb[26].mxu0  ;;  %9936 = vst [vmem:[#allocation48_spill] sm:$0xff] %v7867_v0 }
 0x17f   : > { %v1584_v48 = vpop.f32.mrb[27].mxu0  ;;  %v5759_v52 = vpop.f32.mrb[26].mxu1 }
 0x180   : > { %v1825_v56 = vpop.f32.mrb[27].mxu1  ;;  %v7877_v18 = vsel %vm1859_vm2, %v1584_v48, -1e+30  ;;  %v7891_v23 = vsel %vm1859_vm2, %v5759_v52, -1e+30 }
 0x181   : > { %2094 = vmax.xlane.f32.xlu0 %v7827_v24  ;;  %2096 = vmax.xlane.f32.xlu1 %v7831_v44  ;;  %9938 = vst [vmem:[#allocation50_spill] sm:$0xff] %v7877_v18  ;;  %9941 = vst [vmem:[#allocation53_spill] sm:$0xff] %v7891_v23 }
 0x182   : > { %v5706_v60 = vpop.f32.mrb[28].mxu0 }
 0x183   : > { %v1594_v3 = vpop.f32.mrb[29].mxu0  ;;  %v5762_v4 = vpop.f32.mrb[28].mxu1  ;;  %v7901_v48 = vsel %vm1859_vm2, %v5706_v60, -1e+30 }
 0x184   : > { %v1835_v5 = vpop.f32.mrb[29].mxu1  ;;  %9943 = vst [vmem:[#allocation55_spill] sm:$0xff] %v7901_v48 }
 0x185   : > { %2066 = vmax.xlane.f32.xlu0 %v7837_v58  ;;  %2068 = vmax.xlane.f32.xlu1 %v7841_v59  ;;  %v7857_v58 = vsel %vm1859_vm2, %v1574_v21, -1e+30  ;;  %v7881_v21 = vsel %vm1859_vm2, %v5703_v45, -1e+30  ;;  %v7897_v45 = vsel %vm1859_vm2, %v1594_v3, -1e+30 }
 0x186   : > { %v5709_v24 = vpop.f32.mrb[30].mxu0  ;;  %9934 = vst [vmem:[#allocation46_spill] sm:$0xff] %v7857_v58  ;;  %9939 = vst [vmem:[#allocation51_spill] sm:$0xff] %v7881_v21  ;;  %v7907_v52 = vsel %vm1859_vm2, %v1835_v5, -1e+30 }
 0x187   : > { %v1604_v44 = vpop.f32.mrb[31].mxu0  ;;  %v5765_v11 = vpop.f32.mrb[30].mxu1  ;;  %9942 = vst [vmem:[#allocation54_spill] sm:$0xff] %v7897_v45  ;;  %9944 = vst [vmem:[#allocation56_spill] sm:$0xff] %v7907_v52  ;;  %v7921_v3 = vsel %vm1859_vm2, %v5709_v24, -1e+30 }
 0x188   : > { %v1845_v16 = vpop.f32.mrb[31].mxu1  ;;  %v7917_v60 = vsel %vm1859_vm2, %v1604_v44, -1e+30  ;;  %9947 = vst [vmem:[#allocation59_spill] sm:$0xff] %v7921_v3  ;;  %v7931_v5 = vsel %vm1859_vm2, %v5765_v11, -1e+30 }
 0x189   : > { %2098 = vmax.xlane.f32.xlu0 %v7847_v6  ;;  %2100 = vmax.xlane.f32.xlu1 %v7851_v12  ;;  %v7871_v6 = vsel %vm1859_vm2, %v5756_v22, -1e+30  ;;  %v7887_v22 = vsel %vm1859_vm2, %v1825_v56, -1e+30  ;;  %v7911_v56 = vsel %vm1859_vm2, %v5762_v4, -1e+30 }
 0x18a   : > { %9937 = vst [vmem:[#allocation49_spill] sm:$0xff] %v7871_v6  ;;  %9940 = vst [vmem:[#allocation52_spill] sm:$0xff] %v7887_v22  ;;  %v7927_v4 = vsel %vm1859_vm2, %v1845_v16, -1e+30  ;;  %v762_v16 = vld [vmem:[%s7939_s26 + $0x8] sm:$0xff]  ;;  %v777_v44 = vld [vmem:[%s7939_s26 + $0x80] sm:$0xff] }
 0x18b   : > { %9945 = vst [vmem:[#allocation57_spill] sm:$0xff] %v7911_v56  ;;  %9946 = vst [vmem:[#allocation58_spill] sm:$0xff] %v7917_v60  ;;  %v6182_v24 = vpack.c.bf16 %v762_v16, %v761_v37  ;;  %v778_v11 = vld [vmem:[%s7939_s26 + $0x88] sm:$0xff]  ;;  %v765_v37 = vld [vmem:[%s7939_s26 + $0x20] sm:$0xff] }
 0x18c   : > { %9948 = vst [vmem:[#allocation60_spill] sm:$0xff] %v7927_v4  ;;  %9949 = vst [vmem:[#allocation61_spill] sm:$0xff] %v7931_v5  ;;  %v766_v16 = vld [vmem:[%s7939_s26 + $0x28] sm:$0xff]  ;;  %v772_v12 = vld [vmem:[%s7939_s26 + $0x58] sm:$0xff] }
 0x18d   : > { %2070 = vmax.xlane.f32.xlu0 %v7857_v58  ;;  %2072 = vmax.xlane.f32.xlu1 %v7861_v15 }
 0x18e   : > { %6183 = vmatprep.subr.bf16.mxu0 %v6182_v24 }
 0x18f   : > { %6185 = vmatpush3.bf16.msra.mxu0 %v6182_v24  ;;  %v7953_v24 = vld [vmem:[#allocation3 + $0x88] sm:$0xff] }
 0x191   : > { %2102 = vmax.xlane.f32.xlu0 %v7867_v0  ;;  %2104 = vmax.xlane.f32.xlu1 %v7871_v6  ;;  %v7989_v0 = vld [vmem:[#allocation3 + $0x98] sm:$0xff] }
 0x195   : > { %2074 = vmax.xlane.f32.xlu0 %v7877_v18  ;;  %2076 = vmax.xlane.f32.xlu1 %v7881_v21 }
 0x199   : > { %2106 = vmax.xlane.f32.xlu0 %v7887_v22  ;;  %2108 = vmax.xlane.f32.xlu1 %v7891_v23  ;;  %v782_v22 = vld [vmem:[%s7939_s26 + $0xa8] sm:$0xff] }
 0x19d   : > { %2078 = vmax.xlane.f32.xlu0 %v7897_v45  ;;  %2080 = vmax.xlane.f32.xlu1 %v7901_v48  ;;  %v7949_v48 = vld [vmem:[#allocation3 + $0x8] sm:$0xff] }
 0x1a1   : > { %2110 = vmax.xlane.f32.xlu0 %v7907_v52  ;;  %2112 = vmax.xlane.f32.xlu1 %v7911_v56  ;;  %v779_v52 = vld [vmem:[%s7939_s26 + $0x90] sm:$0xff]  ;;  %v780_v56 = vld [vmem:[%s7939_s26 + $0x98] sm:$0xff] }
 0x1a2   : > { %v6218_v45 = vpack.c.bf16 %v780_v56, %v779_v52 }
 0x1a5   : > { %2082 = vmax.xlane.f32.xlu0 %v7917_v60  ;;  %2084 = vmax.xlane.f32.xlu1 %v7921_v3  ;;  %v764_v60 = vld [vmem:[%s7939_s26 + $0x18] sm:$0xff] }
 0x1a9   : > { %2114 = vmax.xlane.f32.xlu0 %v7927_v4  ;;  %2116 = vmax.xlane.f32.xlu1 %v7931_v5  ;;  %v6214_v4 = vpack.c.bf16 %v778_v11, %v777_v44  ;;  %v763_v5 = vld [vmem:[%s7939_s26 + $0x10] sm:$0xff]  ;;  %v6190_v44 = vpack.c.bf16 %v766_v16, %v765_v37  ;;  %v781_v11 = vld [vmem:[%s7939_s26 + $0xa0] sm:$0xff]  ;;  %v768_v37 = vld [vmem:[%s7939_s26 + $0x38] sm:$0xff] }
 0x1aa   : > { %v6186_v3 = vpack.c.bf16 %v764_v60, %v763_v5  ;;  %v6222_v60 = vpack.c.bf16 %v782_v22, %v781_v11  ;;  %v7963_v5 = vld [vmem:[#allocation3] sm:$0xff]  ;;  %v7970_v22 = vld [vmem:[#allocation3 + $0x18] sm:$0xff]  ;;  %v783_v11 = vld [vmem:[%s7939_s26 + $0xb0] sm:$0xff] }
 0x1ab   : > { %6215 = vmatprep.subr.bf16.mxu1 %v6214_v4 }
 0x1ac   : > { %6217 = vmatpush3.bf16.msra.mxu1 %v6214_v4  ;;  %6187 = vmatprep.subr.bf16.mxu0 %v6186_v3 }
 0x1ad   : > { %6189 = vmatpush3.bf16.msra.mxu0 %v6186_v3  ;;  %6219 = vmatprep.subr.bf16.mxu1 %v6218_v45 }
 0x1ae   : > { %6191 = vmatprep.subr.bf16.mxu0 %v6190_v44 }
 0x1b0   : > { %6221 = vmatpush3.bf16.msra.mxu1 %v6218_v45  ;;  %v767_v45 = vld [vmem:[%s7939_s26 + $0x30] sm:$0xff] }
 0x1b1   : > { %6193 = vmatpush3.bf16.msra.mxu0 %v6190_v44  ;;  %6223 = vmatprep.subr.bf16.mxu1 %v6222_v60  ;;  %v6194_v16 = vpack.c.bf16 %v768_v37, %v767_v45  ;;  %v769_v45 = vld [vmem:[%s7939_s26 + $0x40] sm:$0xff]  ;;  %v770_v37 = vld [vmem:[%s7939_s26 + $0x48] sm:$0xff] }
 0x1b3   : > { %6195 = vmatprep.subr.bf16.mxu0 %v6194_v16 }
 0x1b4   : > { %6225 = vmatpush3.bf16.msra.mxu1 %v6222_v60  ;;  %v7983_v60 = vld [vmem:[#allocation3 + $0x80] sm:$0xff] }
 0x1b5   : > { %6197 = vmatpush3.bf16.msra.mxu0 %v6194_v16 }
 0x1b9   : > { %v1993_v4 = vpop.xlane.xlu0 %1992 }
 0x1ba   : > { %v2025_v52 = vpop.xlane.xlu1 %2024  ;;  %v7958_v56 = vmax.f32 %v7949_v48, %v1993_v4  ;;  %v784_v4 = vld [vmem:[%s7939_s26 + $0xb8] sm:$0xff] }
 0x1bb   : > { %v7961_v3 = vmax.f32 %v7953_v24, %v2025_v52  ;;  %v6226_v52 = vpack.c.bf16 %v784_v4, %v783_v11  ;;  %v6198_v11 = vpack.c.bf16 %v770_v37, %v769_v45  ;;  %v785_v4 = vld [vmem:[%s7939_s26 + $0xc0] sm:$0xff]  ;;  %v8002_v45 = vld [vmem:[#allocation3 + $0x90] sm:$0xff] }
 0x1bc   : > { %4300 = vst.msk [vmem:[#allocation3 + $0x8] sm:$0xff] %vm504_vm3, %v7958_v56  ;;  %2317 = vperm.xlu1 %6337, %v7958_v56   ;;  %v771_v37 = vld [vmem:[%s7939_s26 + $0x50] sm:$0xff] }
 0x1bd   : > { %4316 = vst.msk [vmem:[#allocation3 + $0x88] sm:$0xff] %vm504_vm3, %v7961_v3  ;;  %v1991_v44 = vpop.xlane.xlu0 %1990  ;;  %6227 = vmatprep.subr.bf16.mxu1 %v6226_v52  ;;  %6199 = vmatprep.subr.bf16.mxu0 %v6198_v11 }
 0x1be   : > { %v7977_v23 = vmax.f32 %v7963_v5, %v1991_v44  ;;  %v1997_v18 = vpop.xlane.xlu1 %1996  ;;  %v786_v44 = vld [vmem:[%s7939_s26 + $0xc8] sm:$0xff]  ;;  %6229 = vmatpush3.bf16.msra.mxu1 %v6226_v52  ;;  %6201 = vmatpush3.bf16.msra.mxu0 %v6198_v11  ;;  %v8009_v52 = vld [vmem:[#allocation3 + $0x10] sm:$0xff] }
 0x1bf   : > { %v7980_v21 = vmax.f32 %v7970_v22, %v1997_v18  ;;  %2397 = vperm.xlu0 %6338, %v7961_v3   ;;  %v6230_v16 = vpack.c.bf16 %v786_v44, %v785_v4  ;;  %v6202_v4 = vpack.c.bf16 %v772_v12, %v771_v37  ;;  %v788_v44 = vld [vmem:[%s7939_s26 + $0xd8] sm:$0xff]  ;;  %v8022_v12 = vld [vmem:[#allocation3 + $0x20] sm:$0xff] }
 0x1c0   : > { %4299 = vst.msk [vmem:[#allocation3] sm:$0xff] %vm504_vm3, %v7977_v23  ;;  %v773_v37 = vld [vmem:[%s7939_s26 + $0x60] sm:$0xff] }
 0x1c1   : > { %4302 = vst.msk [vmem:[#allocation3 + $0x18] sm:$0xff] %vm504_vm3, %v7980_v21  ;;  %v2023_v18 = vpop.xlane.xlu0 %2022  ;;  %6231 = vmatprep.subr.bf16.mxu1 %v6230_v16  ;;  %6203 = vmatprep.subr.bf16.mxu0 %v6202_v4  ;;  %v2185_v33 = vsub.f32 %v7970_v22, %v7980_v21 }
 0x1c2   : > { %v7996_v6 = vmax.f32 %v7983_v60, %v2023_v18  ;;  %v2029_v58 = vpop.xlane.xlu1 %2028  ;;  %6233 = vmatpush3.bf16.msra.mxu1 %v6230_v16  ;;  %6205 = vmatpush3.bf16.msra.mxu0 %v6202_v4  ;;  %v8029_v16 = vld [vmem:[#allocation3 + $0x28] sm:$0xff] }
 0x1c3   : > { %v7999_v15 = vmax.f32 %v7989_v0, %v2029_v58  ;;  %2312 = vperm.xlu0 %6338, %v7977_v23   ;;  %v787_v58 = vld [vmem:[%s7939_s26 + $0xd0] sm:$0xff] }
 0x1c4   : > { %4315 = vst.msk [vmem:[#allocation3 + $0x80] sm:$0xff] %vm504_vm3, %v7996_v6  ;;  %2392 = vperm.xlu1 %6337, %v7996_v6   ;;  %v6234_v11 = vpack.c.bf16 %v788_v44, %v787_v58  ;;  %v6206_v58 = vpack.c.bf16 %v774_v10, %v773_v37  ;;  %v790_v44 = vld [vmem:[%s7939_s26 + $0xe8] sm:$0xff]  ;;  %v775_v10 = vld [vmem:[%s7939_s26 + $0x70] sm:$0xff]  ;;  %v776_v37 = vld [vmem:[%s7939_s26 + $0x78] sm:$0xff] }
 0x1c5   : > { %4318 = vst.msk [vmem:[#allocation3 + $0x98] sm:$0xff] %vm504_vm3, %v7999_v15  ;;  %v2027_v18 = vpop.xlane.xlu0 %2026  ;;  %v2201_v22 = vsub.f32 %v7989_v0, %v7999_v15 }
 0x1c6   : > { %v8016_v59 = vmax.f32 %v8002_v45, %v2027_v18  ;;  %v1995_v17 = vpop.xlane.xlu1 %1994  ;;  %6235 = vmatprep.subr.bf16.mxu1 %v6234_v11  ;;  %6207 = vmatprep.subr.bf16.mxu0 %v6206_v58 }
 0x1c7   : > { %v8019_v9 = vmax.f32 %v8009_v52, %v1995_v17  ;;  %2407 = vperm.xlu0 %6338, %v7999_v15   ;;  %v789_v17 = vld [vmem:[%s7939_s26 + $0xe0] sm:$0xff]  ;;  %6237 = vmatpush3.bf16.msra.mxu1 %v6234_v11  ;;  %v6210_v11 = vpack.c.bf16 %v776_v37, %v775_v10  ;;  %v8062_v10 = vld [vmem:[#allocation3 + $0x30] sm:$0xff]  ;;  %v8065_v37 = vld [vmem:[#allocation3 + $0x38] sm:$0xff] }
 0x1c8   : > { %4317 = vst.msk [vmem:[#allocation3 + $0x90] sm:$0xff] %vm504_vm3, %v8016_v59  ;;  %2327 = vperm.xlu1 %6337, %v7980_v21   ;;  %v6238_v4 = vpack.c.bf16 %v790_v44, %v789_v17  ;;  %6209 = vmatpush3.bf16.msra.mxu0 %v6206_v58  ;;  %v791_v17 = vld [vmem:[%s7939_s26 + $0xf0] sm:$0xff]  ;;  %v792_v44 = vld [vmem:[%s7939_s26 + $0xf8] sm:$0xff]  ;;  %v2199_v58 = vsub.f32 %v7953_v24, %v7961_v3 }
 0x1c9   : > { %4301 = vst.msk [vmem:[#allocation3 + $0x10] sm:$0xff] %vm504_vm3, %v8019_v9  ;;  %v1999_v18 = vpop.xlane.xlu0 %1998  ;;  %6211 = vmatprep.subr.bf16.mxu0 %v6210_v11  ;;  %v8144_v21 = vld [vmem:[#allocation3 + $0x58] sm:$0xff] }
 0x1ca   : > { %v2001_v62 = vpop.xlane.xlu1 %2000  ;;  %v8036_v2 = vmax.f32 %v8022_v12, %v1999_v18  ;;  %6239 = vmatprep.subr.bf16.mxu1 %v6238_v4  ;;  %v6242_v18 = vpack.c.bf16 %v792_v44, %v791_v17  ;;  %6339 = vpow2.f32 %v2199_v58  ;;  %v8080_v17 = vld [vmem:[#allocation3 + $0xb0] sm:$0xff]  ;;  %v8083_v44 = vld [vmem:[#allocation3 + $0xb8] sm:$0xff]  ;;  %v8095_v58 = vld [vmem:[#allocation3 + $0x40] sm:$0xff] }
 0x1cb   : > { %v8039_v54 = vmax.f32 %v8029_v16, %v2001_v62  ;;  %6241 = vmatpush3.bf16.msra.mxu1 %v6238_v4 }
 0x1cc   : > { %2322 = vperm.xlu1 %6337, %v8019_v9   ;;  %4303 = vst.msk [vmem:[#allocation3 + $0x20] sm:$0xff] %vm504_vm3, %v8036_v2  ;;  %6213 = vmatpush3.bf16.msra.mxu0 %v6210_v11  ;;  %v2186_v63 = vsub.f32 %v8022_v12, %v8036_v2 }
 0x1cd   : > { %4304 = vst.msk [vmem:[#allocation3 + $0x28] sm:$0xff] %vm504_vm3, %v8039_v54  ;;  %v2031_v62 = vpop.xlane.xlu0 %2030  ;;  %6243 = vmatprep.subr.bf16.mxu1 %v6242_v18 }
 0x1ce   : > { %v2033_v49 = vpop.xlane.xlu1 %2032  ;;  %v8057_v40 = vmax.f32 %v8041_v55, %v2031_v62 }
 0x1cf   : > { %v8060_v41 = vmax.f32 %v8046_v50, %v2033_v49  ;;  %6245 = vmatpush3.bf16.msra.mxu1 %v6242_v18  ;;  %v2182_v49 = vsub.f32 %v7963_v5, %v7977_v23 }
 0x1d0   : > { %2402 = vperm.xlu1 %6337, %v8016_v59   ;;  %4319 = vst.msk [vmem:[#allocation3 + $0xa0] sm:$0xff] %vm504_vm3, %v8057_v40 }
 0x1d1   : > { %4320 = vst.msk [vmem:[#allocation3 + $0xa8] sm:$0xff] %vm504_vm3, %v8060_v41  ;;  %2417 = vperm.xlu0 %6338, %v8060_v41   ;;  %v2003_v24 = vpop.xlane.xlu0 %2002  ;;  %6341 = vpow2.f32 %v2182_v49 }
 0x1d2   : > { %v2005_v3 = vpop.xlane.xlu1 %2004  ;;  %v8075_v4 = vmax.f32 %v8062_v10, %v2003_v24  ;;  %v8100_v24 = vld [vmem:[#allocation3 + $0x48] sm:$0xff] }
 0x1d3   : > { %v8078_v11 = vmax.f32 %v8065_v37, %v2005_v3 }
 0x1d4   : > { %2337 = vperm.xlu1 %6337, %v8039_v54   ;;  %4305 = vst.msk [vmem:[#allocation3 + $0x30] sm:$0xff] %vm504_vm3, %v8075_v4  ;;  %v8113_v39 = vpop.eup %6339 }
 0x1d5   : > { %4306 = vst.msk [vmem:[#allocation3 + $0x38] sm:$0xff] %vm504_vm3, %v8078_v11  ;;  %v2035_v23 = vpop.xlane.xlu0 %2034  ;;  %9950 = vst [vmem:[#allocation62_spill] sm:$0xff] %v8113_v39 }
 0x1d6   : > { %v2037_v5 = vpop.xlane.xlu1 %2036  ;;  %v8090_v62 = vmax.f32 %v8080_v17, %v2035_v23 }
 0x1d7   : > { %v8093_v18 = vmax.f32 %v8083_v44, %v2037_v5 }
 0x1d8   : > { %2332 = vperm.xlu1 %6337, %v8036_v2   ;;  %4321 = vst.msk [vmem:[#allocation3 + $0xb0] sm:$0xff] %vm504_vm3, %v8090_v62 }
 0x1d9   : > { %4322 = vst.msk [vmem:[#allocation3 + $0xb8] sm:$0xff] %vm504_vm3, %v8093_v18  ;;  %2427 = vperm.xlu0 %6338, %v8093_v18   ;;  %v2007_v49 = vpop.xlane.xlu0 %2006 }
 0x1da   : > { %v2009_v3 = vpop.xlane.xlu1 %2008  ;;  %v8106_v23 = vmax.f32 %v8095_v58, %v2007_v49  ;;  %v2183_v49 = vsub.f32 %v7949_v48, %v7958_v56  ;;  %v2198_v56 = vsub.f32 %v7983_v60, %v7996_v6  ;;  %v8184_v6 = vld [vmem:[#allocation3 + $0x68] sm:$0xff] }
 0x1db   : > { %v8109_v5 = vmax.f32 %v8100_v24, %v2009_v3  ;;  %v8137_v29 = vpop.eup %6341 }
 0x1dc   : > { %2412 = vperm.xlu1 %6337, %v8057_v40   ;;  %4307 = vst.msk [vmem:[#allocation3 + $0x40] sm:$0xff] %vm504_vm3, %v8106_v23  ;;  %9951 = vst [vmem:[#allocation63_spill] sm:$0xff] %v8137_v29  ;;  %6343 = vpow2.f32 %v2183_v49  ;;  %v8159_v49 = vld [vmem:[#allocation3 + $0xd0] sm:$0xff] }
 0x1dd   : > { %4308 = vst.msk [vmem:[#allocation3 + $0x48] sm:$0xff] %vm504_vm3, %v8109_v5  ;;  %3874 = vperm.xlu0 %6338, %v8113_v39   ;;  %v2039_v3 = vpop.xlane.xlu0 %2038  ;;  %6345 = vpow2.f32 %v2185_v33  ;;  %v8166_v33 = vld [vmem:[#allocation3 + $0xd8] sm:$0xff] }
 0x1de   : > { %v2041_v34 = vpop.xlane.xlu1 %2040  ;;  %v8130_v35 = vmax.f32 %v8111_v38, %v2039_v3  ;;  %6347 = vpow2.f32 %v2198_v56  ;;  %v8197_v56 = vld [vmem:[#allocation3 + $0xe0] sm:$0xff] }
 0x1df   : > { %v8133_v31 = vmax.f32 %v8120_v36, %v2041_v34  ;;  %6349 = vpow2.f32 %v2201_v22 }
 0x1e0   : > { %2347 = vperm.xlu1 %6337, %v8078_v11   ;;  %4323 = vst.msk [vmem:[#allocation3 + $0xc0] sm:$0xff] %vm504_vm3, %v8130_v35 }
 0x1e1   : > { %4324 = vst.msk [vmem:[#allocation3 + $0xc8] sm:$0xff] %vm504_vm3, %v8133_v31  ;;  %3789 = vperm.xlu0 %6338, %v8137_v29   ;;  %v2011_v34 = vpop.xlane.xlu0 %2010 }
 0x1e2   : > { %v2013_v3 = vpop.xlane.xlu1 %2012  ;;  %v8154_v48 = vmax.f32 %v8135_v32, %v2011_v34 }
 0x1e3   : > { %v8157_v39 = vmax.f32 %v8144_v21, %v2013_v3  ;;  %v8177_v3 = vld [vmem:[#allocation3 + $0x60] sm:$0xff] }
 0x1e4   : > { %2342 = vperm.xlu1 %6337, %v8075_v4   ;;  %4309 = vst.msk [vmem:[#allocation3 + $0x50] sm:$0xff] %vm504_vm3, %v8154_v48 }
 0x1e5   : > { %4310 = vst.msk [vmem:[#allocation3 + $0x58] sm:$0xff] %vm504_vm3, %v8157_v39  ;;  %2357 = vperm.xlu0 %6338, %v8109_v5   ;;  %v2043_v15 = vpop.xlane.xlu0 %2042 }
 0x1e6   : > { %v2045_v0 = vpop.xlane.xlu1 %2044  ;;  %v8172_v60 = vmax.f32 %v8159_v49, %v2043_v15  ;;  %v8192_v29 = vpop.eup %6343 }
 0x1e7   : > { %v8175_v34 = vmax.f32 %v8166_v33, %v2045_v0  ;;  %9952 = vst [vmem:[#allocation64_spill] sm:$0xff] %v8192_v29  ;;  %v8199_v27 = vpop.eup %6345 }
 0x1e8   : > { %2422 = vperm.xlu1 %6337, %v8090_v62   ;;  %4325 = vst.msk [vmem:[#allocation3 + $0xd0] sm:$0xff] %vm504_vm3, %v8172_v60  ;;  %9953 = vst [vmem:[#allocation65_spill] sm:$0xff] %v8199_v27  ;;  %v8218_v19 = vpop.eup %6347 }
 0x1e9   : > { %4326 = vst.msk [vmem:[#allocation3 + $0xd8] sm:$0xff] %vm504_vm3, %v8175_v34  ;;  %2437 = vperm.xlu0 %6338, %v8133_v31   ;;  %v2015_v22 = vpop.xlane.xlu0 %2014  ;;  %9954 = vst [vmem:[#allocation66_spill] sm:$0xff] %v8218_v19 }
 0x1ea   : > { %v2017_v15 = vpop.xlane.xlu1 %2016  ;;  %v8190_v0 = vmax.f32 %v8177_v3, %v2015_v22  ;;  %v2184_v22 = vsub.f32 %v8009_v52, %v8019_v9  ;;  %v8225_v9 = vpop.eup %6349 }
 0x1eb   : > { %v8195_v30 = vmax.f32 %v8184_v6, %v2017_v15  ;;  %9955 = vst [vmem:[#allocation67_spill] sm:$0xff] %v8225_v9 }
 0x1ec   : > { %3794 = vperm.xlu1 %6337, %v8192_v29   ;;  %4311 = vst.msk [vmem:[#allocation3 + $0x60] sm:$0xff] %vm504_vm3, %v8190_v0  ;;  %v2187_v29 = vsub.f32 %v8029_v16, %v8039_v54  ;;  %v8232_v54 = vld [vmem:[#allocation3 + $0x78] sm:$0xff]  ;;  %v2200_v16 = vsub.f32 %v8002_v45, %v8016_v59  ;;  %6351 = vpow2.f32 %v2184_v22 }
 0x1ed   : > { %4312 = vst.msk [vmem:[#allocation3 + $0x68] sm:$0xff] %vm504_vm3, %v8195_v30  ;;  %3804 = vperm.xlu0 %6338, %v8199_v27   ;;  %v2047_v15 = vpop.xlane.xlu0 %2046 }
 0x1ee   : > { %v2049_v26 = vpop.xlane.xlu1 %2048  ;;  %v8216_v28 = vmax.f32 %v8197_v56, %v2047_v15  ;;  %6353 = vpow2.f32 %v2187_v29  ;;  %v2203_v15 = vsub.f32 %v8046_v50, %v8060_v41  ;;  %v8254_v29 = vld [vmem:[#allocation3 + $0xf8] sm:$0xff] }
 0x1ef   : > { %v8221_v20 = vmax.f32 %v8206_v25, %v2049_v26  ;;  %6355 = vpow2.f32 %v2200_v16  ;;  %v8270_v16 = vld [vmem:[#allocation3 + $0x108] sm:$0xff] }
 0x1f0   : > { %3869 = vperm.xlu1 %6337, %v8218_v19   ;;  %4327 = vst.msk [vmem:[#allocation3 + $0xe0] sm:$0xff] %vm504_vm3, %v8216_v28  ;;  %6357 = vpow2.f32 %v2203_v15  ;;  %9956 = vst [vmem:[#allocation68_spill] sm:$0xff] %v8270_v16 }
 0x1f1   : > { %4328 = vst.msk [vmem:[#allocation3 + $0xe8] sm:$0xff] %vm504_vm3, %v8221_v20  ;;  %3884 = vperm.xlu0 %6338, %v8225_v9   ;;  %v2019_v26 = vpop.xlane.xlu0 %2018  ;;  %6359 = vpow2.f32 %v2186_v63 }
 0x1f2   : > { %v2021_v52 = vpop.xlane.xlu1 %2020  ;;  %v8242_v27 = vmax.f32 %v8223_v13, %v2019_v26  ;;  %v8272_v26 = vld [vmem:[#allocation3 + $0x100] sm:$0xff] }
 0x1f3   : > { %v8245_v19 = vmax.f32 %v8232_v54, %v2021_v52  ;;  %9957 = vst [vmem:[#allocation69_spill] sm:$0xff] %v8272_v26 }
 0x1f4   : > { %2352 = vperm.xlu1 %6337, %v8106_v23   ;;  %4313 = vst.msk [vmem:[#allocation3 + $0x70] sm:$0xff] %vm504_vm3, %v8242_v27 }
 0x1f5   : > { %4314 = vst.msk [vmem:[#allocation3 + $0x78] sm:$0xff] %vm504_vm3, %v8245_v19  ;;  %2367 = vperm.xlu0 %6338, %v8157_v39   ;;  %v2051_v41 = vpop.xlane.xlu0 %2050 }
 0x1f6   : > { %v2053_v50 = vpop.xlane.xlu1 %2052  ;;  %v8260_v45 = vmax.f32 %v8247_v14, %v2051_v41 }
 0x1f7   : > { %v8263_v22 = vmax.f32 %v8254_v29, %v2053_v50  ;;  %v8277_v50 = vpop.eup %6351 }
 0x1f8   : > { %2432 = vperm.xlu1 %6337, %v8130_v35   ;;  %4329 = vst.msk [vmem:[#allocation3 + $0xf0] sm:$0xff] %vm504_vm3, %v8260_v45  ;;  %9958 = vst [vmem:[#allocation70_spill] sm:$0xff] %v8277_v50  ;;  %v8285_v9 = vpop.eup %6353 }
 0x1f9   : > { %4330 = vst.msk [vmem:[#allocation3 + $0xf8] sm:$0xff] %vm504_vm3, %v8263_v22  ;;  %2447 = vperm.xlu0 %6338, %v8175_v34   ;;  %9959 = vst [vmem:[#allocation71_spill] sm:$0xff] %v8285_v9 }
 0x1fa   : > { %v2057_v15 = vpop.xlane.xlu1 %2056  ;;  %v2055_v41 = vpop.xlane.xlu0 %2054 }
 0x1fb   : > { %v8280_v59 = vmax.f32 %v8270_v16, %v2057_v15  ;;  %v8283_v52 = vmax.f32 %v8272_v26, %v2055_v41  ;;  %v2189_v15 = vsub.f32 %v8065_v37, %v8078_v11  ;;  %v8303_v26 = vpop.eup %6355  ;;  %v8316_v16 = vld [vmem:[#allocation3 + $0x110] sm:$0xff]  ;;  %v2202_v37 = vsub.f32 %v8041_v55, %v8057_v40  ;;  %v8336_v55 = vld [vmem:[#allocation3 + $0x198] sm:$0xff] }
 0x1fc   : > { %3799 = vperm.xlu1 %6337, %v8277_v50   ;;  %9961 = vst [vmem:[#allocation73_spill] sm:$0xff] %v8303_v26  ;;  %v8311_v1 = vpop.eup %6357  ;;  %9964 = vst [vmem:[#allocation76_spill] sm:$0xff] %v8316_v16  ;;  %v8338_v11 = vld [vmem:[#allocation3 + $0x190] sm:$0xff] }
 0x1fd   : > { %4332 = vst.msk [vmem:[#allocation3 + $0x108] sm:$0xff] %vm504_vm3, %v8280_v59  ;;  %3814 = vperm.xlu0 %6338, %v8285_v9   ;;  %4331 = vst.msk [vmem:[#allocation3 + $0x100] sm:$0xff] %vm504_vm3, %v8283_v52  ;;  %v8314_v9 = vld [vmem:[#allocation3 + $0x118] sm:$0xff]  ;;  %6361 = vpow2.f32 %v2189_v15  ;;  %v8356_v15 = vld [vmem:[#allocation3 + $0x120] sm:$0xff] }
 0x1fe   : > { %v2089_v41 = vpop.xlane.xlu1 %2088  ;;  %v2087_v50 = vpop.xlane.xlu0 %2086  ;;  %9962 = vst [vmem:[#allocation74_spill] sm:$0xff] %v8311_v1  ;;  %9963 = vst [vmem:[#allocation75_spill] sm:$0xff] %v8314_v9  ;;  %6363 = vpow2.f32 %v2202_v37  ;;  %v8354_v37 = vld [vmem:[#allocation3 + $0x128] sm:$0xff] }
 0x1ff   : > { %v8306_v2 = vmax.f32 %v8288_v7, %v2089_v41  ;;  %v8309_v12 = vmax.f32 %v8290_v8, %v2087_v50  ;;  %v2205_v50 = vsub.f32 %v8083_v44, %v8093_v18  ;;  %9965 = vst [vmem:[#allocation77_spill] sm:$0xff] %v8336_v55  ;;  %9966 = vst [vmem:[#allocation78_spill] sm:$0xff] %v8338_v11 }
 0x200   : > { %3879 = vperm.xlu1 %6337, %v8303_v26   ;;  %9968 = vst [vmem:[#allocation80_spill] sm:$0xff] %v8354_v37  ;;  %9969 = vst [vmem:[#allocation81_spill] sm:$0xff] %v8356_v15  ;;  %v2188_v8 = vsub.f32 %v8062_v10, %v8075_v4 }
 0x201   : > { %4348 = vst.msk [vmem:[#allocation3 + $0x188] sm:$0xff] %vm504_vm3, %v8306_v2  ;;  %3894 = vperm.xlu0 %6338, %v8311_v1   ;;  %4347 = vst.msk [vmem:[#allocation3 + $0x180] sm:$0xff] %vm504_vm3, %v8309_v12  ;;  %6365 = vpow2.f32 %v2205_v50  ;;  %v8376_v1 = vld [vmem:[#allocation3 + $0x1a8] sm:$0xff] }
 0x202   : > { %v2061_v41 = vpop.xlane.xlu1 %2060  ;;  %v2059_v63 = vpop.xlane.xlu0 %2058  ;;  %6367 = vpow2.f32 %v2188_v8 }
 0x203   : > { %v8330_v26 = vmax.f32 %v8314_v9, %v2061_v41  ;;  %v8333_v40 = vmax.f32 %v8316_v16, %v2059_v63 }
 0x204   : > { %2362 = vperm.xlu1 %6337, %v8154_v48  }
 0x205   : > { %4334 = vst.msk [vmem:[#allocation3 + $0x118] sm:$0xff] %vm504_vm3, %v8330_v26  ;;  %2377 = vperm.xlu0 %6338, %v8195_v30   ;;  %4333 = vst.msk [vmem:[#allocation3 + $0x110] sm:$0xff] %vm504_vm3, %v8333_v40 }
 0x206   : > { %v2093_v44 = vpop.xlane.xlu1 %2092  ;;  %v2091_v18 = vpop.xlane.xlu0 %2090 }
 0x207   : > { %v8348_v41 = vmax.f32 %v8336_v55, %v2093_v44  ;;  %v8351_v63 = vmax.f32 %v8338_v11, %v2091_v18  ;;  %v8365_v18 = vpop.eup %6359  ;;  %v8378_v55 = vld [vmem:[#allocation3 + $0x1a0] sm:$0xff] }
 0x208   : > { %2442 = vperm.xlu1 %6337, %v8172_v60   ;;  %9970 = vst [vmem:[#allocation82_spill] sm:$0xff] %v8365_v18  ;;  %v8373_v9 = vpop.eup %6361 }
 0x209   : > { %9967 = vst [vmem:[#allocation79_spill] sm:$0xff] %v8351_v63  ;;  %4350 = vst.msk [vmem:[#allocation3 + $0x198] sm:$0xff] %vm504_vm3, %v8348_v41  ;;  %2457 = vperm.xlu0 %6338, %v8221_v20  }
 0x20a   : > { %4349 = vst.msk [vmem:[#allocation3 + $0x190] sm:$0xff] %vm504_vm3, %v8351_v63  ;;  %v2065_v50 = vpop.xlane.xlu1 %2064  ;;  %v2063_v44 = vpop.xlane.xlu0 %2062  ;;  %9971 = vst [vmem:[#allocation83_spill] sm:$0xff] %v8373_v9 }
 0x20b   : > { %v8368_v11 = vmax.f32 %v8354_v37, %v2065_v50  ;;  %v8371_v16 = vmax.f32 %v8356_v15, %v2063_v44  ;;  %v2191_v50 = vsub.f32 %v8100_v24, %v8109_v5  ;;  %v8391_v15 = vpop.eup %6363  ;;  %v8404_v37 = vld [vmem:[#allocation3 + $0x130] sm:$0xff]  ;;  %v2204_v24 = vsub.f32 %v8080_v17, %v8090_v62  ;;  %v8424_v62 = vld [vmem:[#allocation3 + $0x1b8] sm:$0xff] }
 0x20c   : > { %3809 = vperm.xlu1 %6337, %v8365_v18   ;;  %9972 = vst [vmem:[#allocation84_spill] sm:$0xff] %v8391_v15  ;;  %v8399_v63 = vpop.eup %6365  ;;  %9974 = vst [vmem:[#allocation86_spill] sm:$0xff] %v8404_v37  ;;  %v8426_v5 = vld [vmem:[#allocation3 + $0x1b0] sm:$0xff] }
 0x20d   : > { %4336 = vst.msk [vmem:[#allocation3 + $0x128] sm:$0xff] %vm504_vm3, %v8368_v11  ;;  %3824 = vperm.xlu0 %6338, %v8373_v9   ;;  %4335 = vst.msk [vmem:[#allocation3 + $0x120] sm:$0xff] %vm504_vm3, %v8371_v16  ;;  %v8402_v9 = vld [vmem:[#allocation3 + $0x138] sm:$0xff]  ;;  %6369 = vpow2.f32 %v2191_v50  ;;  %v8444_v50 = vld [vmem:[#allocation3 + $0x148] sm:$0xff] }
 0x20e   : > { %v2097_v44 = vpop.xlane.xlu1 %2096  ;;  %v2095_v18 = vpop.xlane.xlu0 %2094  ;;  %9973 = vst [vmem:[#allocation85_spill] sm:$0xff] %v8399_v63  ;;  %9975 = vst [vmem:[#allocation87_spill] sm:$0xff] %v8424_v62  ;;  %6371 = vpow2.f32 %v2204_v24 }
 0x20f   : > { %v8394_v10 = vmax.f32 %v8376_v1, %v2097_v44  ;;  %v8397_v4 = vmax.f32 %v8378_v55, %v2095_v18  ;;  %v2207_v18 = vsub.f32 %v8120_v36, %v8133_v31  ;;  %9976 = vst [vmem:[#allocation88_spill] sm:$0xff] %v8426_v5  ;;  %v2193_v31 = vsub.f32 %v8144_v21, %v8157_v39 }
 0x210   : > { %3889 = vperm.xlu1 %6337, %v8391_v15   ;;  %9977 = vst [vmem:[#allocation89_spill] sm:$0xff] %v8444_v50  ;;  %v2209_v39 = vsub.f32 %v8166_v33, %v8175_v34  ;;  %v2195_v33 = vsub.f32 %v8184_v6, %v8195_v30  ;;  %v9983_v30 = vsub.f32 %v8095_v58, %v8106_v23 }
 0x211   : > { %4352 = vst.msk [vmem:[#allocation3 + $0x1a8] sm:$0xff] %vm504_vm3, %v8394_v10  ;;  %3904 = vperm.xlu0 %6338, %v8399_v63   ;;  %4351 = vst.msk [vmem:[#allocation3 + $0x1a0] sm:$0xff] %vm504_vm3, %v8397_v4  ;;  %6373 = vpow2.f32 %v2207_v18  ;;  %v8446_v63 = vld [vmem:[#allocation3 + $0x140] sm:$0xff]  ;;  %v2211_v6 = vsub.f32 %v8206_v25, %v8221_v20  ;;  %v2197_v20 = vsub.f32 %v8232_v54, %v8245_v19 }
 0x212   : > { %v2069_v44 = vpop.xlane.xlu1 %2068  ;;  %v2067_v8 = vpop.xlane.xlu0 %2066  ;;  %9978 = vst [vmem:[#allocation90_spill] sm:$0xff] %v8446_v63  ;;  %6375 = vpow2.f32 %v2193_v31  ;;  %v8470_v31 = vld [vmem:[#allocation3 + $0x1c0] sm:$0xff] }
 0x213   : > { %v8418_v15 = vmax.f32 %v8402_v9, %v2069_v44  ;;  %v8421_v17 = vmax.f32 %v8404_v37, %v2067_v8  ;;  %6377 = vpow2.f32 %v2209_v39  ;;  %v8492_v39 = vld [vmem:[#allocation3 + $0x150] sm:$0xff] }
 0x214   : > { %2372 = vperm.xlu1 %6337, %v8190_v0   ;;  %6379 = vpow2.f32 %v9983_v30  ;;  %v8513_v30 = vld [vmem:[#allocation3 + $0x1d8] sm:$0xff] }
 0x215   : > { %4338 = vst.msk [vmem:[#allocation3 + $0x138] sm:$0xff] %vm504_vm3, %v8418_v15  ;;  %2387 = vperm.xlu0 %6338, %v8245_v19   ;;  %4337 = vst.msk [vmem:[#allocation3 + $0x130] sm:$0xff] %vm504_vm3, %v8421_v17  ;;  %6381 = vpow2.f32 %v2195_v33  ;;  %v9986_v33 = vsub.f32 %v8111_v38, %v8130_v35  ;;  %v2213_v19 = vsub.f32 %v8254_v29, %v8263_v22 }
 0x216   : > { %v2101_v36 = vpop.xlane.xlu1 %2100  ;;  %v2099_v44 = vpop.xlane.xlu0 %2098  ;;  %v9993_v29 = vsub.f32 %v8159_v49, %v8172_v60  ;;  %v8584_v60 = vld [vmem:[#allocation3 + $0x178] sm:$0xff] }
 0x217   : > { %v8438_v8 = vmax.f32 %v8424_v62, %v2101_v36  ;;  %v8441_v24 = vmax.f32 %v8426_v5, %v2099_v44  ;;  %v8457_v44 = vpop.eup %6367  ;;  %v8468_v62 = vld [vmem:[#allocation3 + $0x1c8] sm:$0xff]  ;;  %6383 = vpow2.f32 %v9986_v33 }
 0x218   : > { %2452 = vperm.xlu1 %6337, %v8216_v28   ;;  %9979 = vst [vmem:[#allocation91_spill] sm:$0xff] %v8457_v44  ;;  %v8465_v37 = vpop.eup %6369  ;;  %6385 = vpow2.f32 %v2211_v6  ;;  %v8536_v33 = vld [vmem:[#allocation3 + $0x168] sm:$0xff]  ;;  %v9989_v6 = vsub.f32 %v8135_v32, %v8154_v48 }
 0x219   : > { %4354 = vst.msk [vmem:[#allocation3 + $0x1b8] sm:$0xff] %vm504_vm3, %v8438_v8  ;;  %2467 = vperm.xlu0 %6338, %v8263_v22   ;;  %4353 = vst.msk [vmem:[#allocation3 + $0x1b0] sm:$0xff] %vm504_vm3, %v8441_v24 }
 0x21a   : > { %v2073_v21 = vpop.xlane.xlu1 %2072  ;;  %v2071_v36 = vpop.xlane.xlu0 %2070  ;;  %9980 = vst [vmem:[#allocation92_spill] sm:$0xff] %v8465_v37  ;;  %6387 = vpow2.f32 %v9989_v6  ;;  %v8561_v6 = vld [vmem:[#allocation3 + $0x1e8] sm:$0xff] }
 0x21b   : > { %v8460_v5 = vmax.f32 %v8444_v50, %v2073_v21  ;;  %v8463_v18 = vmax.f32 %v8446_v63, %v2071_v36  ;;  %v8479_v36 = vpop.eup %6371  ;;  %6389 = vpow2.f32 %v2197_v20  ;;  %v8563_v20 = vld [vmem:[#allocation3 + $0x1e0] sm:$0xff] }
 0x21c   : > { %3819 = vperm.xlu1 %6337, %v8457_v44   ;;  %9981 = vst [vmem:[#allocation93_spill] sm:$0xff] %v8479_v36  ;;  %v8487_v50 = vpop.eup %6373  ;;  %9992 = vst [vmem:[#allocation101_spill] sm:$0xff] %v8563_v20  ;;  %6391 = vpow2.f32 %v9993_v29  ;;  %v8586_v29 = vld [vmem:[#allocation3 + $0x170] sm:$0xff] }
 0x21d   : > { %4340 = vst.msk [vmem:[#allocation3 + $0x148] sm:$0xff] %vm504_vm3, %v8460_v5  ;;  %3834 = vperm.xlu0 %6338, %v8465_v37   ;;  %4339 = vst.msk [vmem:[#allocation3 + $0x140] sm:$0xff] %vm504_vm3, %v8463_v18  ;;  %v8490_v37 = vld [vmem:[#allocation3 + $0x158] sm:$0xff]  ;;  %v8510_v23 = vpop.eup %6375  ;;  %6393 = vpow2.f32 %v2213_v19  ;;  %v9997_v19 = vsub.f32 %v8177_v3, %v8190_v0 }
 0x21e   : > { %v2105_v34 = vpop.xlane.xlu1 %2104  ;;  %v2103_v21 = vpop.xlane.xlu0 %2102  ;;  %9982 = vst [vmem:[#allocation94_spill] sm:$0xff] %v8487_v50  ;;  %9984 = vst [vmem:[#allocation95_spill] sm:$0xff] %v8510_v23  ;;  %v8607_v0 = vld [vmem:[#allocation3 + $0x1f8] sm:$0xff] }
 0x21f   : > { %v8482_v44 = vmax.f32 %v8468_v62, %v2105_v34  ;;  %v8485_v63 = vmax.f32 %v8470_v31, %v2103_v21  ;;  %v8533_v38 = vpop.eup %6377  ;;  %9996 = vst [vmem:[#allocation104_spill] sm:$0xff] %v8586_v29  ;;  %6395 = vpow2.f32 %v9997_v19  ;;  %10000 = vst [vmem:[#allocation107_spill] sm:$0xff] %v8607_v0  ;;  %v8609_v19 = vld [vmem:[#allocation3 + $0x1f0] sm:$0xff] }
 0x220   : > { %3899 = vperm.xlu1 %6337, %v8479_v36   ;;  %9987 = vst [vmem:[#allocation97_spill] sm:$0xff] %v8533_v38  ;;  %10001 = vst [vmem:[#allocation108_spill] sm:$0xff] %v8609_v19 }
 0x221   : > { %4356 = vst.msk [vmem:[#allocation3 + $0x1c8] sm:$0xff] %vm504_vm3, %v8482_v44  ;;  %3914 = vperm.xlu0 %6338, %v8487_v50   ;;  %4355 = vst.msk [vmem:[#allocation3 + $0x1c0] sm:$0xff] %vm504_vm3, %v8485_v63  ;;  %v8515_v50 = vld [vmem:[#allocation3 + $0x1d0] sm:$0xff] }
 0x222   : > { %v2077_v34 = vpop.xlane.xlu1 %2076  ;;  %v2075_v21 = vpop.xlane.xlu0 %2074  ;;  %9985 = vst [vmem:[#allocation96_spill] sm:$0xff] %v8515_v50 }
 0x223   : > { %v8505_v36 = vmax.f32 %v8490_v37, %v2077_v34  ;;  %v8508_v58 = vmax.f32 %v8492_v39, %v2075_v21 }
 0x224   : > { %2382 = vperm.xlu1 %6337, %v8242_v27  }
 0x225   : > { %4342 = vst.msk [vmem:[#allocation3 + $0x158] sm:$0xff] %vm504_vm3, %v8505_v36  ;;  %3844 = vperm.xlu0 %6338, %v8510_v23   ;;  %4341 = vst.msk [vmem:[#allocation3 + $0x150] sm:$0xff] %vm504_vm3, %v8508_v58  ;;  %v8538_v23 = vld [vmem:[#allocation3 + $0x160] sm:$0xff] }
 0x226   : > { %v2109_v25 = vpop.xlane.xlu1 %2108  ;;  %v2107_v34 = vpop.xlane.xlu0 %2106  ;;  %9988 = vst [vmem:[#allocation98_spill] sm:$0xff] %v8538_v23 }
 0x227   : > { %v8528_v21 = vmax.f32 %v8513_v30, %v2109_v25  ;;  %v8531_v35 = vmax.f32 %v8515_v50, %v2107_v34  ;;  %v8550_v34 = vpop.eup %6379 }
 0x228   : > { %2462 = vperm.xlu1 %6337, %v8260_v45   ;;  %9990 = vst [vmem:[#allocation99_spill] sm:$0xff] %v8550_v34  ;;  %v8558_v48 = vpop.eup %6381 }
 0x229   : > { %4358 = vst.msk [vmem:[#allocation3 + $0x1d8] sm:$0xff] %vm504_vm3, %v8528_v21  ;;  %3924 = vperm.xlu0 %6338, %v8533_v38   ;;  %4357 = vst.msk [vmem:[#allocation3 + $0x1d0] sm:$0xff] %vm504_vm3, %v8531_v35 }
 0x22a   : > { %v2081_v54 = vpop.xlane.xlu1 %2080  ;;  %v2079_v25 = vpop.xlane.xlu0 %2078  ;;  %9991 = vst [vmem:[#allocation100_spill] sm:$0xff] %v8558_v48 }
 0x22b   : > { %v8553_v50 = vmax.f32 %v8536_v33, %v2081_v54  ;;  %v8556_v32 = vmax.f32 %v8538_v23, %v2079_v25  ;;  %v8573_v25 = vpop.eup %6383 }
 0x22c   : > { %3829 = vperm.xlu1 %6337, %v8550_v34   ;;  %9994 = vst [vmem:[#allocation102_spill] sm:$0xff] %v8573_v25  ;;  %v8581_v49 = vpop.eup %6385 }
 0x22d   : > { %4344 = vst.msk [vmem:[#allocation3 + $0x168] sm:$0xff] %vm504_vm3, %v8553_v50  ;;  %3854 = vperm.xlu0 %6338, %v8558_v48   ;;  %4343 = vst.msk [vmem:[#allocation3 + $0x160] sm:$0xff] %vm504_vm3, %v8556_v32  ;;  %v8596_v48 = vpop.eup %6387 }
 0x22e   : > { %v2113_v22 = vpop.xlane.xlu1 %2112  ;;  %v2111_v54 = vpop.xlane.xlu0 %2110  ;;  %9995 = vst [vmem:[#allocation103_spill] sm:$0xff] %v8581_v49  ;;  %9998 = vst [vmem:[#allocation105_spill] sm:$0xff] %v8596_v48 }
 0x22f   : > { %v8576_v38 = vmax.f32 %v8561_v6, %v2113_v22  ;;  %v8579_v34 = vmax.f32 %v8563_v20, %v2111_v54  ;;  %v8604_v3 = vpop.eup %6389 }
 0x230   : > { %3909 = vperm.xlu1 %6337, %v8573_v25   ;;  %9999 = vst [vmem:[#allocation106_spill] sm:$0xff] %v8604_v3 }
 0x231   : > { %4360 = vst.msk [vmem:[#allocation3 + $0x1e8] sm:$0xff] %vm504_vm3, %v8576_v38  ;;  %3934 = vperm.xlu0 %6338, %v8581_v49   ;;  %4359 = vst.msk [vmem:[#allocation3 + $0x1e0] sm:$0xff] %vm504_vm3, %v8579_v34  ;;  %v10002_v49 = vsub.f32 %v8197_v56, %v8216_v28  ;;  %v793_v56 = vld [vmem:[%s7939_s26 + $0x100] sm:$0xff] }
 0x232   : > { %v2085_v22 = vpop.xlane.xlu1 %2084  ;;  %v2083_v54 = vpop.xlane.xlu0 %2082 }
 0x233   : > { %v8599_v25 = vmax.f32 %v8584_v60, %v2085_v22  ;;  %v8602_v20 = vmax.f32 %v8586_v29, %v2083_v54  ;;  %6397 = vpow2.f32 %v10002_v49  ;;  %v794_v49 = vld [vmem:[%s7939_s26 + $0x108] sm:$0xff] }
 0x234   : > { %3839 = vperm.xlu1 %6337, %v8596_v48   ;;  %v8619_v48 = vpop.eup %6391 }
 0x235   : > { %4346 = vst.msk [vmem:[#allocation3 + $0x178] sm:$0xff] %vm504_vm3, %v8599_v25  ;;  %3864 = vperm.xlu0 %6338, %v8604_v3   ;;  %4345 = vst.msk [vmem:[#allocation3 + $0x170] sm:$0xff] %vm504_vm3, %v8602_v20  ;;  %v8627_v28 = vpop.eup %6393  ;;  %v10005_v3 = vsub.f32 %v8223_v13, %v8242_v27  ;;  %v810_v27 = vld [vmem:[%s7939_s26 + $0x188] sm:$0xff] }
 0x236   : > { %v2117_v22 = vpop.xlane.xlu1 %2116  ;;  %v2115_v54 = vpop.xlane.xlu0 %2114  ;;  %10003 = vst [vmem:[#allocation109_spill] sm:$0xff] %v8619_v48  ;;  %10004 = vst [vmem:[#allocation110_spill] sm:$0xff] %v8627_v28 }
 0x237   : > { %v8622_v29 = vmax.f32 %v8607_v0, %v2117_v22  ;;  %v8625_v23 = vmax.f32 %v8609_v19, %v2115_v54  ;;  %6399 = vpow2.f32 %v10005_v3  ;;  %v6246_v22 = vpack.c.bf16 %v794_v49, %v793_v56  ;;  %v8640_v54 = vpop.eup %6395 }
 0x238   : > { %3919 = vperm.xlu1 %6337, %v8619_v48   ;;  %10006 = vst [vmem:[#allocation111_spill] sm:$0xff] %v8640_v54  ;;  %v809_v48 = vld [vmem:[%s7939_s26 + $0x180] sm:$0xff]  ;;  %v10007_v19 = vsub.f32 %v8247_v14, %v8260_v45 }
 0x239   : > { %4362 = vst.msk [vmem:[#allocation3 + $0x1f8] sm:$0xff] %vm504_vm3, %v8622_v29  ;;  %3944 = vperm.xlu0 %6338, %v8627_v28   ;;  %4361 = vst.msk [vmem:[#allocation3 + $0x1f0] sm:$0xff] %vm504_vm3, %v8625_v23  ;;  %6247 = vmatprep.subr.bf16.mxu0 %v6246_v22  ;;  %v6278_v28 = vpack.c.bf16 %v810_v27, %v809_v48 }
 0x23a   : > { %6401 = vpow2.f32 %v10007_v19 }
 0x23b   : > { %v2318_v13 = vpop.permute.xlu1 %2317  ;;  %6279 = vmatprep.subr.bf16.mxu1 %v6278_v28 }
 0x23c   : > { %3849 = vperm.xlu1 %6337, %v8640_v54   ;;  %v2631_v56 = vsub.f32 %v7328_v42, %v2318_v13 }
 0x23d   : > { %2477 = vperm.xlu0 %6338, %v8280_v59   ;;  %v8649_v0 = vpop.eup %6397 }
 0x23e   : > { %v2398_v3 = vpop.permute.xlu0 %2397  ;;  %10008 = vst [vmem:[#allocation112_spill] sm:$0xff] %v8649_v0  ;;  %6403 = vpow2.f32 %v2631_v56  ;;  %v796_v56 = vld [vmem:[%s7939_s26 + $0x118] sm:$0xff] }
 0x23f   : > { %v2647_v19 = vsub.f32 %v7332_v43, %v2398_v3  ;;  %v795_v3 = vld [vmem:[%s7939_s26 + $0x110] sm:$0xff] }
 0x240   : > { %3929 = vperm.xlu1 %6337, %v8649_v0  }
 0x241   : > { %2557 = vperm.xlu0 %6338, %v8306_v2   ;;  %v8654_v54 = vpop.eup %6399 }
 0x242   : > { %v2313_v49 = vpop.permute.xlu0 %2312  ;;  %10009 = vst [vmem:[#allocation113_spill] sm:$0xff] %v8654_v54 }
 0x243   : > { %v2630_v14 = vsub.f32 %v7338_v46, %v2313_v49  ;;  %v2393_v45 = vpop.permute.xlu1 %2392 }
 0x244   : > { %v2646_v48 = vsub.f32 %v7352_v53, %v2393_v45  ;;  %3859 = vperm.xlu1 %6337, %v8654_v54   ;;  %v8661_v42 = vpop.eup %6401  ;;  %v812_v45 = vld [vmem:[%s7939_s26 + $0x198] sm:$0xff]  ;;  %v10012_v54 = vld [vmem:[#allocation68_spill] sm:$0xff] }
 0x245   : > { %6405 = vpow2.f32 %v2630_v14  ;;  %2487 = vperm.xlu0 %6338, %v8330_v26   ;;  %10010 = vst [vmem:[#allocation114_spill] sm:$0xff] %v8661_v42  ;;  %v811_v14 = vld [vmem:[%s7939_s26 + $0x190] sm:$0xff]  ;;  %v10013_v0 = vsub.f32 %v10012_v54, %v8280_v59  ;;  %v814_v54 = vld [vmem:[%s7939_s26 + $0x1a8] sm:$0xff] }
 0x246   : > { %6407 = vpow2.f32 %v2646_v48  ;;  %v2408_v53 = vpop.permute.xlu0 %2407 }
 0x247   : > { %v2328_v13 = vpop.permute.xlu1 %2327  ;;  %6409 = vpow2.f32 %v2647_v19 }
 0x248   : > { %3939 = vperm.xlu1 %6337, %v8661_v42   ;;  %v2633_v43 = vsub.f32 %v7342_v47, %v2328_v13  ;;  %v8671_v49 = vpop.eup %6403  ;;  %v2649_v47 = vsub.f32 %v7348_v51, %v2408_v53  ;;  %v797_v42 = vld [vmem:[%s7939_s26 + $0x120] sm:$0xff]  ;;  %v6282_v51 = vpack.c.bf16 %v812_v45, %v811_v14 }
 0x249   : > { %2567 = vperm.xlu0 %6338, %v8348_v41  }
 0x24b   : > { %v2323_v46 = vpop.permute.xlu1 %2322 }
 0x24c   : > { %v2632_v27 = vsub.f32 %v7365_v61, %v2323_v46  ;;  %2472 = vperm.xlu1 %6337, %v8283_v52   ;;  %v6250_v61 = vpack.c.bf16 %v796_v56, %v795_v3  ;;  %v799_v3 = vld [vmem:[%s7939_s26 + $0x130] sm:$0xff]  ;;  %v800_v56 = vld [vmem:[%s7939_s26 + $0x138] sm:$0xff] }
 0x24d   : > { %2497 = vperm.xlu0 %6338, %v8368_v11  }
 0x24e   : > { %6411 = vpow2.f32 %v2632_v27  ;;  %v798_v27 = vld [vmem:[%s7939_s26 + $0x128] sm:$0xff] }
 0x24f   : > { %v8675_v19 = vpop.eup %6405  ;;  %6413 = vpow2.f32 %v2633_v43  ;;  %v2403_v48 = vpop.permute.xlu1 %2402  ;;  %v6254_v59 = vpack.c.bf16 %v798_v27, %v797_v42  ;;  %v10016_v42 = vld [vmem:[#allocation7_spill] sm:$0xff] }
 0x250   : > { %10011 = vst [vmem:[#allocation115_spill] sm:$0xff] %v8675_v19  ;;  %v8678_v13 = vpop.eup %6407  ;;  %v2648_v46 = vsub.f32 %v7358_v57, %v2403_v48  ;;  %2552 = vperm.xlu1 %6337, %v8309_v12   ;;  %5798 = vmatprep.mubr.f32.mxu0 %v8675_v19  ;;  %6415 = vpow2.f32 %v10013_v0  ;;  %v813_v0 = vld [vmem:[%s7939_s26 + $0x1a0] sm:$0xff]  ;;  %v2418_v53 = vpop.permute.xlu0 %2417  ;;  %v10018_v19 = vld [vmem:[#allocation79_spill] sm:$0xff] }
 0x251   : > { %2577 = vperm.xlu0 %6338, %v8394_v10   ;;  %5799 = vmatmul.mubr.f32.vlgmr.msra.gmra.mrb[32].mxu0 %v8671_v49  ;;  %v8690_v43 = vpop.eup %6409  ;;  %v6286_v14 = vpack.c.bf16 %v814_v54, %v813_v0  ;;  %v10017_v48 = vld [vmem:[#allocation6_spill] sm:$0xff]  ;;  %v815_v0 = vld [vmem:[%s7939_s26 + $0x1b0] sm:$0xff]  ;;  %v816_v54 = vld [vmem:[%s7939_s26 + $0x1b8] sm:$0xff] }
 0x252   : > { %10014 = vst [vmem:[#allocation68_spill] sm:$0xff] %v8690_v43  ;;  %6417 = vpow2.f32 %v2648_v46  ;;  %5854 = vmatprep.mubr.f32.mxu1 %v8678_v13  ;;  %6249 = vmatpush3.bf16.msra.mxu0 %v6246_v22  ;;  %v10015_v22 = vsub.f32 %v8288_v7, %v8306_v2  ;;  %v6258_v7 = vpack.c.bf16 %v800_v56, %v799_v3 }
 0x253   : > { %6419 = vpow2.f32 %v2649_v47  ;;  %5855 = vmatmul.mubr.f32.vlgmr.msra.gmra.mrb[32].mxu1 %v8690_v43  ;;  %v2338_v57 = vpop.permute.xlu1 %2337  ;;  %6251 = vmatprep.subr.bf16.mxu0 %v6250_v61 }
 0x254   : > { %2482 = vperm.xlu1 %6337, %v8333_v40   ;;  %6281 = vmatpush3.bf16.msra.mxu1 %v6278_v28  ;;  %6421 = vpow2.f32 %v10015_v22  ;;  %v2635_v45 = vsub.f32 %v10016_v42, %v2338_v57  ;;  %v802_v57 = vld [vmem:[%s7939_s26 + $0x148] sm:$0xff]  ;;  %v10021_v42 = vld [vmem:[#allocation9_spill] sm:$0xff] }
 0x255   : > { %2507 = vperm.xlu0 %6338, %v8418_v15   ;;  %6283 = vmatprep.subr.bf16.mxu1 %v6282_v51 }
 0x256   : > { %6253 = vmatpush3.bf16.msra.mxu0 %v6250_v61  ;;  %v801_v61 = vld [vmem:[%s7939_s26 + $0x140] sm:$0xff] }
 0x257   : > { %v2333_v47 = vpop.permute.xlu1 %2332  ;;  %6255 = vmatprep.subr.bf16.mxu0 %v6254_v59 }
 0x258   : > { %v8704_v28 = vpop.eup %6411  ;;  %v2634_v46 = vsub.f32 %v10017_v48, %v2333_v47  ;;  %v8707_v27 = vpop.permute.xlu0 %2427  ;;  %2562 = vperm.xlu1 %6337, %v10018_v19   ;;  %6285 = vmatpush3.bf16.msra.mxu1 %v6282_v51  ;;  %v2651_v51 = vsub.f32 %v10021_v42, %v2418_v53  ;;  %v10023_v47 = vld [vmem:[#allocation8_spill] sm:$0xff]  ;;  %v10026_v53 = vld [vmem:[#allocation69_spill] sm:$0xff] }
 0x259   : > { %v8710_v2 = vpop.eup %6413  ;;  %2587 = vperm.xlu0 %6338, %v8438_v8   ;;  %5801 = vmatprep.mubr.f32.mxu0 %v8704_v28  ;;  %v2214_v42 = vsub.f32 %v10026_v53, %v8283_v52  ;;  %v10028_v52 = vld [vmem:[#allocation72_spill] sm:$0xff] }
 0x25a   : > { %10019 = vst [vmem:[#allocation7_spill] sm:$0xff] %v8710_v2  ;;  %6423 = vpow2.f32 %v2634_v46  ;;  %5802 = vmatmul.mubr.f32.gmra.mrb[34].mxu0 %v8710_v2  ;;  %6287 = vmatprep.subr.bf16.mxu1 %v6286_v14  ;;  %v8719_v22 = vpop.eup %6415  ;;  %v6262_v46 = vpack.c.bf16 %v802_v57, %v801_v61  ;;  %v817_v61 = vld [vmem:[%s7939_s26 + $0x1c0] sm:$0xff]  ;;  %v818_v57 = vld [vmem:[%s7939_s26 + $0x1c8] sm:$0xff]  ;;  %v2230_v53 = vsub.f32 %v10028_v52, %v8309_v12 }
 0x25b   : > { %10020 = vst [vmem:[#allocation6_spill] sm:$0xff] %v8719_v22  ;;  %6425 = vpow2.f32 %v2635_v45  ;;  %v2413_v3 = vpop.permute.xlu1 %2412  ;;  %6257 = vmatpush3.bf16.msra.mxu0 %v6254_v59  ;;  %v6290_v59 = vpack.c.bf16 %v816_v54, %v815_v0  ;;  %v803_v45 = vld [vmem:[%s7939_s26 + $0x150] sm:$0xff]  ;;  %v10032_v12 = vld [vmem:[#allocation11_spill] sm:$0xff] }
 0x25c   : > { %v8722_v56 = vpop.eup %6417  ;;  %v2650_v48 = vsub.f32 %v10023_v47, %v2413_v3  ;;  %v8725_v43 = vpop.permute.xlu0 %3874  ;;  %2492 = vperm.xlu1 %6337, %v8371_v16   ;;  %6259 = vmatprep.subr.bf16.mxu0 %v6258_v7  ;;  %v804_v3 = vld [vmem:[%s7939_s26 + $0x158] sm:$0xff] }
 0x25d   : > { %10022 = vst [vmem:[#allocation79_spill] sm:$0xff] %v8722_v56  ;;  %10024 = vst [vmem:[#allocation9_spill] sm:$0xff] %v8725_v43  ;;  %v8728_v2 = vpop.eup %6419  ;;  %3954 = vperm.xlu0 %6338, %v8719_v22   ;;  %5857 = vmatprep.mubr.f32.mxu1 %v8722_v56  ;;  %v6266_v54 = vpack.c.bf16 %v804_v3, %v803_v45  ;;  %v6294_v22 = vpack.c.bf16 %v818_v57, %v817_v61  ;;  %v820_v45 = vld [vmem:[%s7939_s26 + $0x1d8] sm:$0xff]  ;;  %v10033_v3 = vld [vmem:[#allocation10_spill] sm:$0xff] }
 0x25e   : > { %10025 = vst [vmem:[#allocation8_spill] sm:$0xff] %v8728_v2  ;;  %6427 = vpow2.f32 %v2650_v48  ;;  %5858 = vmatmul.mubr.f32.gmra.mrb[34].mxu1 %v8728_v2  ;;  %v8739_v43 = vpop.eup %6421  ;;  %v807_v61 = vld [vmem:[%s7939_s26 + $0x170] sm:$0xff]  ;;  %v808_v57 = vld [vmem:[%s7939_s26 + $0x178] sm:$0xff] }
 0x25f   : > { %6429 = vpow2.f32 %v2651_v51  ;;  %v2348_v47 = vpop.permute.xlu1 %2347  ;;  %6261 = vmatpush3.bf16.msra.mxu0 %v6258_v7  ;;  %6289 = vmatpush3.bf16.msra.mxu1 %v6286_v14  ;;  %10027 = vst [vmem:[#allocation69_spill] sm:$0xff] %v8739_v43  ;;  %v805_v14 = vld [vmem:[%s7939_s26 + $0x160] sm:$0xff]  ;;  %v806_v7 = vld [vmem:[%s7939_s26 + $0x168] sm:$0xff] }
 0x260   : > { %v8743_v0 = vpop.permute.xlu0 %3789  ;;  %2572 = vperm.xlu1 %6337, %v8397_v4   ;;  %6263 = vmatprep.subr.bf16.mxu0 %v6262_v46  ;;  %6431 = vpow2.f32 %v2214_v42  ;;  %v10030_v51 = vld [vmem:[#allocation75_spill] sm:$0xff]  ;;  %v2637_v52 = vsub.f32 %v10032_v12, %v2348_v47  ;;  %v10037_v12 = vld [vmem:[#allocation12_spill] sm:$0xff] }
 0x261   : > { %10029 = vst [vmem:[#allocation72_spill] sm:$0xff] %v8743_v0  ;;  %4034 = vperm.xlu0 %6338, %v8739_v43   ;;  %6291 = vmatprep.subr.bf16.mxu1 %v6290_v59  ;;  %v10031_v48 = vsub.f32 %v10030_v51, %v8330_v26  ;;  %v819_v0 = vld [vmem:[%s7939_s26 + $0x1d0] sm:$0xff]  ;;  %v6270_v26 = vpack.c.bf16 %v806_v7, %v805_v14  ;;  %v822_v51 = vld [vmem:[%s7939_s26 + $0x1e8] sm:$0xff]  ;;  %v10036_v14 = vld [vmem:[#allocation13_spill] sm:$0xff] }
 0x262   : > { %v2653_v7 = vsub.f32 %v10036_v14, %v8707_v27 }
 0x263   : > { %6433 = vpow2.f32 %v10031_v48  ;;  %v2343_v2 = vpop.permute.xlu1 %2342  ;;  %6265 = vmatpush3.bf16.msra.mxu0 %v6262_v46  ;;  %6293 = vmatpush3.bf16.msra.mxu1 %v6290_v59  ;;  %v10034_v46 = vld [vmem:[#allocation77_spill] sm:$0xff] }
 0x264   : > { %v8755_v42 = vpop.eup %6423  ;;  %6435 = vpow2.f32 %v2230_v53  ;;  %v2636_v43 = vsub.f32 %v10033_v3, %v2343_v2  ;;  %v8758_v56 = vpop.permute.xlu0 %2357  ;;  %2502 = vperm.xlu1 %6337, %v8421_v17   ;;  %6267 = vmatprep.subr.bf16.mxu0 %v6266_v54  ;;  %v10035_v59 = vsub.f32 %v10034_v46, %v8348_v41  ;;  %v6298_v2 = vpack.c.bf16 %v820_v45, %v819_v0  ;;  %v821_v53 = vld [vmem:[%s7939_s26 + $0x1e0] sm:$0xff] }
 0x265   : > { %v8761_v47 = vpop.eup %6425  ;;  %2517 = vperm.xlu0 %6338, %v8460_v5   ;;  %5804 = vmatprep.mubr.f32.mxu0 %v8755_v42  ;;  %v6274_v0 = vpack.c.bf16 %v808_v57, %v807_v61  ;;  %v6302_v27 = vpack.c.bf16 %v822_v51, %v821_v53  ;;  %v10040_v53 = vld [vmem:[#allocation76_spill] sm:$0xff] }
 0x266   : > { %6437 = vpow2.f32 %v10035_v59  ;;  %5805 = vmatmul.mubr.f32.gmra.mrb[36].mxu0 %v8761_v47  ;;  %6295 = vmatprep.subr.bf16.mxu1 %v6294_v22  ;;  %v2216_v51 = vsub.f32 %v10040_v53, %v8333_v40 }
 0x267   : > { %6439 = vpow2.f32 %v2636_v43  ;;  %v2423_v41 = vpop.permute.xlu1 %2422  ;;  %6269 = vmatpush3.bf16.msra.mxu0 %v6266_v54  ;;  %6297 = vmatpush3.bf16.msra.mxu1 %v6294_v22  ;;  %v824_v54 = vld [vmem:[%s7939_s26 + $0x1f8] sm:$0xff] }
 0x268   : > { %6441 = vpow2.f32 %v2637_v52  ;;  %v8775_v48 = vpop.eup %6427  ;;  %v2652_v3 = vsub.f32 %v10037_v12, %v2423_v41  ;;  %v8778_v43 = vpop.permute.xlu0 %2437  ;;  %2582 = vperm.xlu1 %6337, %v8441_v24   ;;  %6271 = vmatprep.subr.bf16.mxu0 %v6270_v26  ;;  %v823_v52 = vld [vmem:[%s7939_s26 + $0x1f0] sm:$0xff]  ;;  %v10043_v41 = vld [vmem:[#allocation78_spill] sm:$0xff] }
 0x269   : > { %v8781_v45 = vpop.eup %6429  ;;  %2597 = vperm.xlu0 %6338, %v8482_v44   ;;  %5860 = vmatprep.mubr.f32.mxu1 %v8775_v48  ;;  %v6306_v57 = vpack.c.bf16 %v824_v54, %v823_v52  ;;  %v2232_v12 = vsub.f32 %v10043_v41, %v10018_v19  ;;  %v10044_v52 = vld [vmem:[#allocation80_spill] sm:$0xff]  ;;  %v10046_v19 = vld [vmem:[#allocation15_spill] sm:$0xff]  ;;  %v10047_v41 = vld [vmem:[#allocation14_spill] sm:$0xff] }
 0x26a   : > { %6443 = vpow2.f32 %v2652_v3  ;;  %5861 = vmatmul.mubr.f32.gmra.mrb[36].mxu1 %v8781_v45  ;;  %6299 = vmatprep.subr.bf16.mxu1 %v6298_v2  ;;  %v8788_v22 = vpop.eup %6431 }
 0x26b   : > { %10038 = vst [vmem:[#allocation75_spill] sm:$0xff] %v8788_v22  ;;  %6445 = vpow2.f32 %v2653_v7  ;;  %v8790_v46 = vpop.permute.xlu1 %3794  ;;  %6273 = vmatpush3.bf16.msra.mxu0 %v6270_v26  ;;  %6301 = vmatpush3.bf16.msra.mxu1 %v6298_v2 }
 0x26c   : > { %v8794_v61 = vpop.permute.xlu0 %3804  ;;  %3949 = vperm.xlu1 %6337, %v8788_v22   ;;  %6275 = vmatprep.subr.bf16.mxu0 %v6274_v0  ;;  %6447 = vpow2.f32 %v2216_v51 }
 0x26d   : > { %v8792_v59 = vpop.eup %6433  ;;  %6303 = vmatprep.subr.bf16.mxu1 %v6302_v27 }
 0x26e   : > { %10039 = vst [vmem:[#allocation11_spill] sm:$0xff] %v8792_v59  ;;  %3964 = vperm.xlu0 %6338, %v8792_v59   ;;  %v8800_v14 = vpop.eup %6435 }
 0x26f   : > { %10041 = vst [vmem:[#allocation10_spill] sm:$0xff] %v8800_v14  ;;  %v8804_v26 = vpop.permute.xlu1 %3869  ;;  %6277 = vmatpush3.bf16.msra.mxu0 %v6274_v0  ;;  %6305 = vmatpush3.bf16.msra.mxu1 %v6302_v27  ;;  %v10045_v0 = vsub.f32 %v10044_v52, %v8368_v11  ;;  %v2639_v27 = vsub.f32 %v10046_v19, %v8758_v56  ;;  %v10049_v56 = vld [vmem:[#allocation17_spill] sm:$0xff]  ;;  %v10050_v52 = vld [vmem:[#allocation16_spill] sm:$0xff] }
 0x270   : > { %v8802_v7 = vpop.eup %6437  ;;  %v8810_v3 = vpop.permute.xlu0 %3884  ;;  %4029 = vperm.xlu1 %6337, %v8800_v14   ;;  %6307 = vmatprep.subr.bf16.mxu1 %v6306_v57  ;;  %v10048_v11 = vsub.f32 %v8376_v1, %v8394_v10 }
 0x271   : > { %10042 = vst [vmem:[#allocation77_spill] sm:$0xff] %v8802_v7  ;;  %v8806_v2 = vpop.eup %6439  ;;  %6449 = vpow2.f32 %v10045_v0 }
 0x272   : > { %v8813_v40 = vpop.eup %6441  ;;  %4044 = vperm.xlu0 %6338, %v8802_v7   ;;  %5807 = vmatprep.mubr.f32.mxu0 %v8806_v2  ;;  %6451 = vpow2.f32 %v2232_v12 }
 0x273   : > { %5808 = vmatmul.mubr.f32.gmra.mrb[38].mxu0 %v8813_v40  ;;  %v2353_v54 = vpop.permute.xlu1 %2352  ;;  %6309 = vmatpush3.bf16.msra.mxu1 %v6306_v57  ;;  %6453 = vpow2.f32 %v10048_v11  ;;  %v2655_v57 = vsub.f32 %v10049_v56, %v8778_v43  ;;  %v10053_v43 = vld [vmem:[#allocation81_spill] sm:$0xff] }
 0x274   : > { %v8823_v53 = vpop.eup %6443  ;;  %v2638_v51 = vsub.f32 %v10047_v41, %v2353_v54  ;;  %v2368_v59 = vpop.permute.xlu0 %2367  ;;  %2512 = vperm.xlu1 %6337, %v8463_v18   ;;  %v2218_v41 = vsub.f32 %v10053_v43, %v8371_v16  ;;  %v10056_v16 = vsub.f32 %v8402_v9, %v8418_v15  ;;  %v10057_v43 = vld [vmem:[#allocation19_spill] sm:$0xff]  ;;  %v10061_v9 = vld [vmem:[#allocation21_spill] sm:$0xff] }
 0x275   : > { %v8827_v7 = vpop.eup %6445  ;;  %5863 = vmatprep.mubr.f32.mxu1 %v8823_v53 }
 0x276   : > { %2527 = vperm.xlu0 %6338, %v8505_v36   ;;  %6455 = vpow2.f32 %v2638_v51  ;;  %5864 = vmatmul.mubr.f32.gmra.mrb[38].mxu1 %v8827_v7  ;;  %v8840_v1 = vpop.eup %6447 }
 0x277   : > { %6457 = vpow2.f32 %v2639_v27  ;;  %v2433_v12 = vpop.permute.xlu1 %2432  ;;  %10051 = vst [vmem:[#allocation13_spill] sm:$0xff] %v8840_v1 }
 0x278   : > { %v2654_v0 = vsub.f32 %v10050_v52, %v2433_v12  ;;  %v2448_v19 = vpop.permute.xlu0 %2447  ;;  %2592 = vperm.xlu1 %6337, %v8485_v63   ;;  %v2234_v12 = vsub.f32 %v8378_v55, %v8397_v4 }
 0x279   : > { %v2657_v15 = vsub.f32 %v10061_v9, %v2448_v19  ;;  %v10066_v19 = vld [vmem:[#allocation86_spill] sm:$0xff] }
 0x27a   : > { %2607 = vperm.xlu0 %6338, %v8528_v21   ;;  %6459 = vpow2.f32 %v2654_v0 }
 0x27b   : > { %6461 = vpow2.f32 %v2655_v57  ;;  %v8842_v10 = vpop.permute.xlu1 %3799  ;;  %v8844_v54 = vpop.eup %6449 }
 0x27c   : > { %10052 = vst [vmem:[#allocation12_spill] sm:$0xff] %v8844_v54  ;;  %v8846_v27 = vpop.permute.xlu0 %3814  ;;  %3959 = vperm.xlu1 %6337, %v8840_v1   ;;  %v8852_v51 = vpop.eup %6451  ;;  %6463 = vpow2.f32 %v2218_v41 }
 0x27d   : > { %10054 = vst [vmem:[#allocation76_spill] sm:$0xff] %v8852_v51  ;;  %v8854_v11 = vpop.eup %6453  ;;  %6465 = vpow2.f32 %v10056_v16 }
 0x27e   : > { %3974 = vperm.xlu0 %6338, %v8844_v54   ;;  %10055 = vst [vmem:[#allocation78_spill] sm:$0xff] %v8854_v11  ;;  %v2641_v54 = vsub.f32 %v10057_v43, %v2368_v59  ;;  %6467 = vpow2.f32 %v2234_v12 }
 0x27f   : > { %v8856_v56 = vpop.permute.xlu1 %3879 }
 0x280   : > { %v8858_v57 = vpop.eup %6455  ;;  %v8862_v52 = vpop.permute.xlu0 %3894  ;;  %4039 = vperm.xlu1 %6337, %v8852_v51   ;;  %v10058_v51 = vld [vmem:[#allocation18_spill] sm:$0xff] }
 0x281   : > { %v8865_v0 = vpop.eup %6457  ;;  %5810 = vmatprep.mubr.f32.mxu0 %v8858_v57 }
 0x282   : > { %4054 = vperm.xlu0 %6338, %v8854_v11   ;;  %5811 = vmatmul.mubr.f32.gmra.mrb[40].mxu0 %v8865_v0  ;;  %v10059_v11 = vld [vmem:[#allocation87_spill] sm:$0xff] }
 0x283   : > { %v2363_v55 = vpop.permute.xlu1 %2362  ;;  %v10060_v22 = vsub.f32 %v10059_v11, %v8438_v8 }
 0x284   : > { %v8874_v4 = vpop.eup %6459  ;;  %v2640_v1 = vsub.f32 %v10058_v51, %v2363_v55  ;;  %v2378_v14 = vpop.permute.xlu0 %2377  ;;  %2522 = vperm.xlu1 %6337, %v8508_v58   ;;  %v10062_v51 = vld [vmem:[#allocation20_spill] sm:$0xff]  ;;  %v10068_v55 = vld [vmem:[#allocation89_spill] sm:$0xff] }
 0x285   : > { %v8878_v41 = vpop.eup %6461  ;;  %6469 = vpow2.f32 %v10060_v22  ;;  %5866 = vmatprep.mubr.f32.mxu1 %v8874_v4  ;;  %v2223_v9 = vsub.f32 %v10068_v55, %v8460_v5  ;;  %v10072_v5 = vld [vmem:[#allocation23_spill] sm:$0xff] }
 0x286   : > { %2537 = vperm.xlu0 %6338, %v8553_v50   ;;  %6471 = vpow2.f32 %v2640_v1  ;;  %5867 = vmatmul.mubr.f32.gmra.mrb[40].mxu1 %v8878_v41  ;;  %v8890_v8 = vpop.eup %6463  ;;  %v2643_v55 = vsub.f32 %v10072_v5, %v2378_v14 }
 0x287   : > { %6473 = vpow2.f32 %v2641_v54  ;;  %v2443_v59 = vpop.permute.xlu1 %2442  ;;  %10063 = vst [vmem:[#allocation80_spill] sm:$0xff] %v8890_v8  ;;  %v8894_v1 = vpop.eup %6465  ;;  %v2220_v54 = vsub.f32 %v10066_v19, %v8421_v17  ;;  %v2239_v19 = vsub.f32 %v8468_v62, %v8482_v44  ;;  %v2225_v62 = vsub.f32 %v8490_v37, %v8505_v36  ;;  %v10074_v44 = vld [vmem:[#allocation25_spill] sm:$0xff] }
 0x288   : > { %v2656_v12 = vsub.f32 %v10062_v51, %v2443_v59  ;;  %v2458_v16 = vpop.permute.xlu0 %2457  ;;  %2602 = vperm.xlu1 %6337, %v8531_v35   ;;  %10064 = vst [vmem:[#allocation15_spill] sm:$0xff] %v8894_v1  ;;  %v8902_v43 = vpop.eup %6467  ;;  %v2241_v37 = vsub.f32 %v8513_v30, %v8528_v21  ;;  %v2227_v30 = vsub.f32 %v8536_v33, %v8553_v50 }
 0x289   : > { %10067 = vst [vmem:[#allocation17_spill] sm:$0xff] %v8902_v43  ;;  %v2659_v14 = vsub.f32 %v10074_v44, %v2458_v16 }
 0x28a   : > { %2617 = vperm.xlu0 %6338, %v8576_v38   ;;  %6475 = vpow2.f32 %v2656_v12  ;;  %v10070_v12 = vld [vmem:[#allocation88_spill] sm:$0xff] }
 0x28b   : > { %6477 = vpow2.f32 %v2657_v15  ;;  %v8892_v22 = vpop.permute.xlu1 %3809 }
 0x28c   : > { %v8896_v11 = vpop.permute.xlu0 %3824  ;;  %3969 = vperm.xlu1 %6337, %v8890_v8   ;;  %6479 = vpow2.f32 %v2220_v54 }
 0x28d   : > { %10065 = vst [vmem:[#allocation14_spill] sm:$0xff] %v8896_v11  ;;  %v2236_v11 = vsub.f32 %v10070_v12, %v8441_v24  ;;  %6481 = vpow2.f32 %v2223_v9 }
 0x28e   : > { %3984 = vperm.xlu0 %6338, %v8894_v1   ;;  %v10073_v1 = vld [vmem:[#allocation22_spill] sm:$0xff] }
 0x28f   : > { %v8906_v59 = vpop.eup %6469  ;;  %v8908_v15 = vpop.permute.xlu1 %3889  ;;  %6483 = vpow2.f32 %v2236_v11  ;;  %v10075_v11 = vld [vmem:[#allocation24_spill] sm:$0xff] }
 0x290   : > { %10069 = vst [vmem:[#allocation16_spill] sm:$0xff] %v8906_v59  ;;  %v8910_v51 = vpop.eup %6471  ;;  %v8914_v8 = vpop.permute.xlu0 %3904  ;;  %4049 = vperm.xlu1 %6337, %v8902_v43   ;;  %6485 = vpow2.f32 %v2239_v19 }
 0x291   : > { %10071 = vst [vmem:[#allocation81_spill] sm:$0xff] %v8914_v8  ;;  %v8917_v17 = vpop.eup %6473  ;;  %5813 = vmatprep.mubr.f32.mxu0 %v8910_v51 }
 0x292   : > { %4064 = vperm.xlu0 %6338, %v8906_v59   ;;  %5814 = vmatmul.mubr.f32.gmra.mrb[42].mxu0 %v8917_v17 }
 0x293   : > { %v2373_v24 = vpop.permute.xlu1 %2372 }
 0x294   : > { %v8925_v12 = vpop.eup %6475  ;;  %v2642_v43 = vsub.f32 %v10073_v1, %v2373_v24  ;;  %v2388_v8 = vpop.permute.xlu0 %2387  ;;  %2532 = vperm.xlu1 %6337, %v8556_v32  }
 0x295   : > { %v8929_v54 = vpop.eup %6477  ;;  %5869 = vmatprep.mubr.f32.mxu1 %v8925_v12 }
 0x296   : > { %2547 = vperm.xlu0 %6338, %v8599_v25   ;;  %6487 = vpow2.f32 %v2642_v43  ;;  %5870 = vmatmul.mubr.f32.gmra.mrb[42].mxu1 %v8929_v54  ;;  %v8942_v36 = vpop.eup %6479 }
 0x297   : > { %6489 = vpow2.f32 %v2643_v55  ;;  %v2453_v1 = vpop.permute.xlu1 %2452  ;;  %10076 = vst [vmem:[#allocation19_spill] sm:$0xff] %v8942_v36  ;;  %v8946_v19 = vpop.eup %6481  ;;  %v10078_v55 = vld [vmem:[#allocation90_spill] sm:$0xff] }
 0x298   : > { %v2658_v9 = vsub.f32 %v10075_v11, %v2453_v1  ;;  %v2468_v5 = vpop.permute.xlu0 %2467  ;;  %2612 = vperm.xlu1 %6337, %v8579_v34   ;;  %6491 = vpow2.f32 %v2225_v62  ;;  %10077 = vst [vmem:[#allocation18_spill] sm:$0xff] %v8946_v19  ;;  %v2222_v24 = vsub.f32 %v10078_v55, %v8463_v18  ;;  %v2238_v1 = vsub.f32 %v8470_v31, %v8485_v63  ;;  %v10082_v63 = vld [vmem:[#allocation27_spill] sm:$0xff] }
 0x299   : > { %v8954_v62 = vpop.eup %6483  ;;  %v2645_v31 = vsub.f32 %v10082_v63, %v2388_v8  ;;  %v2224_v55 = vsub.f32 %v8492_v39, %v8508_v58  ;;  %v10085_v39 = vld [vmem:[#allocation29_spill] sm:$0xff]  ;;  %v10087_v63 = vld [vmem:[#allocation28_spill] sm:$0xff] }
 0x29a   : > { %2627 = vperm.xlu0 %6338, %v8622_v29   ;;  %6493 = vpow2.f32 %v2658_v9  ;;  %10079 = vst [vmem:[#allocation87_spill] sm:$0xff] %v8954_v62  ;;  %v8958_v21 = vpop.eup %6485  ;;  %v2243_v9 = vsub.f32 %v8561_v6, %v8576_v38  ;;  %v2661_v58 = vsub.f32 %v10085_v39, %v2468_v5 }
 0x29b   : > { %6495 = vpow2.f32 %v2659_v14  ;;  %v8944_v43 = vpop.permute.xlu1 %3819  ;;  %10080 = vst [vmem:[#allocation21_spill] sm:$0xff] %v8958_v21 }
 0x29c   : > { %v8948_v16 = vpop.permute.xlu0 %3834  ;;  %3979 = vperm.xlu1 %6337, %v8942_v36   ;;  %6497 = vpow2.f32 %v2241_v37 }
 0x29d   : > { %6499 = vpow2.f32 %v2222_v24  ;;  %v10083_v24 = vld [vmem:[#allocation26_spill] sm:$0xff] }
 0x29e   : > { %3994 = vperm.xlu0 %6338, %v8946_v19   ;;  %6501 = vpow2.f32 %v2227_v30 }
 0x29f   : > { %v8960_v44 = vpop.permute.xlu1 %3899  ;;  %6503 = vpow2.f32 %v2238_v1 }
 0x2a0   : > { %v8962_v14 = vpop.eup %6487  ;;  %v8966_v11 = vpop.permute.xlu0 %3914  ;;  %4059 = vperm.xlu1 %6337, %v8954_v62   ;;  %6505 = vpow2.f32 %v2243_v9 }
 0x2a1   : > { %v8969_v18 = vpop.eup %6489  ;;  %5816 = vmatprep.mubr.f32.mxu0 %v8962_v14 }
 0x2a2   : > { %4074 = vperm.xlu0 %6338, %v8958_v21   ;;  %5817 = vmatmul.mubr.f32.gmra.mrb[44].mxu0 %v8969_v18  ;;  %v8976_v50 = vpop.eup %6491  ;;  %v2229_v21 = vsub.f32 %v8584_v60, %v8599_v25  ;;  %v10089_v25 = vld [vmem:[#allocation96_spill] sm:$0xff] }
 0x2a3   : > { %10081 = vst [vmem:[#allocation20_spill] sm:$0xff] %v8976_v50  ;;  %v2383_v33 = vpop.permute.xlu1 %2382  ;;  %v2240_v60 = vsub.f32 %v10089_v25, %v8531_v35  ;;  %v10094_v35 = vld [vmem:[#allocation98_spill] sm:$0xff] }
 0x2a4   : > { %v8979_v37 = vpop.eup %6493  ;;  %v2644_v38 = vsub.f32 %v10083_v24, %v2383_v33  ;;  %v8984_v6 = vpop.permute.xlu0 %3844  ;;  %2542 = vperm.xlu1 %6337, %v8602_v20  }
 0x2a5   : > { %10084 = vst [vmem:[#allocation86_spill] sm:$0xff] %v8984_v6  ;;  %v8987_v30 = vpop.eup %6495  ;;  %5872 = vmatprep.mubr.f32.mxu1 %v8979_v37 }
 0x2a6   : > { %4004 = vperm.xlu0 %6338, %v8976_v50   ;;  %6507 = vpow2.f32 %v2644_v38  ;;  %5873 = vmatmul.mubr.f32.gmra.mrb[44].mxu1 %v8987_v30  ;;  %v8995_v1 = vpop.eup %6497 }
 0x2a7   : > { %6509 = vpow2.f32 %v2645_v31  ;;  %v2463_v8 = vpop.permute.xlu1 %2462  ;;  %10086 = vst [vmem:[#allocation89_spill] sm:$0xff] %v8995_v1  ;;  %v10090_v31 = vld [vmem:[#allocation107_spill] sm:$0xff]  ;;  %v9006_v5 = vpop.eup %6499 }
 0x2a8   : > { %6511 = vpow2.f32 %v2224_v55  ;;  %v2660_v33 = vsub.f32 %v10087_v63, %v2463_v8  ;;  %v8998_v9 = vpop.permute.xlu0 %3924  ;;  %2622 = vperm.xlu1 %6337, %v8625_v23   ;;  %v2245_v24 = vsub.f32 %v10090_v31, %v8622_v29  ;;  %10091 = vst [vmem:[#allocation23_spill] sm:$0xff] %v9006_v5  ;;  %v9010_v38 = vpop.eup %6501 }
 0x2a9   : > { %10088 = vst [vmem:[#allocation88_spill] sm:$0xff] %v8998_v9  ;;  %6513 = vpow2.f32 %v2229_v21  ;;  %10092 = vst [vmem:[#allocation22_spill] sm:$0xff] %v9010_v38  ;;  %v2226_v21 = vsub.f32 %v10094_v35, %v8556_v32  ;;  %v9018_v8 = vpop.eup %6503  ;;  %v10099_v32 = vld [vmem:[#allocation101_spill] sm:$0xff] }
 0x2aa   : > { %4084 = vperm.xlu0 %6338, %v8995_v1   ;;  %6515 = vpow2.f32 %v2660_v33  ;;  %10095 = vst [vmem:[#allocation24_spill] sm:$0xff] %v9018_v8  ;;  %v9020_v29 = vpop.eup %6505 }
 0x2ab   : > { %6517 = vpow2.f32 %v2661_v58  ;;  %v9008_v55 = vpop.permute.xlu1 %3829  ;;  %10096 = vst [vmem:[#allocation90_spill] sm:$0xff] %v9020_v29 }
 0x2ac   : > { %v9012_v39 = vpop.permute.xlu0 %3854  ;;  %3989 = vperm.xlu1 %6337, %v9006_v5   ;;  %6519 = vpow2.f32 %v2240_v60  ;;  %v2242_v60 = vsub.f32 %v10099_v32, %v8579_v34  ;;  %v10104_v34 = vld [vmem:[#allocation104_spill] sm:$0xff] }
 0x2ad   : > { %10093 = vst [vmem:[#allocation25_spill] sm:$0xff] %v9012_v39  ;;  %6521 = vpow2.f32 %v2245_v24  ;;  %v2228_v32 = vsub.f32 %v10104_v34, %v8602_v20  ;;  %v10121_v39 = vld [vmem:[#allocation32_spill] sm:$0xff] }
 0x2ae   : > { %4014 = vperm.xlu0 %6338, %v9010_v38   ;;  %6523 = vpow2.f32 %v2226_v21 }
 0x2af   : > { %v9022_v58 = vpop.permute.xlu1 %3909  ;;  %6525 = vpow2.f32 %v2242_v60  ;;  %v10109_v60 = vld [vmem:[#allocation108_spill] sm:$0xff] }
 0x2b0   : > { %10097 = vst [vmem:[#allocation27_spill] sm:$0xff] %v9022_v58  ;;  %v9024_v63 = vpop.eup %6507  ;;  %v9026_v33 = vpop.permute.xlu0 %3934  ;;  %4069 = vperm.xlu1 %6337, %v9018_v8   ;;  %6527 = vpow2.f32 %v2228_v32  ;;  %v2244_v20 = vsub.f32 %v10109_v60, %v8625_v23 }
 0x2b1   : > { %10098 = vst [vmem:[#allocation26_spill] sm:$0xff] %v9026_v33  ;;  %v9029_v25 = vpop.eup %6509  ;;  %5819 = vmatprep.mubr.f32.mxu0 %v9024_v63  ;;  %v10120_v33 = vld [vmem:[#allocation33_spill] sm:$0xff] }
 0x2b2   : > { %4094 = vperm.xlu0 %6338, %v9020_v29   ;;  %v9035_v31 = vpop.eup %6511  ;;  %5820 = vmatmul.mubr.f32.gmra.mrb[46].mxu0 %v9029_v25  ;;  %6529 = vpow2.f32 %v2244_v20  ;;  %v10118_v20 = vld [vmem:[#allocation30_spill] sm:$0xff] }
 0x2b3   : > { %10100 = vst [vmem:[#allocation29_spill] sm:$0xff] %v9035_v31  ;;  %v9038_v24 = vpop.eup %6513  ;;  %v9040_v35 = vpop.permute.xlu1 %3839 }
 0x2b4   : > { %10101 = vst [vmem:[#allocation28_spill] sm:$0xff] %v9038_v24  ;;  %10102 = vst [vmem:[#allocation96_spill] sm:$0xff] %v9040_v35  ;;  %v9042_v38 = vpop.eup %6515  ;;  %v9044_v1 = vpop.permute.xlu0 %3864  ;;  %3999 = vperm.xlu1 %6337, %v9035_v31  }
 0x2b5   : > { %10103 = vst [vmem:[#allocation107_spill] sm:$0xff] %v9044_v1  ;;  %v9047_v21 = vpop.eup %6517  ;;  %5875 = vmatprep.mubr.f32.mxu1 %v9042_v38  ;;  %v10119_v1 = vld [vmem:[#allocation31_spill] sm:$0xff] }
 0x2b6   : > { %4024 = vperm.xlu0 %6338, %v9038_v24   ;;  %5876 = vmatmul.mubr.f32.gmra.mrb[46].mxu1 %v9047_v21  ;;  %v9054_v29 = vpop.eup %6519 }
 0x2b7   : > { %10105 = vst [vmem:[#allocation98_spill] sm:$0xff] %v9054_v29  ;;  %v9056_v50 = vpop.permute.xlu1 %3919  ;;  %v9058_v19 = vpop.eup %6521 }
 0x2b8   : > { %10106 = vst [vmem:[#allocation101_spill] sm:$0xff] %v9056_v50  ;;  %10107 = vst [vmem:[#allocation104_spill] sm:$0xff] %v9058_v19  ;;  %v9060_v59 = vpop.permute.xlu0 %3944  ;;  %4079 = vperm.xlu1 %6337, %v9054_v29   ;;  %v9066_v34 = vpop.eup %6523 }
 0x2b9   : > { %10108 = vst [vmem:[#allocation116_spill] sm:$0xff] %v9060_v59  ;;  %10110 = vst [vmem:[#allocation108_spill] sm:$0xff] %v9066_v34  ;;  %v9071_v8 = vpop.eup %6525 }
 0x2ba   : > { %4104 = vperm.xlu0 %6338, %v9058_v19   ;;  %10112 = vst [vmem:[#allocation118_spill] sm:$0xff] %v9071_v8  ;;  %v9076_v32 = vpop.eup %6527 }
 0x2bb   : > { %v9068_v24 = vpop.permute.xlu1 %3849  ;;  %10114 = vst [vmem:[#allocation120_spill] sm:$0xff] %v9076_v32 }
 0x2bc   : > { %10111 = vst [vmem:[#allocation117_spill] sm:$0xff] %v9068_v24  ;;  %v2478_v31 = vpop.permute.xlu0 %2477  ;;  %4009 = vperm.xlu1 %6337, %v9066_v34   ;;  %v9081_v19 = vpop.eup %6529 }
 0x2bd   : > { %10116 = vst [vmem:[#allocation122_spill] sm:$0xff] %v9081_v19  ;;  %v2663_v36 = vsub.f32 %v10118_v20, %v2478_v31 }
 0x2bf   : > { %v9073_v5 = vpop.permute.xlu1 %3929 }
 0x2c0   : > { %10113 = vst [vmem:[#allocation119_spill] sm:$0xff] %v9073_v5  ;;  %v2558_v62 = vpop.permute.xlu0 %2557  ;;  %4089 = vperm.xlu1 %6337, %v9071_v8  }
 0x2c3   : > { %v9078_v23 = vpop.permute.xlu1 %3859 }
 0x2c4   : > { %10115 = vst [vmem:[#allocation121_spill] sm:$0xff] %v9078_v23  ;;  %v2488_v60 = vpop.permute.xlu0 %2487  ;;  %4019 = vperm.xlu1 %6337, %v9076_v32   ;;  %v2679_v23 = vsub.f32 %v10120_v33, %v2558_v62  ;;  %v10125_v62 = vld [vmem:[#allocation36_spill] sm:$0xff] }
 0x2c7   : > { %v9083_v29 = vpop.permute.xlu1 %3939 }
 0x2c8   : > { %10117 = vst [vmem:[#allocation123_spill] sm:$0xff] %v9083_v29  ;;  %v2568_v34 = vpop.permute.xlu0 %2567  ;;  %4099 = vperm.xlu1 %6337, %v9081_v19   ;;  %v10122_v29 = vld [vmem:[#allocation35_spill] sm:$0xff]  ;;  %v10123_v19 = vld [vmem:[#allocation34_spill] sm:$0xff] }
 0x2c9   : > { %v2665_v9 = vsub.f32 %v10122_v29, %v2488_v60 }
 0x2cb   : > { %v2473_v59 = vpop.permute.xlu1 %2472 }
 0x2cc   : > { %v2662_v5 = vsub.f32 %v10119_v1, %v2473_v59  ;;  %v2498_v8 = vpop.permute.xlu0 %2497  ;;  %v10124_v59 = vld [vmem:[#allocation37_spill] sm:$0xff] }
 0x2cd   : > { %v2681_v1 = vsub.f32 %v10124_v59, %v2568_v34  ;;  %v10130_v59 = vld [vmem:[#allocation40_spill] sm:$0xff] }
 0x2ce   : > { %6531 = vpow2.f32 %v2662_v5 }
 0x2cf   : > { %6533 = vpow2.f32 %v2663_v36  ;;  %v2553_v24 = vpop.permute.xlu1 %2552 }
 0x2d0   : > { %v2678_v32 = vsub.f32 %v10121_v39, %v2553_v24  ;;  %v2578_v50 = vpop.permute.xlu0 %2577 }
 0x2d2   : > { %6535 = vpow2.f32 %v2678_v32 }
 0x2d3   : > { %6537 = vpow2.f32 %v2679_v23  ;;  %v2483_v35 = vpop.permute.xlu1 %2482  ;;  %v10129_v23 = vld [vmem:[#allocation41_spill] sm:$0xff] }
 0x2d4   : > { %v2664_v6 = vsub.f32 %v10123_v19, %v2483_v35  ;;  %v2508_v31 = vpop.permute.xlu0 %2507  ;;  %v10126_v19 = vld [vmem:[#allocation39_spill] sm:$0xff]  ;;  %v10127_v35 = vld [vmem:[#allocation38_spill] sm:$0xff]  ;;  %v2683_v60 = vsub.f32 %v10129_v23, %v2578_v50  ;;  %v10135_v23 = vld [vmem:[#allocation45_spill] sm:$0xff] }
 0x2d6   : > { %6539 = vpow2.f32 %v2664_v6  ;;  %v2667_v6 = vsub.f32 %v10126_v19, %v2498_v8 }
 0x2d7   : > { %6541 = vpow2.f32 %v2665_v9  ;;  %v2563_v5 = vpop.permute.xlu1 %2562 }
 0x2d8   : > { %v9093_v36 = vpop.eup %6531  ;;  %v2680_v33 = vsub.f32 %v10125_v62, %v2563_v5  ;;  %v2588_v39 = vpop.permute.xlu0 %2587  ;;  %v10132_v62 = vld [vmem:[#allocation43_spill] sm:$0xff] }
 0x2d9   : > { %2888 = vadd.xlane.f32.xlu0 %v8671_v49  ;;  %v9097_v24 = vpop.eup %6533  ;;  %5910 = vmatprep.mubr.f32.mxu0 %v9093_v36 }
 0x2da   : > { %6543 = vpow2.f32 %v2680_v33  ;;  %5911 = vmatmul.mubr.f32.vlgmr.msra.gmra.mrb[48].mxu0 %v9097_v24  ;;  %v2669_v33 = vsub.f32 %v10132_v62, %v2508_v31 }
 0x2db   : > { %6545 = vpow2.f32 %v2681_v1  ;;  %v2493_v9 = vpop.permute.xlu1 %2492 }
 0x2dc   : > { %v9102_v29 = vpop.eup %6535  ;;  %v2666_v34 = vsub.f32 %v10127_v35, %v2493_v9  ;;  %v9106_v32 = vpop.permute.xlu0 %3954  ;;  %v10134_v35 = vld [vmem:[#allocation79_spill] sm:$0xff] }
 0x2dd   : > { %2918 = vadd.xlane.f32.xlu0 %v8678_v13  ;;  %10128 = vst [vmem:[#allocation30_spill] sm:$0xff] %v9106_v32  ;;  %v9108_v49 = vpop.eup %6537  ;;  %5966 = vmatprep.mubr.f32.mxu1 %v9102_v29  ;;  %v10147_v32 = vld [vmem:[#allocation48_spill] sm:$0xff] }
 0x2de   : > { %6547 = vpow2.f32 %v2666_v34  ;;  %5967 = vmatmul.mubr.f32.vlgmr.msra.gmra.mrb[48].mxu1 %v9108_v49 }
 0x2df   : > { %6549 = vpow2.f32 %v2667_v6  ;;  %v2573_v8 = vpop.permute.xlu1 %2572  ;;  %v10133_v6 = vld [vmem:[#allocation42_spill] sm:$0xff] }
 0x2e0   : > { %v9113_v20 = vpop.eup %6539  ;;  %v2682_v1 = vsub.f32 %v10130_v59, %v2573_v8  ;;  %v9117_v13 = vpop.permute.xlu0 %4034  ;;  %v10136_v59 = vld [vmem:[#allocation44_spill] sm:$0xff] }
 0x2e1   : > { %2890 = vadd.xlane.f32.xlu0 %v8704_v28  ;;  %10131 = vst [vmem:[#allocation31_spill] sm:$0xff] %v9117_v13  ;;  %v9119_v5 = vpop.eup %6541  ;;  %5913 = vmatprep.mubr.f32.mxu0 %v9113_v20 }
 0x2e2   : > { %6551 = vpow2.f32 %v2682_v1  ;;  %5914 = vmatmul.mubr.f32.gmra.mrb[50].mxu0 %v9119_v5 }
 0x2e3   : > { %6553 = vpow2.f32 %v2683_v60  ;;  %v2503_v50 = vpop.permute.xlu1 %2502  ;;  %v2685_v60 = vsub.f32 %v10135_v23, %v2588_v39 }
 0x2e4   : > { %v9124_v19 = vpop.eup %6543  ;;  %v2668_v9 = vsub.f32 %v10133_v6, %v2503_v50  ;;  %v2518_v28 = vpop.permute.xlu0 %2517 }
 0x2e5   : > { %2922 = vadd.xlane.f32.xlu0 %v10134_v35  ;;  %v9128_v34 = vpop.eup %6545  ;;  %5969 = vmatprep.mubr.f32.mxu1 %v9124_v19 }
 0x2e6   : > { %6555 = vpow2.f32 %v2668_v9  ;;  %5970 = vmatmul.mubr.f32.gmra.mrb[50].mxu1 %v9128_v34  ;;  %v10139_v9 = vld [vmem:[#allocation68_spill] sm:$0xff] }
 0x2e7   : > { %6557 = vpow2.f32 %v2669_v33  ;;  %v2583_v8 = vpop.permute.xlu1 %2582 }
 0x2e8   : > { %v9133_v31 = vpop.eup %6547  ;;  %v2684_v1 = vsub.f32 %v10136_v59, %v2583_v8  ;;  %v2598_v62 = vpop.permute.xlu0 %2597  ;;  %v10142_v8 = vld [vmem:[#allocation115_spill] sm:$0xff] }
 0x2e9   : > { %2894 = vadd.xlane.f32.xlu0 %v8755_v42  ;;  %v9137_v50 = vpop.eup %6549  ;;  %5916 = vmatprep.mubr.f32.mxu0 %v9133_v31  ;;  %v10143_v59 = vld [vmem:[#allocation47_spill] sm:$0xff] }
 0x2ea   : > { %6559 = vpow2.f32 %v2684_v1  ;;  %5917 = vmatmul.mubr.f32.gmra.mrb[52].mxu0 %v9137_v50  ;;  %v2671_v1 = vsub.f32 %v10143_v59, %v2518_v28 }
 0x2eb   : > { %6561 = vpow2.f32 %v2685_v60  ;;  %v9141_v6 = vpop.permute.xlu1 %3949 }
 0x2ec   : > { %10137 = vst [vmem:[#allocation33_spill] sm:$0xff] %v9141_v6  ;;  %v9143_v33 = vpop.eup %6551  ;;  %2920 = vadd.xlane.f32.xlu1 %v10139_v9  ;;  %v10145_v6 = vld [vmem:[#allocation7_spill] sm:$0xff] }
 0x2ed   : > { %2926 = vadd.xlane.f32.xlu0 %v8775_v48  ;;  %v9146_v39 = vpop.permute.xlu0 %3964  ;;  %v9149_v42 = vpop.eup %6553  ;;  %5972 = vmatprep.mubr.f32.mxu1 %v9143_v33 }
 0x2ee   : > { %10138 = vst [vmem:[#allocation32_spill] sm:$0xff] %v9146_v39  ;;  %5973 = vmatmul.mubr.f32.gmra.mrb[52].mxu1 %v9149_v42 }
 0x2ef   : > { %v9153_v35 = vpop.permute.xlu1 %4029 }
 0x2f0   : > { %10140 = vst [vmem:[#allocation35_spill] sm:$0xff] %v9153_v35  ;;  %v9155_v23 = vpop.eup %6555  ;;  %2886 = vadd.xlane.f32.xlu1 %v10142_v8  ;;  %v10144_v35 = vld [vmem:[#allocation46_spill] sm:$0xff]  ;;  %v10146_v8 = vld [vmem:[#allocation49_spill] sm:$0xff] }
 0x2f1   : > { %2898 = vadd.xlane.f32.xlu0 %v8806_v2  ;;  %v9158_v60 = vpop.permute.xlu0 %4044  ;;  %v9161_v48 = vpop.eup %6557  ;;  %5919 = vmatprep.mubr.f32.mxu0 %v9155_v23  ;;  %v2687_v28 = vsub.f32 %v10146_v8, %v2598_v62  ;;  %v10151_v8 = vld [vmem:[#allocation50_spill] sm:$0xff] }
 0x2f2   : > { %10141 = vst [vmem:[#allocation34_spill] sm:$0xff] %v9158_v60  ;;  %5920 = vmatmul.mubr.f32.gmra.mrb[54].mxu0 %v9161_v48 }
 0x2f3   : > { %v2513_v9 = vpop.permute.xlu1 %2512 }
 0x2f4   : > { %v9166_v39 = vpop.eup %6559  ;;  %v2670_v13 = vsub.f32 %v10144_v35, %v2513_v9  ;;  %2892 = vadd.xlane.f32.xlu1 %v10145_v6 }
 0x2f5   : > { %2930 = vadd.xlane.f32.xlu0 %v8823_v53  ;;  %v2528_v2 = vpop.permute.xlu0 %2527  ;;  %v9171_v60 = vpop.eup %6561  ;;  %5975 = vmatprep.mubr.f32.mxu1 %v9166_v39  ;;  %v10148_v53 = vld [vmem:[#allocation8_spill] sm:$0xff] }
 0x2f6   : > { %6563 = vpow2.f32 %v2670_v13  ;;  %5976 = vmatmul.mubr.f32.gmra.mrb[54].mxu1 %v9171_v60 }
 0x2f7   : > { %6565 = vpow2.f32 %v2671_v1  ;;  %v2593_v59 = vpop.permute.xlu1 %2592 }
 0x2f8   : > { %v2686_v58 = vsub.f32 %v10147_v32, %v2593_v59  ;;  %2924 = vadd.xlane.f32.xlu1 %v10148_v53  ;;  %v10152_v59 = vld [vmem:[#allocation53_spill] sm:$0xff] }
 0x2f9   : > { %2902 = vadd.xlane.f32.xlu0 %v8858_v57  ;;  %v2608_v35 = vpop.permute.xlu0 %2607 }
 0x2fa   : > { %6567 = vpow2.f32 %v2686_v58 }
 0x2fb   : > { %6569 = vpow2.f32 %v2687_v28  ;;  %v9179_v6 = vpop.permute.xlu1 %3959 }
 0x2fc   : > { %2896 = vadd.xlane.f32.xlu1 %v8761_v47 }
 0x2fd   : > { %2934 = vadd.xlane.f32.xlu0 %v8874_v4  ;;  %v9182_v13 = vpop.permute.xlu0 %3974  ;;  %v10150_v4 = vld [vmem:[#allocation51_spill] sm:$0xff] }
 0x2fe   : > { %v2673_v32 = vsub.f32 %v10150_v4, %v2528_v2  ;;  %v2689_v2 = vsub.f32 %v10152_v59, %v2608_v35  ;;  %v10153_v4 = vld [vmem:[#allocation52_spill] sm:$0xff]  ;;  %v10155_v35 = vld [vmem:[#allocation55_spill] sm:$0xff] }
 0x2ff   : > { %v9185_v1 = vpop.permute.xlu1 %4039 }
 0x300   : > { %v9187_v62 = vpop.eup %6563  ;;  %2928 = vadd.xlane.f32.xlu1 %v8781_v45 }
 0x301   : > { %2906 = vadd.xlane.f32.xlu0 %v8910_v51  ;;  %v9190_v57 = vpop.permute.xlu0 %4054  ;;  %v9193_v58 = vpop.eup %6565  ;;  %5922 = vmatprep.mubr.f32.mxu0 %v9187_v62 }
 0x302   : > { %10149 = vst [vmem:[#allocation37_spill] sm:$0xff] %v9190_v57  ;;  %5923 = vmatmul.mubr.f32.gmra.mrb[56].mxu0 %v9193_v58 }
 0x303   : > { %v2523_v9 = vpop.permute.xlu1 %2522 }
 0x304   : > { %v9198_v47 = vpop.eup %6567  ;;  %v2672_v28 = vsub.f32 %v10151_v8, %v2523_v9  ;;  %2900 = vadd.xlane.f32.xlu1 %v8813_v40  ;;  %v10156_v8 = vld [vmem:[#allocation54_spill] sm:$0xff] }
 0x305   : > { %2938 = vadd.xlane.f32.xlu0 %v8925_v12  ;;  %v9203_v51 = vpop.eup %6569  ;;  %5978 = vmatprep.mubr.f32.mxu1 %v9198_v47  ;;  %v2538_v45 = vpop.permute.xlu0 %2537 }
 0x306   : > { %6571 = vpow2.f32 %v2672_v28  ;;  %5979 = vmatmul.mubr.f32.gmra.mrb[56].mxu1 %v9203_v51 }
 0x307   : > { %6573 = vpow2.f32 %v2673_v32  ;;  %v2603_v53 = vpop.permute.xlu1 %2602 }
 0x308   : > { %v2688_v57 = vsub.f32 %v10153_v4, %v2603_v53  ;;  %2932 = vadd.xlane.f32.xlu1 %v8827_v7  ;;  %v10159_v53 = vld [vmem:[#allocation56_spill] sm:$0xff] }
 0x309   : > { %2910 = vadd.xlane.f32.xlu0 %v8962_v14  ;;  %v2618_v12 = vpop.permute.xlu0 %2617 }
 0x30a   : > { %6575 = vpow2.f32 %v2688_v57 }
 0x30b   : > { %6577 = vpow2.f32 %v2689_v2  ;;  %v9211_v40 = vpop.permute.xlu1 %3969 }
 0x30c   : > { %2904 = vadd.xlane.f32.xlu1 %v8865_v0 }
 0x30d   : > { %2942 = vadd.xlane.f32.xlu0 %v8979_v37  ;;  %v9224_v7 = vpop.permute.xlu0 %3984  ;;  %v2675_v37 = vsub.f32 %v10155_v35, %v2538_v45 }
 0x30e   : > { %10154 = vst [vmem:[#allocation36_spill] sm:$0xff] %v9224_v7 }
 0x30f   : > { %v9215_v9 = vpop.permute.xlu1 %4049 }
 0x310   : > { %v9217_v32 = vpop.eup %6571  ;;  %2936 = vadd.xlane.f32.xlu1 %v8878_v41 }
 0x311   : > { %2914 = vadd.xlane.f32.xlu0 %v9024_v63  ;;  %v9221_v14 = vpop.eup %6573  ;;  %5925 = vmatprep.mubr.f32.mxu0 %v9217_v32  ;;  %v10157_v63 = vld [vmem:[#allocation57_spill] sm:$0xff]  ;;  %v9238_v2 = vpop.permute.xlu0 %4064 }
 0x312   : > { %5926 = vmatmul.mubr.f32.gmra.mrb[58].mxu0 %v9221_v14  ;;  %v2691_v59 = vsub.f32 %v10157_v63, %v2618_v12  ;;  %10158 = vst [vmem:[#allocation39_spill] sm:$0xff] %v9238_v2 }
 0x313   : > { %v2533_v57 = vpop.permute.xlu1 %2532 }
 0x314   : > { %v9228_v0 = vpop.eup %6575  ;;  %v2674_v28 = vsub.f32 %v10156_v8, %v2533_v57  ;;  %2908 = vadd.xlane.f32.xlu1 %v8917_v17  ;;  %v3740_v57 = vld [vmem:[#allocation5 + $0x88] sm:$0xff] }
 0x315   : > { %2946 = vadd.xlane.f32.xlu0 %v9042_v38  ;;  %v9233_v41 = vpop.eup %6577  ;;  %5981 = vmatprep.mubr.f32.mxu1 %v9228_v0  ;;  %v2548_v38 = vpop.permute.xlu0 %2547  ;;  %v10162_v8 = vld [vmem:[#allocation59_spill] sm:$0xff] }
 0x316   : > { %6579 = vpow2.f32 %v2674_v28  ;;  %5982 = vmatmul.mubr.f32.gmra.mrb[58].mxu1 %v9233_v41  ;;  %v2677_v28 = vsub.f32 %v10162_v8, %v2548_v38 }
 0x317   : > { %6581 = vpow2.f32 %v2675_v37  ;;  %v2613_v45 = vpop.permute.xlu1 %2612  ;;  %v3724_v37 = vld [vmem:[#allocation5 + $0x8] sm:$0xff] }
 0x318   : > { %v2690_v4 = vsub.f32 %v10159_v53, %v2613_v45  ;;  %2940 = vadd.xlane.f32.xlu1 %v8929_v54  ;;  %v3723_v54 = vld [vmem:[#allocation5] sm:$0xff]  ;;  %v10163_v45 = vld [vmem:[#allocation72_spill] sm:$0xff] }
 0x319   : > { %2950 = vadd.xlane.f32.xlu0 %v9093_v36  ;;  %v2628_v53 = vpop.permute.xlu0 %2627 }
 0x31a   : > { %6583 = vpow2.f32 %v2690_v4 }
 0x31b   : > { %6585 = vpow2.f32 %v2691_v59  ;;  %v9243_v17 = vpop.permute.xlu1 %3979 }
 0x31c   : > { %10160 = vst [vmem:[#allocation38_spill] sm:$0xff] %v9243_v17  ;;  %2912 = vadd.xlane.f32.xlu1 %v8969_v18  ;;  %v4108_v18 = vmul.f32 %v8790_v46, %v3724_v37  ;;  %v10165_v17 = vld [vmem:[#allocation9_spill] sm:$0xff] }
 0x31d   : > { %2982 = vadd.xlane.f32.xlu0 %v9102_v29  ;;  %v3739_v29 = vld [vmem:[#allocation5 + $0x80] sm:$0xff]  ;;  %v4124_v46 = vmul.f32 %v10165_v17, %v3740_v57 }
 0x31e   : > { %v4123_v38 = vmul.f32 %v8804_v26, %v3739_v29  ;;  %v3726_v26 = vld [vmem:[#allocation5 + $0x18] sm:$0xff] }
 0x31f   : > { %v9247_v35 = vpop.permute.xlu1 %4059  ;;  %v3742_v29 = vld [vmem:[#allocation5 + $0x98] sm:$0xff] }
 0x320   : > { %10161 = vst [vmem:[#allocation41_spill] sm:$0xff] %v9247_v35  ;;  %v9249_v12 = vpop.eup %6579  ;;  %2944 = vadd.xlane.f32.xlu1 %v8987_v30  ;;  %v10164_v30 = vld [vmem:[#allocation58_spill] sm:$0xff] }
 0x321   : > { %2954 = vadd.xlane.f32.xlu0 %v9113_v20  ;;  %v9253_v36 = vpop.eup %6581  ;;  %5928 = vmatprep.mubr.f32.mxu0 %v9249_v12  ;;  %v4107_v20 = vmul.f32 %v10163_v45, %v3723_v54 }
 0x322   : > { %5929 = vmatmul.mubr.f32.gmra.mrb[60].mxu0 %v9253_v36 }
 0x323   : > { %v2543_v63 = vpop.permute.xlu1 %2542 }
 0x324   : > { %v9259_v59 = vpop.eup %6583  ;;  %v2676_v4 = vsub.f32 %v10164_v30, %v2543_v63  ;;  %v5800_v35 = vpop.f32.mrb[32].mxu0  ;;  %2916 = vadd.xlane.f32.xlu1 %v9029_v25 }
 0x325   : > { %2986 = vadd.xlane.f32.xlu0 %v9124_v19  ;;  %v9265_v2 = vpop.eup %6585  ;;  %v4172_v37 = vadd.f32 %v5800_v35, %v4108_v18  ;;  %v3209_v7 = vpop.f32.mrb[33].mxu0  ;;  %5984 = vmatprep.mubr.f32.mxu1 %v9259_v59  ;;  %v10166_v19 = vld [vmem:[#allocation61_spill] sm:$0xff]  ;;  %v10167_v35 = vld [vmem:[#allocation60_spill] sm:$0xff]  ;;  %v4110_v18 = vmul.f32 %v8794_v61, %v3726_v26 }
 0x326   : > { %6587 = vpow2.f32 %v2676_v4  ;;  %v4171_v54 = vadd.f32 %v4107_v20, %v3209_v7  ;;  %v5856_v8 = vpop.f32.mrb[32].mxu1  ;;  %5985 = vmatmul.mubr.f32.gmra.mrb[60].mxu1 %v9265_v2  ;;  %v2693_v63 = vsub.f32 %v10166_v19, %v2628_v53  ;;  %v3725_v7 = vld [vmem:[#allocation5 + $0x10] sm:$0xff] }
 0x327   : > { %6589 = vpow2.f32 %v2677_v28  ;;  %4236 = vst.msk [vmem:[#allocation5 + $0x8] sm:$0xff] %vm439_vm0, %v4172_v37  ;;  %v4188_v25 = vadd.f32 %v5856_v8, %v4124_v46  ;;  %v3354_v45 = vpop.f32.mrb[33].mxu1  ;;  %v2623_v30 = vpop.permute.xlu1 %2622  ;;  %v4109_v28 = vmul.f32 %v8842_v10, %v3725_v7  ;;  %v3741_v20 = vld [vmem:[#allocation5 + $0x90] sm:$0xff]  ;;  %v4126_v37 = vmul.f32 %v8810_v3, %v3742_v29 }
 0x328   : > { %4235 = vst.msk [vmem:[#allocation5] sm:$0xff] %vm439_vm0, %v4171_v54  ;;  %v4187_v17 = vadd.f32 %v4123_v38, %v3354_v45  ;;  %v2692_v57 = vsub.f32 %v10167_v35, %v2623_v30  ;;  %2948 = vadd.xlane.f32.xlu1 %v9047_v21  ;;  %v9305_v8 = vpop.permute.xlu0 %3994 }
 0x329   : > { %2958 = vadd.xlane.f32.xlu0 %v9133_v31  ;;  %4252 = vst.msk [vmem:[#allocation5 + $0x88] sm:$0xff] %vm439_vm0, %v4188_v25  ;;  %v3743_v25 = vld [vmem:[#allocation5 + $0xa0] sm:$0xff] }
 0x32a   : > { %4251 = vst.msk [vmem:[#allocation5 + $0x80] sm:$0xff] %vm439_vm0, %v4187_v17  ;;  %6591 = vpow2.f32 %v2692_v57 }
 0x32b   : > { %6593 = vpow2.f32 %v2693_v63 }
 0x32c   : > { %2952 = vadd.xlane.f32.xlu1 %v9097_v24  ;;  %v4125_v24 = vmul.f32 %v8856_v56, %v3741_v20  ;;  %v3728_v56 = vld [vmem:[#allocation5 + $0x28] sm:$0xff] }
 0x32d   : > { %2990 = vadd.xlane.f32.xlu0 %v9143_v33  ;;  %v5803_v31 = vpop.f32.mrb[34].mxu0  ;;  %v4112_v19 = vmul.f32 %v8846_v27, %v3728_v56  ;;  %v4127_v27 = vmul.f32 %v8908_v15, %v3743_v25  ;;  %v10168_v15 = vld [vmem:[#allocation14_spill] sm:$0xff] }
 0x32e   : > { %v4174_v21 = vadd.f32 %v5803_v31, %v4110_v18  ;;  %v3219_v53 = vpop.f32.mrb[35].mxu0  ;;  %v3746_v18 = vld [vmem:[#allocation5 + $0xb8] sm:$0xff]  ;;  %v3745_v31 = vld [vmem:[#allocation5 + $0xb0] sm:$0xff] }
 0x32f   : > { %v4173_v4 = vadd.f32 %v4109_v28, %v3219_v53 }
 0x330   : > { %v9283_v46 = vpop.eup %6587  ;;  %4238 = vst.msk [vmem:[#allocation5 + $0x18] sm:$0xff] %vm439_vm0, %v4174_v21  ;;  %2984 = vadd.xlane.f32.xlu1 %v9108_v49  ;;  %v10169_v21 = vld [vmem:[#allocation81_spill] sm:$0xff] }
 0x331   : > { %2962 = vadd.xlane.f32.xlu0 %v9155_v23  ;;  %v9289_v61 = vpop.eup %6589  ;;  %4237 = vst.msk [vmem:[#allocation5 + $0x10] sm:$0xff] %vm439_vm0, %v4173_v4  ;;  %v5859_v10 = vpop.f32.mrb[34].mxu1  ;;  %5931 = vmatprep.mubr.f32.mxu0 %v9283_v46  ;;  %v3727_v23 = vld [vmem:[#allocation5 + $0x20] sm:$0xff]  ;;  %v4130_v53 = vmul.f32 %v10169_v21, %v3746_v18 }
 0x332   : > { %v4190_v33 = vadd.f32 %v5859_v10, %v4126_v37  ;;  %v3364_v38 = vpop.f32.mrb[35].mxu1  ;;  %5932 = vmatmul.mubr.f32.gmra.mrb[62].mxu0 %v9289_v61  ;;  %v2774_v18 = vld [vmem:[#allocation4 + $0x80] sm:$0xff] }
 0x333   : > { %v4189_v3 = vadd.f32 %v4125_v24, %v3364_v38 }
 0x334   : > { %v9295_v54 = vpop.eup %6591  ;;  %4254 = vst.msk [vmem:[#allocation5 + $0x98] sm:$0xff] %vm439_vm0, %v4190_v33  ;;  %2956 = vadd.xlane.f32.xlu1 %v9119_v5  ;;  %v4111_v5 = vmul.f32 %v8892_v22, %v3727_v23  ;;  %v3731_v33 = vld [vmem:[#allocation5 + $0x40] sm:$0xff] }
 0x335   : > { %2994 = vadd.xlane.f32.xlu0 %v9166_v39  ;;  %v9300_v49 = vpop.eup %6593  ;;  %4253 = vst.msk [vmem:[#allocation5 + $0x90] sm:$0xff] %vm439_vm0, %v4189_v3  ;;  %5987 = vmatprep.mubr.f32.mxu1 %v9295_v54  ;;  %v3744_v39 = vld [vmem:[#allocation5 + $0xa8] sm:$0xff]  ;;  %v3747_v23 = vld [vmem:[#allocation5 + $0xc0] sm:$0xff] }
 0x336   : > { %5988 = vmatmul.mubr.f32.gmra.mrb[62].mxu1 %v9300_v49  ;;  %v4128_v35 = vmul.f32 %v8862_v52, %v3744_v39  ;;  %v3730_v52 = vld [vmem:[#allocation5 + $0x38] sm:$0xff] }
 0x337   : > { %v4114_v7 = vmul.f32 %v10168_v15, %v3730_v52  ;;  %v3750_v52 = vld [vmem:[#allocation5 + $0xd8] sm:$0xff] }
 0x338   : > { %2988 = vadd.xlane.f32.xlu1 %v9128_v34 }
 0x339   : > { %2966 = vadd.xlane.f32.xlu0 %v9187_v62  ;;  %v5806_v63 = vpop.f32.mrb[36].mxu0  ;;  %v9316_v62 = vpop.permute.xlu0 %4074 }
 0x33a   : > { %v4176_v45 = vadd.f32 %v5806_v63, %v4112_v19  ;;  %v3229_v30 = vpop.f32.mrb[37].mxu0 }
 0x33b   : > { %v4175_v17 = vadd.f32 %v4111_v5, %v3229_v30 }
 0x33c   : > { %4240 = vst.msk [vmem:[#allocation5 + $0x28] sm:$0xff] %vm439_vm0, %v4176_v45  ;;  %2960 = vadd.xlane.f32.xlu1 %v9137_v50  ;;  %v3729_v50 = vld [vmem:[#allocation5 + $0x30] sm:$0xff] }
 0x33d   : > { %2998 = vadd.xlane.f32.xlu0 %v9198_v47  ;;  %4239 = vst.msk [vmem:[#allocation5 + $0x20] sm:$0xff] %vm439_vm0, %v4175_v17  ;;  %v5862_v22 = vpop.f32.mrb[36].mxu1  ;;  %v9323_v47 = vpop.permute.xlu0 %4004  ;;  %v4113_v29 = vmul.f32 %v8944_v43, %v3729_v50  ;;  %v2759_v17 = vld [vmem:[#allocation4 + $0x8] sm:$0xff]  ;;  %v10173_v50 = vld [vmem:[#allocation96_spill] sm:$0xff] }
 0x33e   : > { %v4192_v34 = vadd.f32 %v5862_v22, %v4128_v35  ;;  %v3374_v57 = vpop.f32.mrb[37].mxu1  ;;  %v3733_v35 = vld [vmem:[#allocation5 + $0x50] sm:$0xff]  ;;  %v10171_v22 = vld [vmem:[#allocation86_spill] sm:$0xff] }
 0x33f   : > { %v4191_v26 = vadd.f32 %v4127_v27, %v3374_v57  ;;  %v10172_v57 = vld [vmem:[#allocation64_spill] sm:$0xff] }
 0x340   : > { %4256 = vst.msk [vmem:[#allocation5 + $0xa8] sm:$0xff] %vm439_vm0, %v4192_v34  ;;  %2992 = vadd.xlane.f32.xlu1 %v9149_v42 }
 0x341   : > { %2970 = vadd.xlane.f32.xlu0 %v9217_v32  ;;  %4255 = vst.msk [vmem:[#allocation5 + $0xa0] sm:$0xff] %vm439_vm0, %v4191_v26  ;;  %v9334_v4 = vpop.permute.xlu0 %4084  ;;  %v2823_v26 = vmul.f32 %v10172_v57, %v2759_v17  ;;  %v10181_v57 = vld [vmem:[#allocation117_spill] sm:$0xff] }
 0x344   : > { %2964 = vadd.xlane.f32.xlu1 %v9161_v48  ;;  %v9337_v48 = vpop.permute.xlu1 %3989 }
 0x345   : > { %3002 = vadd.xlane.f32.xlu0 %v9228_v0  ;;  %v4129_v0 = vmul.f32 %v8960_v44, %v3745_v31 }
 0x346   : > { %v5809_v28 = vpop.f32.mrb[38].mxu0 }
 0x347   : > { %v4178_v32 = vadd.f32 %v5809_v28, %v4114_v7  ;;  %v3239_v20 = vpop.f32.mrb[39].mxu0 }
 0x348   : > { %v4177_v42 = vadd.f32 %v4113_v29, %v3239_v20  ;;  %2996 = vadd.xlane.f32.xlu1 %v9171_v60  ;;  %v9343_v60 = vpop.permute.xlu0 %4014  ;;  %v9345_v44 = vpop.permute.xlu1 %4069  ;;  %v10174_v20 = vld [vmem:[#allocation88_spill] sm:$0xff] }
 0x349   : > { %4242 = vst.msk [vmem:[#allocation5 + $0x38] sm:$0xff] %vm439_vm0, %v4178_v32  ;;  %2974 = vadd.xlane.f32.xlu0 %v9249_v12  ;;  %v5865_v43 = vpop.f32.mrb[38].mxu1  ;;  %v3732_v12 = vld [vmem:[#allocation5 + $0x48] sm:$0xff] }
 0x34a   : > { %4241 = vst.msk [vmem:[#allocation5 + $0x30] sm:$0xff] %vm439_vm0, %v4177_v42  ;;  %v4194_v37 = vadd.f32 %v5865_v43, %v4130_v53  ;;  %v3384_v24 = vpop.f32.mrb[39].mxu1  ;;  %v4116_v38 = vmul.f32 %v8948_v16, %v3732_v12  ;;  %v10170_v16 = vld [vmem:[#allocation27_spill] sm:$0xff]  ;;  %v4134_v42 = vmul.f32 %v10174_v20, %v3750_v52 }
 0x34b   : > { %v4193_v10 = vadd.f32 %v4129_v0, %v3384_v24  ;;  %v10176_v0 = vld [vmem:[#allocation101_spill] sm:$0xff] }
 0x34c   : > { %4258 = vst.msk [vmem:[#allocation5 + $0xb8] sm:$0xff] %vm439_vm0, %v4194_v37  ;;  %2968 = vadd.xlane.f32.xlu1 %v9193_v58  ;;  %v4115_v58 = vmul.f32 %v9008_v55, %v3731_v33  ;;  %v9353_v3 = vpop.permute.xlu0 %4094  ;;  %v9355_v19 = vpop.permute.xlu1 %3999 }
 0x34d   : > { %3006 = vadd.xlane.f32.xlu0 %v9259_v59  ;;  %4257 = vst.msk [vmem:[#allocation5 + $0xb0] sm:$0xff] %vm439_vm0, %v4193_v10  ;;  %v3748_v59 = vld [vmem:[#allocation5 + $0xc8] sm:$0xff]  ;;  %v2760_v10 = vld [vmem:[#allocation4 + $0x10] sm:$0xff] }
 0x34e   : > { %v4132_v5 = vmul.f32 %v8966_v11, %v3748_v59  ;;  %v3734_v11 = vld [vmem:[#allocation5 + $0x58] sm:$0xff] }
 0x34f   : > { %v4118_v34 = vmul.f32 %v10171_v22, %v3734_v11  ;;  %v10179_v11 = vld [vmem:[#allocation25_spill] sm:$0xff]  ;;  %v10180_v22 = vld [vmem:[#allocation82_spill] sm:$0xff] }
 0x350   : > { %3000 = vadd.xlane.f32.xlu1 %v9203_v51  ;;  %v9362_v25 = vpop.permute.xlu0 %4024  ;;  %v9364_v30 = vpop.permute.xlu1 %4079 }
 0x351   : > { %2978 = vadd.xlane.f32.xlu0 %v9283_v46 }
 0x354   : > { %2972 = vadd.xlane.f32.xlu1 %v9221_v14  ;;  %v4131_v14 = vmul.f32 %v10170_v16, %v3747_v23  ;;  %v9372_v27 = vpop.permute.xlu1 %4009  ;;  %v2776_v23 = vld [vmem:[#allocation4 + $0x90] sm:$0xff] }
 0x355   : > { %3010 = vadd.xlane.f32.xlu0 %v9295_v54  ;;  %v5812_v56 = vpop.f32.mrb[40].mxu0 }
 0x356   : > { %v4180_v46 = vadd.f32 %v5812_v56, %v4116_v38  ;;  %v3249_v39 = vpop.f32.mrb[41].mxu0 }
 0x357   : > { %v4179_v51 = vadd.f32 %v4115_v58, %v3249_v39  ;;  %v10177_v58 = vld [vmem:[#allocation70_spill] sm:$0xff] }
 0x358   : > { %4244 = vst.msk [vmem:[#allocation5 + $0x48] sm:$0xff] %vm439_vm0, %v4180_v46  ;;  %3004 = vadd.xlane.f32.xlu1 %v9233_v41  ;;  %v9370_v41 = vpop.permute.xlu0 %4104  ;;  %v9379_v21 = vpop.permute.xlu1 %4089  ;;  %v2824_v56 = vmul.f32 %v10177_v58, %v2760_v10  ;;  %v2758_v10 = vld [vmem:[#allocation4] sm:$0xff] }
 0x359   : > { %4243 = vst.msk [vmem:[#allocation5 + $0x40] sm:$0xff] %vm439_vm0, %v4179_v51  ;;  %v5868_v55 = vpop.f32.mrb[40].mxu1 }
 0x35a   : > { %v4196_v54 = vadd.f32 %v5868_v55, %v4132_v5  ;;  %v3394_v63 = vpop.f32.mrb[41].mxu1  ;;  %v10178_v5 = vld [vmem:[#allocation73_spill] sm:$0xff] }
 0x35b   : > { %v4195_v45 = vadd.f32 %v4131_v14, %v3394_v63  ;;  %v2840_v16 = vmul.f32 %v10178_v5, %v2776_v23  ;;  %v3736_v14 = vld [vmem:[#allocation5 + $0x68] sm:$0xff]  ;;  %v3735_v63 = vld [vmem:[#allocation5 + $0x60] sm:$0xff] }
 0x35c   : > { %4260 = vst.msk [vmem:[#allocation5 + $0xc8] sm:$0xff] %vm439_vm0, %v4196_v54  ;;  %2976 = vadd.xlane.f32.xlu1 %v9253_v36  ;;  %v4117_v36 = vmul.f32 %v10173_v50, %v3733_v35  ;;  %v9391_v46 = vpop.permute.xlu1 %4019  ;;  %v2762_v54 = vld [vmem:[#allocation4 + $0x20] sm:$0xff]  ;;  %v4120_v17 = vmul.f32 %v10179_v11, %v3736_v14 }
 0x35d   : > { %4259 = vst.msk [vmem:[#allocation5 + $0xc0] sm:$0xff] %vm439_vm0, %v4195_v45 }
 0x360   : > { %3008 = vadd.xlane.f32.xlu1 %v9265_v2  ;;  %v3749_v2 = vld [vmem:[#allocation5 + $0xd0] sm:$0xff]  ;;  %v9396_v35 = vpop.permute.xlu1 %4099 }
 0x361   : > { %v4133_v43 = vmul.f32 %v10176_v0, %v3749_v2 }
 0x364   : > { %2980 = vadd.xlane.f32.xlu1 %v9289_v61  ;;  %v10175_v61 = vld [vmem:[#allocation66_spill] sm:$0xff] }
 0x365   : > { %v5815_v7 = vpop.f32.mrb[42].mxu0  ;;  %v2838_v53 = vmul.f32 %v10175_v61, %v2774_v18 }
 0x366   : > { %v2889_v15 = vpop.xlane.xlu0 %2888  ;;  %v4182_v28 = vadd.f32 %v5815_v7, %v4118_v34  ;;  %v3259_v31 = vpop.f32.mrb[43].mxu0  ;;  %v2826_v34 = vmul.f32 %v10180_v22, %v2762_v54  ;;  %v3752_v7 = vld [vmem:[#allocation5 + $0xe8] sm:$0xff]  ;;  %v10188_v22 = vld [vmem:[#allocation93_spill] sm:$0xff] }
 0x367   : > { %v3015_v29 = vadd.f32 %v2889_v15, %v2823_v26  ;;  %v4181_v32 = vadd.f32 %v4117_v36, %v3259_v31  ;;  %v4119_v26 = vmul.f32 %v10181_v57, %v3735_v63  ;;  %v2778_v36 = vld [vmem:[#allocation4 + $0xa0] sm:$0xff]  ;;  %v2775_v15 = vld [vmem:[#allocation4 + $0x88] sm:$0xff]  ;;  %v2780_v63 = vld [vmem:[#allocation4 + $0xb0] sm:$0xff] }
 0x368   : > { %4246 = vst.msk [vmem:[#allocation5 + $0x58] sm:$0xff] %vm439_vm0, %v4182_v28  ;;  %3012 = vadd.xlane.f32.xlu1 %v9300_v49  ;;  %v3751_v28 = vld [vmem:[#allocation5 + $0xe0] sm:$0xff]  ;;  %v10189_v57 = vld [vmem:[#allocation65_spill] sm:$0xff] }
 0x369   : > { %3080 = vst.msk [vmem:[#allocation4 + $0x8] sm:$0xff] %vm504_vm3, %v3015_v29  ;;  %v5871_v24 = vpop.f32.mrb[42].mxu1 }
 0x36a   : > { %4245 = vst.msk [vmem:[#allocation5 + $0x50] sm:$0xff] %vm439_vm0, %v4181_v32  ;;  %v2919_v37 = vpop.xlane.xlu0 %2918  ;;  %v4198_v33 = vadd.f32 %v5871_v24, %v4134_v42  ;;  %v3404_v38 = vpop.f32.mrb[43].mxu1  ;;  %v10182_v32 = vld [vmem:[#allocation84_spill] sm:$0xff]  ;;  %v10183_v42 = vld [vmem:[#allocation62_spill] sm:$0xff] }
 0x36b   : > { %v3030_v12 = vadd.f32 %v2919_v37, %v2838_v53  ;;  %v4197_v59 = vadd.f32 %v4133_v43, %v3404_v38  ;;  %v2842_v20 = vmul.f32 %v10182_v32, %v2778_v36  ;;  %v2839_v61 = vmul.f32 %v10183_v42, %v2775_v15  ;;  %v10184_v53 = vld [vmem:[#allocation26_spill] sm:$0xff]  ;;  %v2764_v24 = vld [vmem:[#allocation4 + $0x30] sm:$0xff]  ;;  %v2777_v15 = vld [vmem:[#allocation4 + $0x98] sm:$0xff] }
 0x36c   : > { %4262 = vst.msk [vmem:[#allocation5 + $0xd8] sm:$0xff] %vm439_vm0, %v4198_v33  ;;  %v4136_v0 = vmul.f32 %v10184_v53, %v3752_v7  ;;  %v10185_v33 = vld [vmem:[#allocation119_spill] sm:$0xff]  ;;  %v2766_v36 = vld [vmem:[#allocation4 + $0x40] sm:$0xff]  ;;  %v3738_v7 = vld [vmem:[#allocation5 + $0x78] sm:$0xff] }
 0x36d   : > { %3095 = vst.msk [vmem:[#allocation4 + $0x80] sm:$0xff] %vm504_vm3, %v3030_v12  ;;  %v4135_v38 = vmul.f32 %v10185_v33, %v3751_v28 }
 0x36e   : > { %4261 = vst.msk [vmem:[#allocation5 + $0xd0] sm:$0xff] %vm439_vm0, %v4197_v59  ;;  %v2891_v49 = vpop.xlane.xlu0 %2890 }
 0x36f   : > { %v3016_v39 = vadd.f32 %v2891_v49, %v2824_v56 }
 0x370   : > { %v4367_v51 = vld [vmem:[#allocation4 + $0x8] sm:$0xff] }
 0x371   : > { %6595 = vrcp.f32 %v4367_v51  ;;  %3081 = vst.msk [vmem:[#allocation4 + $0x10] sm:$0xff] %vm504_vm3, %v3016_v39  ;;  %v10186_v51 = vld [vmem:[#allocation91_spill] sm:$0xff] }
 0x372   : > { %v2923_v55 = vpop.xlane.xlu0 %2922  ;;  %v2828_v5 = vmul.f32 %v10186_v51, %v2764_v24  ;;  %v2763_v24 = vld [vmem:[#allocation4 + $0x28] sm:$0xff] }
 0x373   : > { %v3032_v45 = vadd.f32 %v2923_v55, %v2840_v16  ;;  %v10187_v16 = vld [vmem:[#allocation63_spill] sm:$0xff] }
 0x374   : > { %v2822_v14 = vmul.f32 %v10187_v16, %v2758_v10  ;;  %v3754_v10 = vld [vmem:[#allocation5 + $0xf8] sm:$0xff] }
 0x375   : > { %3097 = vst.msk [vmem:[#allocation4 + $0x90] sm:$0xff] %vm504_vm3, %v3032_v45  ;;  %v5818_v50 = vpop.f32.mrb[44].mxu0  ;;  %v2761_v45 = vld [vmem:[#allocation4 + $0x18] sm:$0xff] }
 0x376   : > { %v2895_v52 = vpop.xlane.xlu0 %2894  ;;  %v4184_v2 = vadd.f32 %v5818_v50, %v4120_v17  ;;  %v3269_v29 = vpop.f32.mrb[45].mxu0 }
 0x377   : > { %v3018_v18 = vadd.f32 %v2895_v52, %v2826_v34  ;;  %v4183_v31 = vadd.f32 %v4119_v26, %v3269_v29  ;;  %v2844_v34 = vmul.f32 %v10188_v22, %v2780_v63  ;;  %v2825_v26 = vmul.f32 %v10189_v57, %v2761_v45  ;;  %v3737_v29 = vld [vmem:[#allocation5 + $0x70] sm:$0xff]  ;;  %v4382_v45 = vld [vmem:[#allocation4 + $0x80] sm:$0xff]  ;;  %v10197_v57 = vld [vmem:[#allocation123_spill] sm:$0xff] }
 0x378   : > { %4248 = vst.msk [vmem:[#allocation5 + $0x68] sm:$0xff] %vm439_vm0, %v4184_v2  ;;  %v2768_v22 = vld [vmem:[#allocation4 + $0x50] sm:$0xff] }
 0x379   : > { %3083 = vst.msk [vmem:[#allocation4 + $0x20] sm:$0xff] %vm504_vm3, %v3018_v18  ;;  %v2921_v37 = vpop.xlane.xlu1 %2920  ;;  %v5874_v56 = vpop.f32.mrb[44].mxu1 }
 0x37a   : > { %4247 = vst.msk [vmem:[#allocation5 + $0x60] sm:$0xff] %vm439_vm0, %v4183_v31  ;;  %v2927_v43 = vpop.xlane.xlu0 %2926  ;;  %v3031_v58 = vadd.f32 %v2921_v37, %v2839_v61  ;;  %v4200_v49 = vadd.f32 %v5874_v56, %v4136_v0  ;;  %v3414_v23 = vpop.f32.mrb[45].mxu1  ;;  %v10190_v31 = vld [vmem:[#allocation99_spill] sm:$0xff]  ;;  %v2782_v37 = vld [vmem:[#allocation4 + $0xc0] sm:$0xff]  ;;  %v3753_v56 = vld [vmem:[#allocation5 + $0xf0] sm:$0xff] }
 0x37b   : > { %v6596_v12 = vpop.eup %6595  ;;  %v3034_v59 = vadd.f32 %v2927_v43, %v2842_v20  ;;  %v4199_v39 = vadd.f32 %v4135_v38, %v3414_v23  ;;  %v2830_v32 = vmul.f32 %v10190_v31, %v2766_v36  ;;  %v10191_v20 = vld [vmem:[#allocation67_spill] sm:$0xff]  ;;  %v10199_v31 = vld [vmem:[#allocation74_spill] sm:$0xff] }
 0x37c   : > { %4565 = vperm.xlu0 %6338, %v6596_v12   ;;  %3096 = vst.msk [vmem:[#allocation4 + $0x88] sm:$0xff] %vm504_vm3, %v3031_v58  ;;  %v2841_v42 = vmul.f32 %v10191_v20, %v2777_v15  ;;  %v10192_v61 = vld [vmem:[#allocation107_spill] sm:$0xff]  ;;  %v10193_v12 = vld [vmem:[#allocation121_spill] sm:$0xff]  ;;  %v4368_v20 = vld [vmem:[#allocation4 + $0x10] sm:$0xff] }
 0x37d   : > { %3099 = vst.msk [vmem:[#allocation4 + $0xa0] sm:$0xff] %vm504_vm3, %v3034_v59  ;;  %v2887_v54 = vpop.xlane.xlu1 %2886  ;;  %v4122_v53 = vmul.f32 %v10192_v61, %v3738_v7  ;;  %v4121_v33 = vmul.f32 %v10193_v12, %v3737_v29  ;;  %v10198_v29 = vld [vmem:[#allocation105_spill] sm:$0xff] }
 0x37e   : > { %4264 = vst.msk [vmem:[#allocation5 + $0xe8] sm:$0xff] %vm439_vm0, %v4200_v49  ;;  %v2899_v55 = vpop.xlane.xlu0 %2898  ;;  %4263 = vst.msk [vmem:[#allocation5 + $0xe0] sm:$0xff] %vm439_vm0, %v4199_v39  ;;  %v3014_v17 = vadd.f32 %v2887_v54, %v2822_v14  ;;  %v10195_v14 = vld [vmem:[#allocation71_spill] sm:$0xff]  ;;  %v10196_v54 = vld [vmem:[#allocation116_spill] sm:$0xff] }
 0x37f   : > { %v3020_v11 = vadd.f32 %v2899_v55, %v2828_v5  ;;  %v10194_v5 = vld [vmem:[#allocation102_spill] sm:$0xff]  ;;  %v2827_v55 = vmul.f32 %v10195_v14, %v2763_v24  ;;  %v4138_v63 = vmul.f32 %v10196_v54, %v3754_v10  ;;  %v10200_v12 = vld [vmem:[#allocation109_spill] sm:$0xff] }
 0x380   : > { %3079 = vst.msk [vmem:[#allocation4] sm:$0xff] %vm504_vm3, %v3014_v17  ;;  %v2846_v16 = vmul.f32 %v10194_v5, %v2782_v37 }
 0x381   : > { %3085 = vst.msk [vmem:[#allocation4 + $0x30] sm:$0xff] %vm504_vm3, %v3020_v11  ;;  %v2893_v50 = vpop.xlane.xlu1 %2892 }
 0x382   : > { %v2931_v52 = vpop.xlane.xlu0 %2930  ;;  %v3017_v2 = vadd.f32 %v2893_v50, %v2825_v26  ;;  %v4137_v26 = vmul.f32 %v10197_v57, %v3753_v56  ;;  %v2767_v57 = vld [vmem:[#allocation4 + $0x48] sm:$0xff] }
 0x383   : > { %v3036_v18 = vadd.f32 %v2931_v52, %v2844_v34  ;;  %v4383_v28 = vld [vmem:[#allocation4 + $0x88] sm:$0xff] }
 0x384   : > { %3082 = vst.msk [vmem:[#allocation4 + $0x18] sm:$0xff] %vm504_vm3, %v3017_v2  ;;  %6597 = vrcp.f32 %v4383_v28  ;;  %v2779_v34 = vld [vmem:[#allocation4 + $0xa8] sm:$0xff]  ;;  %v2832_v28 = vmul.f32 %v10198_v29, %v2768_v22 }
 0x385   : > { %3101 = vst.msk [vmem:[#allocation4 + $0xb0] sm:$0xff] %vm504_vm3, %v3036_v18  ;;  %v2925_v43 = vpop.xlane.xlu1 %2924  ;;  %v5821_v58 = vpop.f32.mrb[46].mxu0 }
 0x386   : > { %v2903_v0 = vpop.xlane.xlu0 %2902  ;;  %v3033_v59 = vadd.f32 %v2925_v43, %v2841_v42  ;;  %v4186_v23 = vadd.f32 %v5821_v58, %v4122_v53  ;;  %v3279_v39 = vpop.f32.mrb[47].mxu0  ;;  %v2784_v53 = vld [vmem:[#allocation4 + $0xd0] sm:$0xff] }
 0x387   : > { %v3022_v38 = vadd.f32 %v2903_v0, %v2830_v32  ;;  %v4366_v49 = vld [vmem:[#allocation4] sm:$0xff]  ;;  %v4185_v51 = vadd.f32 %v4121_v33, %v3279_v39  ;;  %v2843_v32 = vmul.f32 %v10199_v31, %v2779_v34  ;;  %v2765_v0 = vld [vmem:[#allocation4 + $0x38] sm:$0xff]  ;;  %v2848_v33 = vmul.f32 %v10200_v12, %v2784_v53  ;;  %v4384_v58 = vld [vmem:[#allocation4 + $0x90] sm:$0xff] }
 0x388   : > { %3098 = vst.msk [vmem:[#allocation4 + $0x98] sm:$0xff] %vm504_vm3, %v3033_v59  ;;  %6599 = vrcp.f32 %v4366_v49  ;;  %v2781_v39 = vld [vmem:[#allocation4 + $0xb8] sm:$0xff]  ;;  %v2786_v34 = vld [vmem:[#allocation4 + $0xe0] sm:$0xff] }
 0x389   : > { %3087 = vst.msk [vmem:[#allocation4 + $0x40] sm:$0xff] %vm504_vm3, %v3022_v38  ;;  %v2897_v17 = vpop.xlane.xlu1 %2896  ;;  %v5877_v36 = vpop.f32.mrb[46].mxu1  ;;  %6601 = vrcp.f32 %v4382_v45  ;;  %v10201_v38 = vld [vmem:[#allocation83_spill] sm:$0xff]  ;;  %v10207_v12 = vld [vmem:[#allocation94_spill] sm:$0xff] }
 0x38a   : > { %4250 = vst.msk [vmem:[#allocation5 + $0x78] sm:$0xff] %vm439_vm0, %v4186_v23  ;;  %v2935_v11 = vpop.xlane.xlu0 %2934  ;;  %4249 = vst.msk [vmem:[#allocation5 + $0x70] sm:$0xff] %vm439_vm0, %v4185_v51  ;;  %v3019_v50 = vadd.f32 %v2897_v17, %v2827_v55  ;;  %v4202_v7 = vadd.f32 %v5877_v36, %v4138_v63  ;;  %v3424_v18 = vpop.f32.mrb[47].mxu1  ;;  %v2829_v59 = vmul.f32 %v10201_v38, %v2765_v0  ;;  %v2770_v23 = vld [vmem:[#allocation4 + $0x60] sm:$0xff]  ;;  %v10202_v55 = vld [vmem:[#allocation111_spill] sm:$0xff] }
 0x38b   : > { %v3038_v52 = vadd.f32 %v2935_v11, %v2846_v16  ;;  %v4369_v15 = vld [vmem:[#allocation4 + $0x18] sm:$0xff]  ;;  %v4201_v2 = vadd.f32 %v4137_v26, %v3424_v18  ;;  %v2834_v54 = vmul.f32 %v10202_v55, %v2770_v23  ;;  %v4370_v11 = vld [vmem:[#allocation4 + $0x20] sm:$0xff]  ;;  %v4372_v38 = vld [vmem:[#allocation4 + $0x30] sm:$0xff] }
 0x38c   : > { %3084 = vst.msk [vmem:[#allocation4 + $0x28] sm:$0xff] %vm504_vm3, %v3019_v50  ;;  %6603 = vrcp.f32 %v4369_v15  ;;  %v10203_v63 = vld [vmem:[#allocation85_spill] sm:$0xff] }
 0x38d   : > { %3103 = vst.msk [vmem:[#allocation4 + $0xc0] sm:$0xff] %vm504_vm3, %v3038_v52  ;;  %v2929_v61 = vpop.xlane.xlu1 %2928  ;;  %6605 = vrcp.f32 %v4368_v20  ;;  %v2845_v45 = vmul.f32 %v10203_v63, %v2781_v39  ;;  %v2772_v20 = vld [vmem:[#allocation4 + $0x70] sm:$0xff] }
 0x38e   : > { %4266 = vst.msk [vmem:[#allocation5 + $0xf8] sm:$0xff] %vm439_vm0, %v4202_v7  ;;  %v2907_v42 = vpop.xlane.xlu0 %2906  ;;  %4265 = vst.msk [vmem:[#allocation5 + $0xf0] sm:$0xff] %vm439_vm0, %v4201_v2  ;;  %v3035_v37 = vadd.f32 %v2929_v61, %v2843_v32  ;;  %v6598_v24 = vpop.eup %6597  ;;  %v10204_v7 = vld [vmem:[#allocation112_spill] sm:$0xff] }
 0x38f   : > { %v3024_v43 = vadd.f32 %v2907_v42, %v2832_v28  ;;  %v4385_v10 = vld [vmem:[#allocation4 + $0x98] sm:$0xff]  ;;  %4645 = vperm.xlu0 %6338, %v6598_v24   ;;  %v2850_v18 = vmul.f32 %v10204_v7, %v2786_v34  ;;  %v10205_v2 = vld [vmem:[#allocation92_spill] sm:$0xff]  ;;  %v4386_v28 = vld [vmem:[#allocation4 + $0xa0] sm:$0xff] }
 0x390   : > { %3100 = vst.msk [vmem:[#allocation4 + $0xa8] sm:$0xff] %vm504_vm3, %v3035_v37  ;;  %6607 = vrcp.f32 %v4385_v10  ;;  %v2831_v29 = vmul.f32 %v10205_v2, %v2767_v57  ;;  %v2783_v42 = vld [vmem:[#allocation4 + $0xc8] sm:$0xff]  ;;  %v10206_v24 = vld [vmem:[#allocation113_spill] sm:$0xff] }
 0x391   : > { %3089 = vst.msk [vmem:[#allocation4 + $0x50] sm:$0xff] %vm504_vm3, %v3024_v43  ;;  %v2901_v49 = vpop.xlane.xlu1 %2900  ;;  %6609 = vrcp.f32 %v4384_v58  ;;  %v2836_v10 = vmul.f32 %v10206_v24, %v2772_v20  ;;  %v2785_v34 = vld [vmem:[#allocation4 + $0xd8] sm:$0xff]  ;;  %v2771_v20 = vld [vmem:[#allocation4 + $0x68] sm:$0xff] }
 0x392   : > { %v2939_v56 = vpop.xlane.xlu0 %2938  ;;  %v3021_v5 = vadd.f32 %v2901_v49, %v2829_v59  ;;  %v6600_v16 = vpop.eup %6599  ;;  %v2769_v49 = vld [vmem:[#allocation4 + $0x58] sm:$0xff] }
 0x393   : > { %v3040_v51 = vadd.f32 %v2939_v56, %v2848_v33  ;;  %v4371_v14 = vld [vmem:[#allocation4 + $0x28] sm:$0xff]  ;;  %4560 = vperm.xlu1 %6337, %v6600_v16   ;;  %v6602_v26 = vpop.eup %6601  ;;  %v2847_v33 = vmul.f32 %v10207_v12, %v2783_v42  ;;  %v2788_v56 = vld [vmem:[#allocation4 + $0xf0] sm:$0xff] }
 0x394   : > { %3086 = vst.msk [vmem:[#allocation4 + $0x38] sm:$0xff] %vm504_vm3, %v3021_v5  ;;  %6611 = vrcp.f32 %v4371_v14  ;;  %v10208_v14 = vld [vmem:[#allocation114_spill] sm:$0xff] }
 0x395   : > { %3105 = vst.msk [vmem:[#allocation4 + $0xd0] sm:$0xff] %vm504_vm3, %v3040_v51  ;;  %v2933_v22 = vpop.xlane.xlu1 %2932  ;;  %6613 = vrcp.f32 %v4370_v11  ;;  %v2852_v55 = vmul.f32 %v10208_v14, %v2788_v56  ;;  %v2787_v56 = vld [vmem:[#allocation4 + $0xe8] sm:$0xff] }
 0x396   : > { %v2911_v17 = vpop.xlane.xlu0 %2910  ;;  %v3037_v50 = vadd.f32 %v2933_v22, %v2845_v45  ;;  %v6604_v36 = vpop.eup %6603  ;;  %v4388_v45 = vld [vmem:[#allocation4 + $0xb0] sm:$0xff]  ;;  %v2790_v22 = vld [vmem:[#allocation4 + $0x100] sm:$0xff] }
 0x397   : > { %v3026_v52 = vadd.f32 %v2911_v17, %v2834_v54  ;;  %v4387_v15 = vld [vmem:[#allocation4 + $0xa8] sm:$0xff]  ;;  %4575 = vperm.xlu0 %6338, %v6604_v36   ;;  %4640 = vperm.xlu1 %6337, %v6602_v26   ;;  %v6606_v61 = vpop.eup %6605 }
 0x398   : > { %3102 = vst.msk [vmem:[#allocation4 + $0xb8] sm:$0xff] %vm504_vm3, %v3037_v50  ;;  %6615 = vrcp.f32 %v4387_v15  ;;  %v10209_v54 = vld [vmem:[#allocation95_spill] sm:$0xff] }
 0x399   : > { %3091 = vst.msk [vmem:[#allocation4 + $0x60] sm:$0xff] %vm504_vm3, %v3026_v52  ;;  %v2905_v32 = vpop.xlane.xlu1 %2904  ;;  %6617 = vrcp.f32 %v4386_v28  ;;  %v2833_v63 = vmul.f32 %v10209_v54, %v2769_v49  ;;  %v10210_v15 = vld [vmem:[#allocation75_spill] sm:$0xff] }
 0x39a   : > { %v2943_v31 = vpop.xlane.xlu0 %2942  ;;  %v3023_v0 = vadd.f32 %v2905_v32, %v2831_v29  ;;  %v6608_v43 = vpop.eup %6607  ;;  %v2854_v7 = vmul.f32 %v10210_v15, %v2790_v22  ;;  %v4374_v29 = vld [vmem:[#allocation4 + $0x40] sm:$0xff]  ;;  %v4376_v22 = vld [vmem:[#allocation4 + $0x50] sm:$0xff]  ;;  %v10217_v15 = vld [vmem:[#allocation33_spill] sm:$0xff] }
 0x39b   : > { %v3042_v53 = vadd.f32 %v2943_v31, %v2850_v18  ;;  %v4373_v37 = vld [vmem:[#allocation4 + $0x38] sm:$0xff]  ;;  %4655 = vperm.xlu0 %6338, %v6608_v43   ;;  %4570 = vperm.xlu1 %6337, %v6606_v61   ;;  %v6610_v23 = vpop.eup %6609  ;;  %v2806_v32 = vld [vmem:[#allocation4 + $0x180] sm:$0xff] }
 0x39c   : > { %3088 = vst.msk [vmem:[#allocation4 + $0x48] sm:$0xff] %vm504_vm3, %v3023_v0  ;;  %6619 = vrcp.f32 %v4373_v37  ;;  %v10211_v18 = vld [vmem:[#allocation97_spill] sm:$0xff]  ;;  %v10212_v37 = vld [vmem:[#allocation10_spill] sm:$0xff] }
 0x39d   : > { %3107 = vst.msk [vmem:[#allocation4 + $0xe0] sm:$0xff] %vm504_vm3, %v3042_v53  ;;  %v2937_v58 = vpop.xlane.xlu1 %2936  ;;  %6621 = vrcp.f32 %v4372_v38  ;;  %v2849_v2 = vmul.f32 %v10211_v18, %v2785_v34  ;;  %v2870_v24 = vmul.f32 %v10212_v37, %v2806_v32 }
 0x39e   : > { %v2915_v59 = vpop.xlane.xlu0 %2914  ;;  %v3039_v51 = vadd.f32 %v2937_v58, %v2847_v33  ;;  %v6612_v5 = vpop.eup %6611  ;;  %v4390_v33 = vld [vmem:[#allocation4 + $0xc0] sm:$0xff]  ;;  %v2792_v58 = vld [vmem:[#allocation4 + $0x110] sm:$0xff] }
 0x39f   : > { %v3028_v39 = vadd.f32 %v2915_v59, %v2836_v10  ;;  %v4389_v16 = vld [vmem:[#allocation4 + $0xb8] sm:$0xff]  ;;  %4585 = vperm.xlu0 %6338, %v6612_v5   ;;  %4650 = vperm.xlu1 %6337, %v6610_v23   ;;  %v6614_v57 = vpop.eup %6613  ;;  %v10213_v10 = vld [vmem:[#allocation100_spill] sm:$0xff]  ;;  %v3756_v23 = vld [vmem:[#allocation5 + $0x108] sm:$0xff] }
 0x3a0   : > { %3104 = vst.msk [vmem:[#allocation4 + $0xc8] sm:$0xff] %vm504_vm3, %v3039_v51  ;;  %6623 = vrcp.f32 %v4389_v16  ;;  %v2835_v12 = vmul.f32 %v10213_v10, %v2771_v20  ;;  %v3755_v16 = vld [vmem:[#allocation5 + $0x100] sm:$0xff] }
 0x3a1   : > { %3093 = vst.msk [vmem:[#allocation4 + $0x70] sm:$0xff] %vm504_vm3, %v3028_v39  ;;  %v2909_v17 = vpop.xlane.xlu1 %2908  ;;  %6625 = vrcp.f32 %v4388_v45 }
 0x3a2   : > { %v2947_v11 = vpop.xlane.xlu0 %2946  ;;  %v3025_v52 = vadd.f32 %v2909_v17, %v2833_v63  ;;  %v6616_v50 = vpop.eup %6615  ;;  %v10215_v63 = vld [vmem:[#allocation103_spill] sm:$0xff] }
 0x3a3   : > { %v3044_v26 = vadd.f32 %v2947_v11, %v2852_v55  ;;  %v4375_v36 = vld [vmem:[#allocation4 + $0x48] sm:$0xff]  ;;  %4665 = vperm.xlu0 %6338, %v6616_v50   ;;  %4580 = vperm.xlu1 %6337, %v6614_v57   ;;  %v6618_v42 = vpop.eup %6617  ;;  %v10214_v55 = vld [vmem:[#allocation13_spill] sm:$0xff]  ;;  %v2851_v45 = vmul.f32 %v10215_v63, %v2787_v56  ;;  %v10216_v11 = vld [vmem:[#allocation30_spill] sm:$0xff] }
 0x3a4   : > { %3090 = vst.msk [vmem:[#allocation4 + $0x58] sm:$0xff] %vm504_vm3, %v3025_v52  ;;  %6627 = vrcp.f32 %v4375_v36  ;;  %v2856_v54 = vmul.f32 %v10214_v55, %v2792_v58  ;;  %v4140_v17 = vmul.f32 %v10216_v11, %v3756_v23  ;;  %v2773_v52 = vld [vmem:[#allocation4 + $0x78] sm:$0xff]  ;;  %v3772_v36 = vld [vmem:[#allocation5 + $0x188] sm:$0xff]  ;;  %v3757_v55 = vld [vmem:[#allocation5 + $0x110] sm:$0xff] }
 0x3a5   : > { %3109 = vst.msk [vmem:[#allocation4 + $0xf0] sm:$0xff] %vm504_vm3, %v3044_v26  ;;  %v2941_v31 = vpop.xlane.xlu1 %2940  ;;  %6629 = vrcp.f32 %v4374_v29  ;;  %v2808_v26 = vld [vmem:[#allocation4 + $0x190] sm:$0xff]  ;;  %v2789_v58 = vld [vmem:[#allocation4 + $0xf8] sm:$0xff]  ;;  %v10221_v23 = vld [vmem:[#allocation35_spill] sm:$0xff] }
 0x3a6   : > { %v2951_v28 = vpop.xlane.xlu0 %2950  ;;  %v3041_v53 = vadd.f32 %v2941_v31, %v2849_v2  ;;  %v6620_v0 = vpop.eup %6619  ;;  %v3771_v31 = vld [vmem:[#allocation5 + $0x180] sm:$0xff] }
 0x3a7   : > { %v3046_v61 = vadd.f32 %v2951_v28, %v2854_v7  ;;  %v4391_v43 = vld [vmem:[#allocation4 + $0xc8] sm:$0xff]  ;;  %4595 = vperm.xlu0 %6338, %v6620_v0   ;;  %4660 = vperm.xlu1 %6337, %v6618_v42   ;;  %v6622_v49 = vpop.eup %6621  ;;  %v4139_v7 = vmul.f32 %v10217_v15, %v3755_v16 }
 0x3a8   : > { %3106 = vst.msk [vmem:[#allocation4 + $0xd8] sm:$0xff] %vm504_vm3, %v3041_v53  ;;  %6631 = vrcp.f32 %v4391_v43  ;;  %v10218_v53 = vld [vmem:[#allocation76_spill] sm:$0xff]  ;;  %v10219_v43 = vld [vmem:[#allocation106_spill] sm:$0xff] }
 0x3a9   : > { %3111 = vst.msk [vmem:[#allocation4 + $0x100] sm:$0xff] %vm504_vm3, %v3046_v61  ;;  %v2913_v59 = vpop.xlane.xlu1 %2912  ;;  %6633 = vrcp.f32 %v4390_v33  ;;  %v2872_v0 = vmul.f32 %v10218_v53, %v2808_v26  ;;  %v2837_v37 = vmul.f32 %v10219_v43, %v2773_v52  ;;  %v10224_v26 = vld [vmem:[#allocation32_spill] sm:$0xff] }
 0x3aa   : > { %v2983_v38 = vpop.xlane.xlu0 %2982  ;;  %v3027_v51 = vadd.f32 %v2913_v59, %v2835_v12  ;;  %v6624_v5 = vpop.eup %6623  ;;  %v4392_v12 = vld [vmem:[#allocation4 + $0xd0] sm:$0xff]  ;;  %v2794_v59 = vld [vmem:[#allocation4 + $0x120] sm:$0xff] }
 0x3ab   : > { %v3062_v39 = vadd.f32 %v2983_v38, %v2870_v24  ;;  %v4377_v14 = vld [vmem:[#allocation4 + $0x58] sm:$0xff]  ;;  %4675 = vperm.xlu0 %6338, %v6624_v5   ;;  %4590 = vperm.xlu1 %6337, %v6622_v49   ;;  %v6626_v50 = vpop.eup %6625  ;;  %v10220_v24 = vld [vmem:[#allocation31_spill] sm:$0xff] }
 0x3ac   : > { %3092 = vst.msk [vmem:[#allocation4 + $0x68] sm:$0xff] %vm504_vm3, %v3027_v51  ;;  %6635 = vrcp.f32 %v4377_v14  ;;  %v4156_v10 = vmul.f32 %v10220_v24, %v3772_v36  ;;  %v3758_v49 = vld [vmem:[#allocation5 + $0x118] sm:$0xff] }
 0x3ad   : > { %3127 = vst.msk [vmem:[#allocation4 + $0x180] sm:$0xff] %vm504_vm3, %v3062_v39  ;;  %v2945_v57 = vpop.xlane.xlu1 %2944  ;;  %v5912_v29 = vpop.f32.mrb[48].mxu0  ;;  %6637 = vrcp.f32 %v4376_v22  ;;  %v4155_v39 = vmul.f32 %v10221_v23, %v3771_v31  ;;  %v4142_v52 = vmul.f32 %v10224_v26, %v3758_v49  ;;  %v10225_v24 = vld [vmem:[#allocation17_spill] sm:$0xff]  ;;  %v2796_v49 = vld [vmem:[#allocation4 + $0x130] sm:$0xff]  ;;  %v2807_v23 = vld [vmem:[#allocation4 + $0x188] sm:$0xff] }
 0x3ae   : > { %v2955_v34 = vpop.xlane.xlu0 %2954  ;;  %v3043_v2 = vadd.f32 %v2945_v57, %v2851_v45  ;;  %v6628_v28 = vpop.eup %6627  ;;  %v4204_v20 = vadd.f32 %v5912_v29, %v4140_v17  ;;  %v10222_v17 = vld [vmem:[#allocation80_spill] sm:$0xff]  ;;  %v3774_v29 = vld [vmem:[#allocation5 + $0x198] sm:$0xff] }
 0x3af   : > { %v3048_v18 = vadd.f32 %v2955_v34, %v2856_v54  ;;  %v4393_v32 = vld [vmem:[#allocation4 + $0xd8] sm:$0xff]  ;;  %v3499_v42 = vpop.f32.mrb[49].mxu0  ;;  %4605 = vperm.xlu0 %6338, %v6628_v28   ;;  %4670 = vperm.xlu1 %6337, %v6626_v50   ;;  %v6630_v56 = vpop.eup %6629  ;;  %v2858_v22 = vmul.f32 %v10222_v17, %v2794_v59  ;;  %v10223_v34 = vld [vmem:[#allocation110_spill] sm:$0xff]  ;;  %v4141_v28 = vmul.f32 %v9179_v6, %v3757_v55 }
 0x3b0   : > { %3108 = vst.msk [vmem:[#allocation4 + $0xe8] sm:$0xff] %vm504_vm3, %v3043_v2  ;;  %v4203_v61 = vadd.f32 %v4139_v7, %v3499_v42  ;;  %6639 = vrcp.f32 %v4393_v32  ;;  %v2853_v57 = vmul.f32 %v10223_v34, %v2789_v58  ;;  %v4378_v50 = vld [vmem:[#allocation4 + $0x60] sm:$0xff]  ;;  %v10228_v34 = vld [vmem:[#allocation19_spill] sm:$0xff] }
 0x3b1   : > { %3113 = vst.msk [vmem:[#allocation4 + $0x110] sm:$0xff] %vm504_vm3, %v3048_v18  ;;  %v2917_v38 = vpop.xlane.xlu1 %2916  ;;  %v5968_v16 = vpop.f32.mrb[48].mxu1  ;;  %6641 = vrcp.f32 %v4392_v12  ;;  %v2810_v7 = vld [vmem:[#allocation4 + $0x1a0] sm:$0xff]  ;;  %v2791_v18 = vld [vmem:[#allocation4 + $0x108] sm:$0xff] }
 0x3b2   : > { %4268 = vst.msk [vmem:[#allocation5 + $0x108] sm:$0xff] %vm439_vm0, %v4204_v20  ;;  %v2987_v33 = vpop.xlane.xlu0 %2986  ;;  %4267 = vst.msk [vmem:[#allocation5 + $0x100] sm:$0xff] %vm439_vm0, %v4203_v61  ;;  %v3029_v5 = vadd.f32 %v2917_v38, %v2837_v37  ;;  %v6632_v14 = vpop.eup %6631  ;;  %v4220_v63 = vadd.f32 %v5968_v16, %v4156_v10  ;;  %v3773_v61 = vld [vmem:[#allocation5 + $0x190] sm:$0xff]  ;;  %v2874_v6 = vmul.f32 %v10225_v24, %v2810_v7  ;;  %v10226_v10 = vld [vmem:[#allocation6_spill] sm:$0xff] }
 0x3b3   : > { %v3064_v51 = vadd.f32 %v2987_v33, %v2872_v0  ;;  %v4379_v54 = vld [vmem:[#allocation4 + $0x68] sm:$0xff]  ;;  %v3644_v45 = vpop.f32.mrb[49].mxu1  ;;  %4685 = vperm.xlu0 %6338, %v6632_v14   ;;  %4600 = vperm.xlu1 %6337, %v6630_v56   ;;  %v6634_v2 = vpop.eup %6633  ;;  %v2855_v12 = vmul.f32 %v10226_v10, %v2791_v18  ;;  %v10227_v33 = vld [vmem:[#allocation34_spill] sm:$0xff]  ;;  %v2812_v7 = vld [vmem:[#allocation4 + $0x1b0] sm:$0xff] }
 0x3b4   : > { %3094 = vst.msk [vmem:[#allocation4 + $0x78] sm:$0xff] %vm504_vm3, %v3029_v5  ;;  %v4219_v11 = vadd.f32 %v4155_v39, %v3644_v45  ;;  %6643 = vrcp.f32 %v4379_v54  ;;  %v4158_v38 = vmul.f32 %v10227_v33, %v3774_v29  ;;  %v4394_v59 = vld [vmem:[#allocation4 + $0xe0] sm:$0xff]  ;;  %v4157_v5 = vmul.f32 %v9185_v1, %v3773_v61  ;;  %v2793_v18 = vld [vmem:[#allocation4 + $0x118] sm:$0xff]  ;;  %v3776_v29 = vld [vmem:[#allocation5 + $0x1a8] sm:$0xff] }
 0x3b5   : > { %3129 = vst.msk [vmem:[#allocation4 + $0x190] sm:$0xff] %vm504_vm3, %v3064_v51  ;;  %v2949_v15 = vpop.xlane.xlu1 %2948  ;;  %v5915_v20 = vpop.f32.mrb[50].mxu0  ;;  %6645 = vrcp.f32 %v4378_v50  ;;  %v3760_v51 = vld [vmem:[#allocation5 + $0x128] sm:$0xff]  ;;  %v2860_v1 = vmul.f32 %v10228_v34, %v2796_v49  ;;  %v4380_v50 = vld [vmem:[#allocation4 + $0x70] sm:$0xff]  ;;  %v3775_v61 = vld [vmem:[#allocation5 + $0x1a0] sm:$0xff] }
 0x3b6   : > { %4284 = vst.msk [vmem:[#allocation5 + $0x188] sm:$0xff] %vm439_vm0, %v4220_v63  ;;  %v2959_v36 = vpop.xlane.xlu0 %2958  ;;  %4283 = vst.msk [vmem:[#allocation5 + $0x180] sm:$0xff] %vm439_vm0, %v4219_v11  ;;  %v3045_v32 = vadd.f32 %v2949_v15, %v2853_v57  ;;  %v6636_v42 = vpop.eup %6635  ;;  %v4206_v0 = vadd.f32 %v5915_v20, %v4142_v52  ;;  %v3759_v63 = vld [vmem:[#allocation5 + $0x120] sm:$0xff]  ;;  %v10229_v57 = vld [vmem:[#allocation69_spill] sm:$0xff]  ;;  %v4144_v52 = vmul.f32 %v9182_v13, %v3760_v51 }
 0x3b7   : > { %v3050_v31 = vadd.f32 %v2959_v36, %v2858_v22  ;;  %v4395_v53 = vld [vmem:[#allocation4 + $0xe8] sm:$0xff]  ;;  %v3509_v43 = vpop.f32.mrb[51].mxu0  ;;  %4615 = vperm.xlu0 %6338, %v6636_v42   ;;  %4680 = vperm.xlu1 %6337, %v6634_v2   ;;  %v6638_v39 = vpop.eup %6637  ;;  %v2871_v26 = vmul.f32 %v10229_v57, %v2807_v23  ;;  %v10232_v10 = vld [vmem:[#allocation37_spill] sm:$0xff]  ;;  %v4396_v33 = vld [vmem:[#allocation4 + $0xf0] sm:$0xff] }
 0x3b8   : > { %3110 = vst.msk [vmem:[#allocation4 + $0xf8] sm:$0xff] %vm504_vm3, %v3045_v32  ;;  %v4205_v37 = vadd.f32 %v4141_v28, %v3509_v43  ;;  %6647 = vrcp.f32 %v4395_v53  ;;  %v4143_v28 = vmul.f32 %v9211_v40, %v3759_v63  ;;  %v10231_v24 = vld [vmem:[#allocation11_spill] sm:$0xff]  ;;  %v3762_v23 = vld [vmem:[#allocation5 + $0x138] sm:$0xff] }
 0x3b9   : > { %3115 = vst.msk [vmem:[#allocation4 + $0x120] sm:$0xff] %vm504_vm3, %v3050_v31  ;;  %v2953_v56 = vpop.xlane.xlu1 %2952  ;;  %v5971_v55 = vpop.f32.mrb[50].mxu1  ;;  %6649 = vrcp.f32 %v4394_v59 }
 0x3ba   : > { %4270 = vst.msk [vmem:[#allocation5 + $0x118] sm:$0xff] %vm439_vm0, %v4206_v0  ;;  %v2991_v58 = vpop.xlane.xlu0 %2990  ;;  %4269 = vst.msk [vmem:[#allocation5 + $0x110] sm:$0xff] %vm439_vm0, %v4205_v37  ;;  %v3047_v14 = vadd.f32 %v2953_v56, %v2855_v12  ;;  %v6640_v54 = vpop.eup %6639  ;;  %v4222_v11 = vadd.f32 %v5971_v55, %v4158_v38  ;;  %v10230_v37 = vld [vmem:[#allocation87_spill] sm:$0xff]  ;;  %v4160_v12 = vmul.f32 %v10232_v10, %v3776_v29  ;;  %v2809_v56 = vld [vmem:[#allocation4 + $0x198] sm:$0xff] }
 0x3bb   : > { %v3066_v16 = vadd.f32 %v2991_v58, %v2874_v6  ;;  %v4381_v45 = vld [vmem:[#allocation4 + $0x78] sm:$0xff]  ;;  %v3654_v17 = vpop.f32.mrb[51].mxu1  ;;  %4695 = vperm.xlu0 %6338, %v6640_v54   ;;  %4610 = vperm.xlu1 %6337, %v6638_v39   ;;  %v6642_v2 = vpop.eup %6641  ;;  %v2876_v40 = vmul.f32 %v10230_v37, %v2812_v7  ;;  %v2857_v6 = vmul.f32 %v10231_v24, %v2793_v18  ;;  %v2798_v58 = vld [vmem:[#allocation4 + $0x140] sm:$0xff]  ;;  %v3761_v55 = vld [vmem:[#allocation5 + $0x130] sm:$0xff] }
 0x3bc   : > { %3112 = vst.msk [vmem:[#allocation4 + $0x108] sm:$0xff] %vm504_vm3, %v3047_v14  ;;  %v4221_v22 = vadd.f32 %v4157_v5, %v3654_v17  ;;  %6651 = vrcp.f32 %v4381_v45  ;;  %v4159_v39 = vmul.f32 %v9215_v9, %v3775_v61  ;;  %v10233_v17 = vld [vmem:[#allocation23_spill] sm:$0xff]  ;;  %v3778_v18 = vld [vmem:[#allocation5 + $0x1b8] sm:$0xff] }
 0x3bd   : > { %3131 = vst.msk [vmem:[#allocation4 + $0x1a0] sm:$0xff] %vm504_vm3, %v3066_v16  ;;  %v2985_v15 = vpop.xlane.xlu1 %2984  ;;  %v5918_v20 = vpop.f32.mrb[52].mxu0  ;;  %6653 = vrcp.f32 %v4380_v50  ;;  %v2862_v9 = vmul.f32 %v10233_v17, %v2798_v58  ;;  %v2811_v58 = vld [vmem:[#allocation4 + $0x1a8] sm:$0xff]  ;;  %v10242_v17 = vld [vmem:[#allocation78_spill] sm:$0xff] }
 0x3be   : > { %4286 = vst.msk [vmem:[#allocation5 + $0x198] sm:$0xff] %vm439_vm0, %v4222_v11  ;;  %v2963_v36 = vpop.xlane.xlu0 %2962  ;;  %4285 = vst.msk [vmem:[#allocation5 + $0x190] sm:$0xff] %vm439_vm0, %v4221_v22  ;;  %v3063_v32 = vadd.f32 %v2985_v15, %v2871_v26  ;;  %v6644_v42 = vpop.eup %6643  ;;  %v4208_v53 = vadd.f32 %v5918_v20, %v4144_v52  ;;  %v10234_v22 = vld [vmem:[#allocation77_spill] sm:$0xff]  ;;  %v4398_v26 = vld [vmem:[#allocation4 + $0x100] sm:$0xff] }
 0x3bf   : > { %v3052_v31 = vadd.f32 %v2963_v36, %v2860_v1  ;;  %v4397_v13 = vld [vmem:[#allocation4 + $0xf8] sm:$0xff]  ;;  %v3519_v0 = vpop.f32.mrb[53].mxu0  ;;  %4625 = vperm.xlu0 %6338, %v6644_v42   ;;  %4690 = vperm.xlu1 %6337, %v6642_v2   ;;  %v6646_v49 = vpop.eup %6645  ;;  %v2873_v34 = vmul.f32 %v10234_v22, %v2809_v56  ;;  %v10235_v1 = vld [vmem:[#allocation36_spill] sm:$0xff]  ;;  %v2814_v36 = vld [vmem:[#allocation4 + $0x1c0] sm:$0xff] }
 0x3c0   : > { %3128 = vst.msk [vmem:[#allocation4 + $0x188] sm:$0xff] %vm504_vm3, %v3063_v32  ;;  %v4207_v43 = vadd.f32 %v4143_v28, %v3519_v0  ;;  %6655 = vrcp.f32 %v4397_v13  ;;  %v4146_v57 = vmul.f32 %v10235_v1, %v3762_v23  ;;  %v2795_v15 = vld [vmem:[#allocation4 + $0x128] sm:$0xff]  ;;  %v10236_v2 = vld [vmem:[#allocation38_spill] sm:$0xff]  ;;  %v3777_v42 = vld [vmem:[#allocation5 + $0x1b0] sm:$0xff] }
 0x3c1   : > { %3117 = vst.msk [vmem:[#allocation4 + $0x130] sm:$0xff] %vm504_vm3, %v3052_v31  ;;  %v2957_v59 = vpop.xlane.xlu1 %2956  ;;  %v5974_v16 = vpop.f32.mrb[52].mxu1  ;;  %6657 = vrcp.f32 %v4396_v33  ;;  %v4145_v29 = vmul.f32 %v10236_v2, %v3761_v55  ;;  %v4400_v22 = vld [vmem:[#allocation4 + $0x110] sm:$0xff] }
 0x3c2   : > { %4272 = vst.msk [vmem:[#allocation5 + $0x128] sm:$0xff] %vm439_vm0, %v4208_v53  ;;  %v2995_v38 = vpop.xlane.xlu0 %2994  ;;  %4271 = vst.msk [vmem:[#allocation5 + $0x120] sm:$0xff] %vm439_vm0, %v4207_v43  ;;  %v3049_v5 = vadd.f32 %v2957_v59, %v2857_v6  ;;  %v6648_v14 = vpop.eup %6647  ;;  %v4224_v63 = vadd.f32 %v5974_v16, %v4160_v12  ;;  %v10237_v43 = vld [vmem:[#allocation24_spill] sm:$0xff]  ;;  %v10239_v6 = vld [vmem:[#allocation39_spill] sm:$0xff] }
 0x3c3   : > { %v3068_v51 = vadd.f32 %v2995_v38, %v2876_v40  ;;  %v4399_v54 = vld [vmem:[#allocation4 + $0x108] sm:$0xff]  ;;  %v3664_v45 = vpop.f32.mrb[53].mxu1  ;;  %4705 = vperm.xlu0 %6338, %v6648_v14   ;;  %4620 = vperm.xlu1 %6337, %v6646_v49   ;;  %v6650_v7 = vpop.eup %6649  ;;  %v2878_v37 = vmul.f32 %v10237_v43, %v2814_v36  ;;  %v10238_v40 = vld [vmem:[#allocation12_spill] sm:$0xff]  ;;  %v4162_v10 = vmul.f32 %v10239_v6, %v3778_v18  ;;  %v4414_v12 = vld [vmem:[#allocation4 + $0x180] sm:$0xff] }
 0x3c4   : > { %3114 = vst.msk [vmem:[#allocation4 + $0x118] sm:$0xff] %vm504_vm3, %v3049_v5  ;;  %v4223_v11 = vadd.f32 %v4159_v39, %v3664_v45  ;;  %6659 = vrcp.f32 %v4399_v54  ;;  %v2859_v24 = vmul.f32 %v10238_v40, %v2795_v15  ;;  %v2800_v59 = vld [vmem:[#allocation4 + $0x150] sm:$0xff]  ;;  %v10240_v49 = vld [vmem:[#allocation41_spill] sm:$0xff]  ;;  %v10243_v18 = vld [vmem:[#allocation98_spill] sm:$0xff] }
 0x3c5   : > { %3133 = vst.msk [vmem:[#allocation4 + $0x1b0] sm:$0xff] %vm504_vm3, %v3068_v51  ;;  %v2989_v50 = vpop.xlane.xlu1 %2988  ;;  %v5921_v32 = vpop.f32.mrb[54].mxu0  ;;  %6661 = vrcp.f32 %v4398_v26  ;;  %v4161_v23 = vmul.f32 %v10240_v49, %v3777_v42  ;;  %v10241_v45 = vld [vmem:[#allocation29_spill] sm:$0xff]  ;;  %v2802_v42 = vld [vmem:[#allocation4 + $0x160] sm:$0xff]  ;;  %v10245_v6 = vld [vmem:[#allocation108_spill] sm:$0xff] }
 0x3c6   : > { %4288 = vst.msk [vmem:[#allocation5 + $0x1a8] sm:$0xff] %vm439_vm0, %v4224_v63  ;;  %v2967_v52 = vpop.xlane.xlu0 %2966  ;;  %4287 = vst.msk [vmem:[#allocation5 + $0x1a0] sm:$0xff] %vm439_vm0, %v4223_v11  ;;  %v3065_v31 = vadd.f32 %v2989_v50, %v2873_v34  ;;  %v6652_v20 = vpop.eup %6651  ;;  %v4210_v13 = vadd.f32 %v5921_v32, %v4146_v57  ;;  %v2864_v11 = vmul.f32 %v10241_v45, %v2800_v59  ;;  %v2816_v57 = vld [vmem:[#allocation4 + $0x1d0] sm:$0xff]  ;;  %v2797_v26 = vld [vmem:[#allocation4 + $0x138] sm:$0xff] }
 0x3c7   : > { %v3054_v28 = vadd.f32 %v2967_v52, %v2862_v9  ;;  %v4415_v61 = vld [vmem:[#allocation4 + $0x188] sm:$0xff]  ;;  %v3529_v53 = vpop.f32.mrb[55].mxu0  ;;  %4635 = vperm.xlu0 %6338, %v6652_v20   ;;  %4700 = vperm.xlu1 %6337, %v6650_v7   ;;  %v6654_v56 = vpop.eup %6653  ;;  %v2875_v9 = vmul.f32 %v10242_v17, %v2811_v58  ;;  %v2880_v2 = vmul.f32 %v10243_v18, %v2816_v57  ;;  %v3763_v40 = vld [vmem:[#allocation5 + $0x140] sm:$0xff] }
 0x3c8   : > { %3130 = vst.msk [vmem:[#allocation4 + $0x198] sm:$0xff] %vm504_vm3, %v3065_v31  ;;  %v4209_v0 = vadd.f32 %v4145_v29, %v3529_v53  ;;  %6663 = vrcp.f32 %v4415_v61  ;;  %v10244_v29 = vld [vmem:[#allocation15_spill] sm:$0xff]  ;;  %v4416_v31 = vld [vmem:[#allocation4 + $0x190] sm:$0xff]  ;;  %v2813_v61 = vld [vmem:[#allocation4 + $0x1b8] sm:$0xff] }
 0x3c9   : > { %3119 = vst.msk [vmem:[#allocation4 + $0x140] sm:$0xff] %vm504_vm3, %v3054_v28  ;;  %v2961_v38 = vpop.xlane.xlu1 %2960  ;;  %v5977_v5 = vpop.f32.mrb[54].mxu1  ;;  %6665 = vrcp.f32 %v4414_v12  ;;  %v2861_v28 = vmul.f32 %v10244_v29, %v2797_v26  ;;  %v3764_v53 = vld [vmem:[#allocation5 + $0x148] sm:$0xff]  ;;  %v10246_v12 = vld [vmem:[#allocation16_spill] sm:$0xff]  ;;  %v4402_v59 = vld [vmem:[#allocation4 + $0x120] sm:$0xff] }
 0x3ca   : > { %4274 = vst.msk [vmem:[#allocation5 + $0x138] sm:$0xff] %vm439_vm0, %v4210_v13  ;;  %v2999_v33 = vpop.xlane.xlu0 %2998  ;;  %4273 = vst.msk [vmem:[#allocation5 + $0x130] sm:$0xff] %vm439_vm0, %v4209_v0  ;;  %v3051_v51 = vadd.f32 %v2961_v38, %v2859_v24  ;;  %v6656_v16 = vpop.eup %6655  ;;  %v4226_v55 = vadd.f32 %v5977_v5, %v4162_v10  ;;  %v2866_v10 = vmul.f32 %v10245_v6, %v2802_v42  ;;  %v2818_v49 = vld [vmem:[#allocation4 + $0x1e0] sm:$0xff]  ;;  %v10249_v42 = vld [vmem:[#allocation120_spill] sm:$0xff] }
 0x3cb   : > { %v3070_v39 = vadd.f32 %v2999_v33, %v2878_v37  ;;  %v4401_v14 = vld [vmem:[#allocation4 + $0x118] sm:$0xff]  ;;  %v3674_v54 = vpop.f32.mrb[55].mxu1  ;;  %4715 = vperm.xlu0 %6338, %v6656_v16   ;;  %4630 = vperm.xlu1 %6337, %v6654_v56   ;;  %v6658_v52 = vpop.eup %6657  ;;  %v2877_v33 = vmul.f32 %v10246_v12, %v2813_v61  ;;  %v4148_v38 = vmul.f32 %v9305_v8, %v3764_v53  ;;  %v4418_v57 = vld [vmem:[#allocation4 + $0x1a0] sm:$0xff]  ;;  %v4404_v53 = vld [vmem:[#allocation4 + $0x130] sm:$0xff] }
 0x3cc   : > { %3116 = vst.msk [vmem:[#allocation4 + $0x128] sm:$0xff] %vm504_vm3, %v3051_v51  ;;  %v4225_v63 = vadd.f32 %v4161_v23, %v3674_v54  ;;  %6667 = vrcp.f32 %v4401_v14  ;;  %v2799_v23 = vld [vmem:[#allocation4 + $0x148] sm:$0xff]  ;;  %v4147_v5 = vmul.f32 %v9337_v48, %v3763_v40  ;;  %v2801_v40 = vld [vmem:[#allocation4 + $0x158] sm:$0xff] }
 0x3cd   : > { %3135 = vst.msk [vmem:[#allocation4 + $0x1c0] sm:$0xff] %vm504_vm3, %v3070_v39  ;;  %v2993_v1 = vpop.xlane.xlu1 %2992  ;;  %6669 = vrcp.f32 %v4400_v22  ;;  %v3780_v51 = vld [vmem:[#allocation5 + $0x1c8] sm:$0xff] }
 0x3ce   : > { %4290 = vst.msk [vmem:[#allocation5 + $0x1b8] sm:$0xff] %vm439_vm0, %v4226_v55  ;;  %v2971_v34 = vpop.xlane.xlu0 %2970  ;;  %4289 = vst.msk [vmem:[#allocation5 + $0x1b0] sm:$0xff] %vm439_vm0, %v4225_v63  ;;  %v3067_v36 = vadd.f32 %v2993_v1, %v2875_v9  ;;  %v6660_v15 = vpop.eup %6659  ;;  %v3779_v63 = vld [vmem:[#allocation5 + $0x1c0] sm:$0xff]  ;;  %v4164_v1 = vmul.f32 %v9316_v62, %v3780_v51 }
 0x3cf   : > { %v3056_v50 = vadd.f32 %v2971_v34, %v2864_v11  ;;  %v4417_v7 = vld [vmem:[#allocation4 + $0x198] sm:$0xff]  ;;  %4725 = vperm.xlu0 %6338, %v6660_v15   ;;  %4710 = vperm.xlu1 %6337, %v6658_v52   ;;  %v6662_v13 = vpop.eup %6661  ;;  %v10247_v9 = vld [vmem:[#allocation118_spill] sm:$0xff] }
 0x3d0   : > { %3132 = vst.msk [vmem:[#allocation4 + $0x1a8] sm:$0xff] %vm504_vm3, %v3067_v36  ;;  %6671 = vrcp.f32 %v4417_v7  ;;  %v2882_v22 = vmul.f32 %v10247_v9, %v2818_v49  ;;  %v10248_v34 = vld [vmem:[#allocation18_spill] sm:$0xff]  ;;  %v2815_v36 = vld [vmem:[#allocation4 + $0x1c8] sm:$0xff]  ;;  %v4163_v7 = vmul.f32 %v9345_v44, %v3779_v63  ;;  %v10250_v44 = vld [vmem:[#allocation21_spill] sm:$0xff] }
 0x3d1   : > { %3121 = vst.msk [vmem:[#allocation4 + $0x150] sm:$0xff] %vm504_vm3, %v3056_v50  ;;  %v2965_v20 = vpop.xlane.xlu1 %2964  ;;  %6673 = vrcp.f32 %v4416_v31  ;;  %v2863_v48 = vmul.f32 %v10248_v34, %v2799_v23  ;;  %v2804_v50 = vld [vmem:[#allocation4 + $0x170] sm:$0xff]  ;;  %v3766_v49 = vld [vmem:[#allocation5 + $0x158] sm:$0xff]  ;;  %v4406_v34 = vld [vmem:[#allocation4 + $0x140] sm:$0xff] }
 0x3d2   : > { %v3003_v32 = vpop.xlane.xlu0 %3002  ;;  %v3053_v43 = vadd.f32 %v2965_v20, %v2861_v28  ;;  %v6664_v37 = vpop.eup %6663  ;;  %v2868_v61 = vmul.f32 %v10249_v42, %v2804_v50  ;;  %v4420_v23 = vld [vmem:[#allocation4 + $0x1b0] sm:$0xff]  ;;  %v3782_v9 = vld [vmem:[#allocation5 + $0x1d8] sm:$0xff] }
 0x3d3   : > { %v3072_v0 = vadd.f32 %v3003_v32, %v2880_v2  ;;  %v4403_v24 = vld [vmem:[#allocation4 + $0x128] sm:$0xff]  ;;  %4805 = vperm.xlu0 %6338, %v6664_v37   ;;  %4720 = vperm.xlu1 %6337, %v6662_v13   ;;  %v6666_v39 = vpop.eup %6665  ;;  %v2879_v13 = vmul.f32 %v10250_v44, %v2815_v36  ;;  %v2820_v37 = vld [vmem:[#allocation4 + $0x1f0] sm:$0xff] }
 0x3d4   : > { %3118 = vst.msk [vmem:[#allocation4 + $0x138] sm:$0xff] %vm504_vm3, %v3053_v43  ;;  %6675 = vrcp.f32 %v4403_v24 }
 0x3d5   : > { %3137 = vst.msk [vmem:[#allocation4 + $0x1d0] sm:$0xff] %vm504_vm3, %v3072_v0  ;;  %v2997_v56 = vpop.xlane.xlu1 %2996  ;;  %v5924_v55 = vpop.f32.mrb[56].mxu0  ;;  %6677 = vrcp.f32 %v4402_v59 }
 0x3d6   : > { %v2975_v58 = vpop.xlane.xlu0 %2974  ;;  %v3069_v14 = vadd.f32 %v2997_v56, %v2877_v33  ;;  %v6668_v54 = vpop.eup %6667  ;;  %v4212_v11 = vadd.f32 %v5924_v55, %v4148_v38  ;;  %v10251_v38 = vld [vmem:[#allocation122_spill] sm:$0xff] }
 0x3d7   : > { %v3058_v16 = vadd.f32 %v2975_v58, %v2866_v10  ;;  %v4419_v45 = vld [vmem:[#allocation4 + $0x1a8] sm:$0xff]  ;;  %v3539_v17 = vpop.f32.mrb[57].mxu0  ;;  %4735 = vperm.xlu0 %6338, %v6668_v54   ;;  %4800 = vperm.xlu1 %6337, %v6666_v39   ;;  %v6670_v15 = vpop.eup %6669  ;;  %v2884_v59 = vmul.f32 %v10251_v38, %v2820_v37  ;;  %v10252_v58 = vld [vmem:[#allocation20_spill] sm:$0xff] }
 0x3d8   : > { %3134 = vst.msk [vmem:[#allocation4 + $0x1b8] sm:$0xff] %vm504_vm3, %v3069_v14  ;;  %v4211_v8 = vadd.f32 %v4147_v5, %v3539_v17  ;;  %6679 = vrcp.f32 %v4419_v45  ;;  %v2865_v56 = vmul.f32 %v10252_v58, %v2801_v40  ;;  %v2817_v5 = vld [vmem:[#allocation4 + $0x1d8] sm:$0xff]  ;;  %v3765_v14 = vld [vmem:[#allocation5 + $0x150] sm:$0xff]  ;;  %v3768_v58 = vld [vmem:[#allocation5 + $0x168] sm:$0xff] }
 0x3d9   : > { %3123 = vst.msk [vmem:[#allocation4 + $0x160] sm:$0xff] %vm504_vm3, %v3058_v16  ;;  %v2969_v52 = vpop.xlane.xlu1 %2968  ;;  %v5980_v29 = vpop.f32.mrb[56].mxu1  ;;  %6681 = vrcp.f32 %v4418_v57  ;;  %v10253_v17 = vld [vmem:[#allocation89_spill] sm:$0xff]  ;;  %v2803_v57 = vld [vmem:[#allocation4 + $0x168] sm:$0xff]  ;;  %v10256_v38 = vld [vmem:[#allocation28_spill] sm:$0xff] }
 0x3da   : > { %4276 = vst.msk [vmem:[#allocation5 + $0x148] sm:$0xff] %vm439_vm0, %v4212_v11  ;;  %v3007_v26 = vpop.xlane.xlu0 %3006  ;;  %4275 = vst.msk [vmem:[#allocation5 + $0x140] sm:$0xff] %vm439_vm0, %v4211_v8  ;;  %v3055_v2 = vadd.f32 %v2969_v52, %v2863_v48  ;;  %v6672_v28 = vpop.eup %6671  ;;  %v4228_v32 = vadd.f32 %v5980_v29, %v4164_v1  ;;  %v4150_v11 = vmul.f32 %v9323_v47, %v3766_v49  ;;  %v3781_v52 = vld [vmem:[#allocation5 + $0x1d0] sm:$0xff]  ;;  %v2805_v40 = vld [vmem:[#allocation4 + $0x178] sm:$0xff] }
 0x3db   : > { %v3074_v18 = vadd.f32 %v3007_v26, %v2882_v22  ;;  %v4405_v31 = vld [vmem:[#allocation4 + $0x138] sm:$0xff]  ;;  %v3684_v62 = vpop.f32.mrb[57].mxu1  ;;  %4815 = vperm.xlu0 %6338, %v6672_v28   ;;  %4730 = vperm.xlu1 %6337, %v6670_v15   ;;  %v6674_v24 = vpop.eup %6673  ;;  %v2881_v8 = vmul.f32 %v10253_v17, %v2817_v5  ;;  %v4149_v22 = vmul.f32 %v9355_v19, %v3765_v14  ;;  %v10254_v19 = vld [vmem:[#allocation22_spill] sm:$0xff] }
 0x3dc   : > { %3120 = vst.msk [vmem:[#allocation4 + $0x148] sm:$0xff] %vm504_vm3, %v3055_v2  ;;  %v4227_v20 = vadd.f32 %v4163_v7, %v3684_v62  ;;  %6683 = vrcp.f32 %v4405_v31  ;;  %v4166_v2 = vmul.f32 %v9334_v4, %v3782_v9  ;;  %v2867_v29 = vmul.f32 %v10254_v19, %v2803_v57  ;;  %v4422_v31 = vld [vmem:[#allocation4 + $0x1c0] sm:$0xff]  ;;  %v2821_v49 = vld [vmem:[#allocation4 + $0x1f8] sm:$0xff] }
 0x3dd   : > { %3139 = vst.msk [vmem:[#allocation4 + $0x1e0] sm:$0xff] %vm504_vm3, %v3074_v18  ;;  %v3001_v43 = vpop.xlane.xlu1 %3000  ;;  %6685 = vrcp.f32 %v4404_v53  ;;  %v4165_v28 = vmul.f32 %v9364_v30, %v3781_v52  ;;  %v10255_v30 = vld [vmem:[#allocation90_spill] sm:$0xff] }
 0x3de   : > { %4292 = vst.msk [vmem:[#allocation5 + $0x1c8] sm:$0xff] %vm439_vm0, %v4228_v32  ;;  %v2979_v0 = vpop.xlane.xlu0 %2978  ;;  %4291 = vst.msk [vmem:[#allocation5 + $0x1c0] sm:$0xff] %vm439_vm0, %v4227_v20  ;;  %v3071_v10 = vadd.f32 %v3001_v43, %v2879_v13  ;;  %v6676_v12 = vpop.eup %6675  ;;  %v2819_v20 = vld [vmem:[#allocation4 + $0x1e8] sm:$0xff] }
 0x3df   : > { %v3060_v6 = vadd.f32 %v2979_v0, %v2868_v61  ;;  %v4421_v33 = vld [vmem:[#allocation4 + $0x1b8] sm:$0xff]  ;;  %4745 = vperm.xlu0 %6338, %v6676_v12   ;;  %4810 = vperm.xlu1 %6337, %v6674_v24   ;;  %v6678_v16 = vpop.eup %6677  ;;  %v2883_v43 = vmul.f32 %v10255_v30, %v2819_v20 }
 0x3e0   : > { %3136 = vst.msk [vmem:[#allocation4 + $0x1c8] sm:$0xff] %vm504_vm3, %v3071_v10  ;;  %6687 = vrcp.f32 %v4421_v33 }
 0x3e1   : > { %3125 = vst.msk [vmem:[#allocation4 + $0x170] sm:$0xff] %vm504_vm3, %v3060_v6  ;;  %v2973_v51 = vpop.xlane.xlu1 %2972  ;;  %6689 = vrcp.f32 %v4420_v23  ;;  %v4408_v6 = vld [vmem:[#allocation4 + $0x150] sm:$0xff] }
 0x3e2   : > { %v3011_v39 = vpop.xlane.xlu0 %3010  ;;  %v3057_v54 = vadd.f32 %v2973_v51, %v2865_v56  ;;  %v6680_v63 = vpop.eup %6679  ;;  %v4424_v51 = vld [vmem:[#allocation4 + $0x1d0] sm:$0xff] }
 0x3e3   : > { %v3076_v55 = vadd.f32 %v3011_v39, %v2884_v59  ;;  %v4407_v45 = vld [vmem:[#allocation4 + $0x148] sm:$0xff]  ;;  %4825 = vperm.xlu0 %6338, %v6680_v63   ;;  %4740 = vperm.xlu1 %6337, %v6678_v16   ;;  %v6682_v26 = vpop.eup %6681  ;;  %v2869_v59 = vmul.f32 %v10256_v38, %v2805_v40  ;;  %v3767_v39 = vld [vmem:[#allocation5 + $0x160] sm:$0xff]  ;;  %v3785_v40 = vld [vmem:[#allocation5 + $0x1f0] sm:$0xff] }
 0x3e4   : > { %3122 = vst.msk [vmem:[#allocation4 + $0x158] sm:$0xff] %vm504_vm3, %v3057_v54  ;;  %6691 = vrcp.f32 %v4407_v45  ;;  %v10257_v54 = vld [vmem:[#allocation104_spill] sm:$0xff]  ;;  %v3784_v45 = vld [vmem:[#allocation5 + $0x1e8] sm:$0xff] }
 0x3e5   : > { %3141 = vst.msk [vmem:[#allocation4 + $0x1f0] sm:$0xff] %vm504_vm3, %v3076_v55  ;;  %v5927_v48 = vpop.f32.mrb[58].mxu0  ;;  %v3005_v1 = vpop.xlane.xlu1 %3004  ;;  %6693 = vrcp.f32 %v4406_v34  ;;  %v4152_v55 = vmul.f32 %v9343_v60, %v3768_v58  ;;  %v2885_v63 = vmul.f32 %v10257_v54, %v2821_v49  ;;  %v4410_v34 = vld [vmem:[#allocation4 + $0x160] sm:$0xff]  ;;  %v4497_v54 = vld [vmem:[#allocation5 + $0x18] sm:$0xff] }
 0x3e6   : > { %v4214_v47 = vadd.f32 %v5927_v48, %v4150_v11  ;;  %v3073_v50 = vadd.f32 %v3005_v1, %v2881_v8  ;;  %v3549_v36 = vpop.f32.mrb[59].mxu0  ;;  %v6684_v15 = vpop.eup %6683  ;;  %v4151_v11 = vmul.f32 %v9372_v27, %v3767_v39 }
 0x3e7   : > { %v4423_v7 = vld [vmem:[#allocation4 + $0x1c8] sm:$0xff]  ;;  %v4213_v18 = vadd.f32 %v4149_v22, %v3549_v36  ;;  %4755 = vperm.xlu0 %6338, %v6684_v15   ;;  %4820 = vperm.xlu1 %6337, %v6682_v26   ;;  %v6686_v42 = vpop.eup %6685  ;;  %v3783_v22 = vld [vmem:[#allocation5 + $0x1e0] sm:$0xff] }
 0x3e8   : > { %4278 = vst.msk [vmem:[#allocation5 + $0x158] sm:$0xff] %vm439_vm0, %v4214_v47  ;;  %6695 = vrcp.f32 %v4423_v7  ;;  %v4168_v47 = vmul.f32 %v9353_v3, %v3784_v45  ;;  %v4167_v27 = vmul.f32 %v9379_v21, %v3783_v22  ;;  %v4426_v15 = vld [vmem:[#allocation4 + $0x1e0] sm:$0xff]  ;;  %v4495_v3 = vld [vmem:[#allocation5 + $0x8] sm:$0xff] }
 0x3e9   : > { %3138 = vst.msk [vmem:[#allocation4 + $0x1d8] sm:$0xff] %vm504_vm3, %v3073_v50  ;;  %v5983_v32 = vpop.f32.mrb[58].mxu1  ;;  %v2977_v62 = vpop.xlane.xlu1 %2976  ;;  %6697 = vrcp.f32 %v4422_v31 }
 0x3ea   : > { %4277 = vst.msk [vmem:[#allocation5 + $0x150] sm:$0xff] %vm439_vm0, %v4213_v18  ;;  %v4230_v4 = vadd.f32 %v5983_v32, %v4166_v2  ;;  %v3059_v61 = vadd.f32 %v2977_v62, %v2867_v29  ;;  %v3694_v44 = vpop.f32.mrb[59].mxu1  ;;  %v6688_v13 = vpop.eup %6687  ;;  %v4412_v32 = vld [vmem:[#allocation4 + $0x170] sm:$0xff] }
 0x3eb   : > { %v4409_v53 = vld [vmem:[#allocation4 + $0x158] sm:$0xff]  ;;  %v4229_v0 = vadd.f32 %v4165_v28, %v3694_v44  ;;  %4835 = vperm.xlu0 %6338, %v6688_v13   ;;  %4750 = vperm.xlu1 %6337, %v6686_v42   ;;  %v6690_v24 = vpop.eup %6689 }
 0x3ec   : > { %4294 = vst.msk [vmem:[#allocation5 + $0x1d8] sm:$0xff] %vm439_vm0, %v4230_v4  ;;  %6699 = vrcp.f32 %v4409_v53  ;;  %v3770_v42 = vld [vmem:[#allocation5 + $0x178] sm:$0xff]  ;;  %v4428_v44 = vld [vmem:[#allocation4 + $0x1f0] sm:$0xff] }
 0x3ed   : > { %3124 = vst.msk [vmem:[#allocation4 + $0x168] sm:$0xff] %vm504_vm3, %v3059_v61  ;;  %v3009_v37 = vpop.xlane.xlu1 %3008  ;;  %v3769_v61 = vld [vmem:[#allocation5 + $0x170] sm:$0xff]  ;;  %v4154_v53 = vmul.f32 %v9362_v25, %v3770_v42  ;;  %v4169_v25 = vmul.f32 %v9396_v35, %v3785_v40  ;;  %v4519_v40 = vld [vmem:[#allocation5 + $0xc8] sm:$0xff] }
 0x3ee   : > { %4293 = vst.msk [vmem:[#allocation5 + $0x1d0] sm:$0xff] %vm439_vm0, %v4229_v0  ;;  %v3075_v10 = vadd.f32 %v3009_v37, %v2883_v43  ;;  %v6692_v12 = vpop.eup %6691  ;;  %v3786_v0 = vld [vmem:[#allocation5 + $0x1f8] sm:$0xff]  ;;  %v4153_v30 = vmul.f32 %v9391_v46, %v3769_v61  ;;  %v4516_v61 = vld [vmem:[#allocation5 + $0xb0] sm:$0xff] }
 0x3ef   : > { %4765 = vperm.xlu0 %6338, %v6692_v12   ;;  %4830 = vperm.xlu1 %6337, %v6690_v24   ;;  %v6694_v23 = vpop.eup %6693 }
 0x3f0   : > { %v4425_v33 = vld [vmem:[#allocation4 + $0x1d8] sm:$0xff]  ;;  %3140 = vst.msk [vmem:[#allocation4 + $0x1e8] sm:$0xff] %vm504_vm3, %v3075_v10 }
 0x3f1   : > { %6701 = vrcp.f32 %v4425_v33  ;;  %v2981_v56 = vpop.xlane.xlu1 %2980  ;;  %v4170_v33 = vmul.f32 %v9370_v41, %v3786_v0 }
 0x3f2   : > { %6703 = vrcp.f32 %v4408_v6  ;;  %v3061_v5 = vadd.f32 %v2981_v56, %v2869_v59  ;;  %v6696_v16 = vpop.eup %6695 }
 0x3f3   : > { %4845 = vperm.xlu0 %6338, %v6696_v16   ;;  %4760 = vperm.xlu1 %6337, %v6694_v23   ;;  %v6698_v9 = vpop.eup %6697  ;;  %v4511_v23 = vld [vmem:[#allocation5 + $0x88] sm:$0xff] }
 0x3f4   : > { %v4411_v14 = vld [vmem:[#allocation4 + $0x168] sm:$0xff]  ;;  %3126 = vst.msk [vmem:[#allocation4 + $0x178] sm:$0xff] %vm504_vm3, %v3061_v5 }
 0x3f5   : > { %6705 = vrcp.f32 %v4411_v14  ;;  %v5930_v17 = vpop.f32.mrb[60].mxu0  ;;  %v3013_v8 = vpop.xlane.xlu1 %3012  ;;  %v4510_v14 = vld [vmem:[#allocation5 + $0x80] sm:$0xff] }
 0x3f6   : > { %6707 = vrcp.f32 %v4424_v51  ;;  %v4216_v48 = vadd.f32 %v5930_v17, %v4152_v55  ;;  %v3077_v1 = vadd.f32 %v3013_v8, %v2885_v63  ;;  %v3559_v57 = vpop.f32.mrb[61].mxu0  ;;  %v6700_v60 = vpop.eup %6699  ;;  %v4494_v51 = vld [vmem:[#allocation5] sm:$0xff]  ;;  %v4496_v17 = vld [vmem:[#allocation5 + $0x10] sm:$0xff] }
 0x3f7   : > { %v4427_v26 = vld [vmem:[#allocation4 + $0x1e8] sm:$0xff]  ;;  %v4215_v52 = vadd.f32 %v4151_v11, %v3559_v57  ;;  %4775 = vperm.xlu0 %6338, %v6700_v60   ;;  %4840 = vperm.xlu1 %6337, %v6698_v9   ;;  %v4513_v9 = vld [vmem:[#allocation5 + $0x98] sm:$0xff] }
 0x3f8   : > { %6709 = vrcp.f32 %v4427_v26  ;;  %4280 = vst.msk [vmem:[#allocation5 + $0x168] sm:$0xff] %vm439_vm0, %v4216_v48  ;;  %v4499_v60 = vld [vmem:[#allocation5 + $0x28] sm:$0xff] }
 0x3f9   : > { %3142 = vst.msk [vmem:[#allocation4 + $0x1f8] sm:$0xff] %vm504_vm3, %v3077_v1  ;;  %6711 = vrcp.f32 %v4410_v34  ;;  %v5986_v50 = vpop.f32.mrb[60].mxu1  ;;  %v4512_v1 = vld [vmem:[#allocation5 + $0x90] sm:$0xff] }
 0x3fa   : > { %4279 = vst.msk [vmem:[#allocation5 + $0x160] sm:$0xff] %vm439_vm0, %v4215_v52  ;;  %v4232_v7 = vadd.f32 %v5986_v50, %v4168_v47  ;;  %v3704_v2 = vpop.f32.mrb[61].mxu1 }
 0x3fb   : > { %v6702_v36 = vpop.eup %6701  ;;  %v4566_v18 = vpop.permute.xlu0 %4565  ;;  %v4413_v29 = vld [vmem:[#allocation4 + $0x178] sm:$0xff]  ;;  %v4231_v21 = vadd.f32 %v4167_v27, %v3704_v2  ;;  %v4498_v27 = vld [vmem:[#allocation5 + $0x20] sm:$0xff] }
 0x3fc   : > { %v6704_v19 = vpop.eup %6703  ;;  %v4879_v28 = vmul.f32 %v4566_v18, %v4495_v3  ;;  %6713 = vrcp.f32 %v4413_v29  ;;  %4296 = vst.msk [vmem:[#allocation5 + $0x1e8] sm:$0xff] %vm439_vm0, %v4232_v7  ;;  %4855 = vperm.xlu0 %6338, %v6702_v36   ;;  %v4515_v36 = vld [vmem:[#allocation5 + $0xa8] sm:$0xff]  ;;  %v4514_v18 = vld [vmem:[#allocation5 + $0xa0] sm:$0xff] }
 0x3fd   : > { %4770 = vperm.xlu1 %6337, %v6704_v19   ;;  %6715 = vrcp.f32 %v4426_v15  ;;  %4295 = vst.msk [vmem:[#allocation5 + $0x1e0] sm:$0xff] %vm439_vm0, %v4231_v21  ;;  %v4501_v19 = vld [vmem:[#allocation5 + $0x38] sm:$0xff] }
 0x3fe   : > { %4943 = vst.msk [vmem:[%s9592_s29 + $0x8] sm:$0xff] %vm439_vm0, %v4879_v28 }
 0x3ff   : > { %v6706_v31 = vpop.eup %6705 }
 0x400   : > { %v6708_v62 = vpop.eup %6707  ;;  %v4429_v20 = vld [vmem:[#allocation4 + $0x1f8] sm:$0xff]  ;;  %4785 = vperm.xlu0 %6338, %v6706_v31   ;;  %v4500_v31 = vld [vmem:[#allocation5 + $0x30] sm:$0xff] }
 0x401   : > { %6717 = vrcp.f32 %v4429_v20  ;;  %4850 = vperm.xlu1 %6337, %v6708_v62   ;;  %v4517_v62 = vld [vmem:[#allocation5 + $0xb8] sm:$0xff] }
 0x402   : > { %6719 = vrcp.f32 %v4412_v32  ;;  %v6710_v4 = vpop.eup %6709 }
 0x403   : > { %v6712_v13 = vpop.eup %6711  ;;  %6721 = vrcp.f32 %v4428_v44 }
 0x404   : > { %4865 = vperm.xlu0 %6338, %v6710_v4  }
 0x405   : > { %4780 = vperm.xlu1 %6337, %v6712_v13   ;;  %v5933_v43 = vpop.f32.mrb[62].mxu0  ;;  %v4503_v13 = vld [vmem:[#allocation5 + $0x48] sm:$0xff] }
 0x406   : > { %v6714_v37 = vpop.eup %6713  ;;  %v4218_v24 = vadd.f32 %v5933_v43, %v4154_v53  ;;  %v3569_v6 = vpop.f32.mrb[63].mxu0  ;;  %v4502_v43 = vld [vmem:[#allocation5 + $0x40] sm:$0xff] }
 0x407   : > { %v6716_v10 = vpop.eup %6715  ;;  %v4217_v12 = vadd.f32 %v4153_v30, %v3569_v6 }
 0x408   : > { %4282 = vst.msk [vmem:[#allocation5 + $0x178] sm:$0xff] %vm439_vm0, %v4218_v24  ;;  %4795 = vperm.xlu0 %6338, %v6714_v37  }
 0x409   : > { %4860 = vperm.xlu1 %6337, %v6716_v10   ;;  %4281 = vst.msk [vmem:[#allocation5 + $0x170] sm:$0xff] %vm439_vm0, %v4217_v12  ;;  %v5989_v46 = vpop.f32.mrb[62].mxu1  ;;  %v4518_v12 = vld [vmem:[#allocation5 + $0xc0] sm:$0xff] }
 0x40a   : > { %v4234_v59 = vadd.f32 %v5989_v46, %v4170_v33  ;;  %v3714_v58 = vpop.f32.mrb[63].mxu1 }
 0x40b   : > { %v6718_v38 = vpop.eup %6717  ;;  %v4233_v49 = vadd.f32 %v4169_v25, %v3714_v58  ;;  %v4505_v25 = vld [vmem:[#allocation5 + $0x58] sm:$0xff]  ;;  %v4504_v58 = vld [vmem:[#allocation5 + $0x50] sm:$0xff] }
 0x40c   : > { %v6720_v56 = vpop.eup %6719  ;;  %4298 = vst.msk [vmem:[#allocation5 + $0x1f8] sm:$0xff] %vm439_vm0, %v4234_v59  ;;  %4875 = vperm.xlu0 %6338, %v6718_v38  }
 0x40d   : > { %4790 = vperm.xlu1 %6337, %v6720_v56   ;;  %4297 = vst.msk [vmem:[#allocation5 + $0x1f0] sm:$0xff] %vm439_vm0, %v4233_v49  ;;  %v6722_v41 = vpop.eup %6721  ;;  %v4521_v49 = vld [vmem:[#allocation5 + $0xd8] sm:$0xff] }
 0x40e   : > { %v4646_v35 = vpop.permute.xlu0 %4645 }
 0x40f   : > { %v4895_v39 = vmul.f32 %v4646_v35, %v4511_v23 }
 0x411   : > { %4870 = vperm.xlu1 %6337, %v6722_v41   ;;  %4959 = vst.msk [vmem:[%s9592_s29 + $0x88] sm:$0xff] %vm439_vm0, %v4895_v39  ;;  %v4520_v39 = vld [vmem:[#allocation5 + $0xd0] sm:$0xff] }
 0x412   : > { %v4561_v5 = vpop.permute.xlu1 %4560 }
 0x413   : > { %v4878_v16 = vmul.f32 %v4561_v5, %v4494_v51  ;;  %v4507_v5 = vld [vmem:[#allocation5 + $0x68] sm:$0xff] }
 0x415   : > { %4942 = vst.msk [vmem:[%s9592_s29] sm:$0xff] %vm439_vm0, %v4878_v16 }
 0x416   : > { %v4641_v55 = vpop.permute.xlu1 %4640  ;;  %v4576_v63 = vpop.permute.xlu0 %4575 }
 0x417   : > { %v4894_v45 = vmul.f32 %v4641_v55, %v4510_v14  ;;  %v4881_v11 = vmul.f32 %v4576_v63, %v4497_v54  ;;  %v4506_v54 = vld [vmem:[#allocation5 + $0x60] sm:$0xff] }
 0x419   : > { %4958 = vst.msk [vmem:[%s9592_s29 + $0x80] sm:$0xff] %vm439_vm0, %v4894_v45  ;;  %4945 = vst.msk [vmem:[%s9592_s29 + $0x18] sm:$0xff] %vm439_vm0, %v4881_v11  ;;  %v4523_v45 = vld [vmem:[#allocation5 + $0xe8] sm:$0xff] }
 0x41a   : > { %v4571_v8 = vpop.permute.xlu1 %4570  ;;  %v4656_v22 = vpop.permute.xlu0 %4655 }
 0x41b   : > { %v4880_v34 = vmul.f32 %v4571_v8, %v4496_v17  ;;  %v4897_v48 = vmul.f32 %v4656_v22, %v4513_v9  ;;  %v4522_v9 = vld [vmem:[#allocation5 + $0xe0] sm:$0xff] }
 0x41d   : > { %4944 = vst.msk [vmem:[%s9592_s29 + $0x10] sm:$0xff] %vm439_vm0, %v4880_v34  ;;  %4961 = vst.msk [vmem:[%s9592_s29 + $0x98] sm:$0xff] %vm439_vm0, %v4897_v48  ;;  %v4509_v34 = vld [vmem:[#allocation5 + $0x78] sm:$0xff] }
 0x41e   : > { %v4651_v57 = vpop.permute.xlu1 %4650  ;;  %v4586_v26 = vpop.permute.xlu0 %4585 }
 0x41f   : > { %v4896_v52 = vmul.f32 %v4651_v57, %v4512_v1  ;;  %v4883_v47 = vmul.f32 %v4586_v26, %v4499_v60  ;;  %v4508_v60 = vld [vmem:[#allocation5 + $0x70] sm:$0xff] }
 0x421   : > { %4960 = vst.msk [vmem:[%s9592_s29 + $0x90] sm:$0xff] %vm439_vm0, %v4896_v52  ;;  %4947 = vst.msk [vmem:[%s9592_s29 + $0x28] sm:$0xff] %vm439_vm0, %v4883_v47  ;;  %v4525_v52 = vld [vmem:[#allocation5 + $0xf8] sm:$0xff] }
 0x422   : > { %v4581_v50 = vpop.permute.xlu1 %4580  ;;  %v4666_v15 = vpop.permute.xlu0 %4665 }
 0x423   : > { %v4882_v7 = vmul.f32 %v4581_v50, %v4498_v27  ;;  %v4899_v3 = vmul.f32 %v4666_v15, %v4515_v36  ;;  %v4524_v36 = vld [vmem:[#allocation5 + $0xf0] sm:$0xff] }
 0x425   : > { %4946 = vst.msk [vmem:[%s9592_s29 + $0x20] sm:$0xff] %vm439_vm0, %v4882_v7  ;;  %4963 = vst.msk [vmem:[%s9592_s29 + $0xa8] sm:$0xff] %vm439_vm0, %v4899_v3  ;;  %v4527_v7 = vld [vmem:[#allocation5 + $0x108] sm:$0xff] }
 0x426   : > { %v4661_v2 = vpop.permute.xlu1 %4660  ;;  %v4596_v29 = vpop.permute.xlu0 %4595 }
 0x427   : > { %v4898_v28 = vmul.f32 %v4661_v2, %v4514_v18  ;;  %v4885_v21 = vmul.f32 %v4596_v29, %v4501_v19  ;;  %v4526_v19 = vld [vmem:[#allocation5 + $0x100] sm:$0xff] }
 0x429   : > { %4962 = vst.msk [vmem:[%s9592_s29 + $0xa0] sm:$0xff] %vm439_vm0, %v4898_v28  ;;  %4949 = vst.msk [vmem:[%s9592_s29 + $0x38] sm:$0xff] %vm439_vm0, %v4885_v21  ;;  %v4543_v28 = vld [vmem:[#allocation5 + $0x188] sm:$0xff] }
 0x42a   : > { %v4591_v32 = vpop.permute.xlu1 %4590  ;;  %v4676_v20 = vpop.permute.xlu0 %4675 }
 0x42b   : > { %v4884_v42 = vmul.f32 %v4591_v32, %v4500_v31  ;;  %v4901_v4 = vmul.f32 %v4676_v20, %v4517_v62  ;;  %v4542_v62 = vld [vmem:[#allocation5 + $0x180] sm:$0xff] }
 0x42d   : > { %4948 = vst.msk [vmem:[%s9592_s29 + $0x30] sm:$0xff] %vm439_vm0, %v4884_v42  ;;  %4965 = vst.msk [vmem:[%s9592_s29 + $0xb8] sm:$0xff] %vm439_vm0, %v4901_v4  ;;  %v4529_v42 = vld [vmem:[#allocation5 + $0x118] sm:$0xff] }
 0x42e   : > { %v4671_v44 = vpop.permute.xlu1 %4670  ;;  %v4606_v53 = vpop.permute.xlu0 %4605 }
 0x42f   : > { %v4900_v0 = vmul.f32 %v4671_v44, %v4516_v61  ;;  %v4887_v30 = vmul.f32 %v4606_v53, %v4503_v13  ;;  %v4528_v13 = vld [vmem:[#allocation5 + $0x110] sm:$0xff] }
 0x431   : > { %4964 = vst.msk [vmem:[%s9592_s29 + $0xb0] sm:$0xff] %vm439_vm0, %v4900_v0  ;;  %4951 = vst.msk [vmem:[%s9592_s29 + $0x48] sm:$0xff] %vm439_vm0, %v4887_v30  ;;  %v4545_v0 = vld [vmem:[#allocation5 + $0x198] sm:$0xff] }
 0x432   : > { %v4601_v37 = vpop.permute.xlu1 %4600  ;;  %v4686_v24 = vpop.permute.xlu0 %4685 }
 0x433   : > { %v4886_v6 = vmul.f32 %v4601_v37, %v4502_v43  ;;  %v4903_v10 = vmul.f32 %v4686_v24, %v4519_v40  ;;  %v4544_v40 = vld [vmem:[#allocation5 + $0x190] sm:$0xff] }
 0x435   : > { %4950 = vst.msk [vmem:[%s9592_s29 + $0x40] sm:$0xff] %vm439_vm0, %v4886_v6  ;;  %4967 = vst.msk [vmem:[%s9592_s29 + $0xc8] sm:$0xff] %vm439_vm0, %v4903_v10  ;;  %v4531_v6 = vld [vmem:[#allocation5 + $0x128] sm:$0xff] }
 0x436   : > { %v4681_v33 = vpop.permute.xlu1 %4680  ;;  %v4616_v46 = vpop.permute.xlu0 %4615 }
 0x437   : > { %v4902_v38 = vmul.f32 %v4681_v33, %v4518_v12  ;;  %v4889_v59 = vmul.f32 %v4616_v46, %v4505_v25  ;;  %v4530_v25 = vld [vmem:[#allocation5 + $0x120] sm:$0xff] }
 0x439   : > { %4966 = vst.msk [vmem:[%s9592_s29 + $0xc0] sm:$0xff] %vm439_vm0, %v4902_v38  ;;  %4953 = vst.msk [vmem:[%s9592_s29 + $0x58] sm:$0xff] %vm439_vm0, %v4889_v59  ;;  %v4547_v38 = vld [vmem:[#allocation5 + $0x1a8] sm:$0xff] }
 0x43a   : > { %v4611_v56 = vpop.permute.xlu1 %4610  ;;  %v4696_v41 = vpop.permute.xlu0 %4695 }
 0x43b   : > { %v4888_v23 = vmul.f32 %v4611_v56, %v4504_v58  ;;  %v4905_v35 = vmul.f32 %v4696_v41, %v4521_v49  ;;  %v4546_v49 = vld [vmem:[#allocation5 + $0x1a0] sm:$0xff] }
 0x43d   : > { %4952 = vst.msk [vmem:[%s9592_s29 + $0x50] sm:$0xff] %vm439_vm0, %v4888_v23  ;;  %4969 = vst.msk [vmem:[%s9592_s29 + $0xd8] sm:$0xff] %vm439_vm0, %v4905_v35  ;;  %v4533_v23 = vld [vmem:[#allocation5 + $0x138] sm:$0xff] }
 0x43e   : > { %v4691_v51 = vpop.permute.xlu1 %4690  ;;  %v4626_v16 = vpop.permute.xlu0 %4625 }
 0x43f   : > { %v4904_v14 = vmul.f32 %v4691_v51, %v4520_v39  ;;  %v4891_v55 = vmul.f32 %v4626_v16, %v4507_v5  ;;  %v4532_v5 = vld [vmem:[#allocation5 + $0x130] sm:$0xff] }
 0x441   : > { %4968 = vst.msk [vmem:[%s9592_s29 + $0xd0] sm:$0xff] %vm439_vm0, %v4904_v14  ;;  %4955 = vst.msk [vmem:[%s9592_s29 + $0x68] sm:$0xff] %vm439_vm0, %v4891_v55  ;;  %v4549_v14 = vld [vmem:[#allocation5 + $0x1b8] sm:$0xff] }
 0x442   : > { %v4621_v63 = vpop.permute.xlu1 %4620  ;;  %v4706_v11 = vpop.permute.xlu0 %4705 }
 0x443   : > { %v4890_v17 = vmul.f32 %v4621_v63, %v4506_v54  ;;  %v4907_v8 = vmul.f32 %v4706_v11, %v4523_v45  ;;  %v4548_v45 = vld [vmem:[#allocation5 + $0x1b0] sm:$0xff] }
 0x445   : > { %4954 = vst.msk [vmem:[%s9592_s29 + $0x60] sm:$0xff] %vm439_vm0, %v4890_v17  ;;  %4971 = vst.msk [vmem:[%s9592_s29 + $0xe8] sm:$0xff] %vm439_vm0, %v4907_v8  ;;  %v4535_v17 = vld [vmem:[#allocation5 + $0x148] sm:$0xff] }
 0x446   : > { %v4701_v22 = vpop.permute.xlu1 %4700  ;;  %v4636_v48 = vpop.permute.xlu0 %4635 }
 0x447   : > { %v4906_v1 = vmul.f32 %v4701_v22, %v4522_v9  ;;  %v4893_v57 = vmul.f32 %v4636_v48, %v4509_v34  ;;  %v4534_v34 = vld [vmem:[#allocation5 + $0x140] sm:$0xff] }
 0x449   : > { %4970 = vst.msk [vmem:[%s9592_s29 + $0xe0] sm:$0xff] %vm439_vm0, %v4906_v1  ;;  %4957 = vst.msk [vmem:[%s9592_s29 + $0x78] sm:$0xff] %vm439_vm0, %v4893_v57  ;;  %v4551_v1 = vld [vmem:[#allocation5 + $0x1c8] sm:$0xff] }
 0x44a   : > { %v4631_v26 = vpop.permute.xlu1 %4630  ;;  %v4716_v47 = vpop.permute.xlu0 %4715 }
 0x44b   : > { %v4892_v27 = vmul.f32 %v4631_v26, %v4508_v60  ;;  %v4909_v50 = vmul.f32 %v4716_v47, %v4525_v52  ;;  %v4550_v52 = vld [vmem:[#allocation5 + $0x1c0] sm:$0xff] }
 0x44d   : > { %4956 = vst.msk [vmem:[%s9592_s29 + $0x70] sm:$0xff] %vm439_vm0, %v4892_v27  ;;  %4973 = vst.msk [vmem:[%s9592_s29 + $0xf8] sm:$0xff] %vm439_vm0, %v4909_v50  ;;  %v4537_v27 = vld [vmem:[#allocation5 + $0x158] sm:$0xff] }
 0x44e   : > { %v4711_v15 = vpop.permute.xlu1 %4710  ;;  %v4726_v3 = vpop.permute.xlu0 %4725 }
 0x44f   : > { %v4908_v18 = vmul.f32 %v4711_v15, %v4524_v36  ;;  %v4911_v2 = vmul.f32 %v4726_v3, %v4527_v7  ;;  %v4536_v7 = vld [vmem:[#allocation5 + $0x150] sm:$0xff] }
 0x451   : > { %4972 = vst.msk [vmem:[%s9592_s29 + $0xf0] sm:$0xff] %vm439_vm0, %v4908_v18  ;;  %4975 = vst.msk [vmem:[%s9592_s29 + $0x108] sm:$0xff] %vm439_vm0, %v4911_v2  ;;  %v4553_v18 = vld [vmem:[#allocation5 + $0x1d8] sm:$0xff] }
 0x452   : > { %v4721_v29 = vpop.permute.xlu1 %4720  ;;  %v4806_v21 = vpop.permute.xlu0 %4805 }
 0x453   : > { %v4910_v31 = vmul.f32 %v4721_v29, %v4526_v19  ;;  %v4927_v32 = vmul.f32 %v4806_v21, %v4543_v28  ;;  %v4552_v28 = vld [vmem:[#allocation5 + $0x1d0] sm:$0xff] }
 0x455   : > { %4974 = vst.msk [vmem:[%s9592_s29 + $0x100] sm:$0xff] %vm439_vm0, %v4910_v31  ;;  %4991 = vst.msk [vmem:[%s9592_s29 + $0x188] sm:$0xff] %vm439_vm0, %v4927_v32  ;;  %v4539_v31 = vld [vmem:[#allocation5 + $0x168] sm:$0xff] }
 0x456   : > { %v4801_v20 = vpop.permute.xlu1 %4800  ;;  %v4736_v4 = vpop.permute.xlu0 %4735 }
 0x457   : > { %v4926_v61 = vmul.f32 %v4801_v20, %v4542_v62  ;;  %v4913_v44 = vmul.f32 %v4736_v4, %v4529_v42  ;;  %v4538_v42 = vld [vmem:[#allocation5 + $0x160] sm:$0xff] }
 0x459   : > { %4990 = vst.msk [vmem:[%s9592_s29 + $0x180] sm:$0xff] %vm439_vm0, %v4926_v61  ;;  %4977 = vst.msk [vmem:[%s9592_s29 + $0x118] sm:$0xff] %vm439_vm0, %v4913_v44  ;;  %v4555_v61 = vld [vmem:[#allocation5 + $0x1e8] sm:$0xff] }
 0x45a   : > { %v4731_v53 = vpop.permute.xlu1 %4730  ;;  %v4816_v30 = vpop.permute.xlu0 %4815 }
 0x45b   : > { %v4912_v43 = vmul.f32 %v4731_v53, %v4528_v13  ;;  %v4929_v37 = vmul.f32 %v4816_v30, %v4545_v0  ;;  %v4554_v0 = vld [vmem:[#allocation5 + $0x1e0] sm:$0xff] }
 0x45d   : > { %4976 = vst.msk [vmem:[%s9592_s29 + $0x110] sm:$0xff] %vm439_vm0, %v4912_v43  ;;  %4993 = vst.msk [vmem:[%s9592_s29 + $0x198] sm:$0xff] %vm439_vm0, %v4929_v37  ;;  %v4541_v43 = vld [vmem:[#allocation5 + $0x178] sm:$0xff] }
 0x45e   : > { %v4811_v24 = vpop.permute.xlu1 %4810  ;;  %v4746_v10 = vpop.permute.xlu0 %4745 }
 0x45f   : > { %v4928_v12 = vmul.f32 %v4811_v24, %v4544_v40  ;;  %v4915_v33 = vmul.f32 %v4746_v10, %v4531_v6  ;;  %v4540_v6 = vld [vmem:[#allocation5 + $0x170] sm:$0xff] }
 0x461   : > { %4992 = vst.msk [vmem:[%s9592_s29 + $0x190] sm:$0xff] %vm439_vm0, %v4928_v12  ;;  %4979 = vst.msk [vmem:[%s9592_s29 + $0x128] sm:$0xff] %vm439_vm0, %v4915_v33  ;;  %v4557_v12 = vld [vmem:[#allocation5 + $0x1f8] sm:$0xff] }
 0x462   : > { %v4741_v46 = vpop.permute.xlu1 %4740  ;;  %v4826_v59 = vpop.permute.xlu0 %4825 }
 0x463   : > { %v4914_v58 = vmul.f32 %v4741_v46, %v4530_v25  ;;  %v4931_v56 = vmul.f32 %v4826_v59, %v4547_v38  ;;  %v4556_v38 = vld [vmem:[#allocation5 + $0x1f0] sm:$0xff] }
 0x465   : > { %4978 = vst.msk [vmem:[%s9592_s29 + $0x120] sm:$0xff] %vm439_vm0, %v4914_v58  ;;  %4995 = vst.msk [vmem:[%s9592_s29 + $0x1a8] sm:$0xff] %vm439_vm0, %v4931_v56 }
 0x466   : > { %v4821_v41 = vpop.permute.xlu1 %4820  ;;  %v4756_v35 = vpop.permute.xlu0 %4755 }
 0x467   : > { %v4930_v39 = vmul.f32 %v4821_v41, %v4546_v49  ;;  %v4917_v51 = vmul.f32 %v4756_v35, %v4533_v23 }
 0x469   : > { %4994 = vst.msk [vmem:[%s9592_s29 + $0x1a0] sm:$0xff] %vm439_vm0, %v4930_v39  ;;  %4981 = vst.msk [vmem:[%s9592_s29 + $0x138] sm:$0xff] %vm439_vm0, %v4917_v51 }
 0x46a   : > { %v4751_v16 = vpop.permute.xlu1 %4750  ;;  %v4836_v55 = vpop.permute.xlu0 %4835 }
 0x46b   : > { %v4916_v54 = vmul.f32 %v4751_v16, %v4532_v5  ;;  %v4933_v63 = vmul.f32 %v4836_v55, %v4549_v14 }
 0x46d   : > { %4980 = vst.msk [vmem:[%s9592_s29 + $0x130] sm:$0xff] %vm439_vm0, %v4916_v54  ;;  %4997 = vst.msk [vmem:[%s9592_s29 + $0x1b8] sm:$0xff] %vm439_vm0, %v4933_v63 }
 0x46e   : > { %v4831_v11 = vpop.permute.xlu1 %4830  ;;  %v4766_v8 = vpop.permute.xlu0 %4765 }
 0x46f   : > { %v4932_v9 = vmul.f32 %v4831_v11, %v4548_v45  ;;  %v4919_v22 = vmul.f32 %v4766_v8, %v4535_v17 }
 0x471   : > { %4996 = vst.msk [vmem:[%s9592_s29 + $0x1b0] sm:$0xff] %vm439_vm0, %v4932_v9  ;;  %4983 = vst.msk [vmem:[%s9592_s29 + $0x148] sm:$0xff] %vm439_vm0, %v4919_v22 }
 0x472   : > { %v4761_v48 = vpop.permute.xlu1 %4760  ;;  %v4846_v57 = vpop.permute.xlu0 %4845 }
 0x473   : > { %v4918_v60 = vmul.f32 %v4761_v48, %v4534_v34  ;;  %v4935_v26 = vmul.f32 %v4846_v57, %v4551_v1 }
 0x475   : > { %4982 = vst.msk [vmem:[%s9592_s29 + $0x140] sm:$0xff] %vm439_vm0, %v4918_v60  ;;  %4999 = vst.msk [vmem:[%s9592_s29 + $0x1c8] sm:$0xff] %vm439_vm0, %v4935_v26 }
 0x476   : > { %v4841_v47 = vpop.permute.xlu1 %4840  ;;  %v4776_v50 = vpop.permute.xlu0 %4775 }
 0x477   : > { %v4934_v36 = vmul.f32 %v4841_v47, %v4550_v52  ;;  %v4921_v15 = vmul.f32 %v4776_v50, %v4537_v27 }
 0x479   : > { %4998 = vst.msk [vmem:[%s9592_s29 + $0x1c0] sm:$0xff] %vm439_vm0, %v4934_v36  ;;  %4985 = vst.msk [vmem:[%s9592_s29 + $0x158] sm:$0xff] %vm439_vm0, %v4921_v15 }
 0x47b   : > { %v4856_v2 = vpop.permute.xlu0 %4855 }
 0x47c   : > { %v4771_v3 = vpop.permute.xlu1 %4770  ;;  %v4937_v29 = vmul.f32 %v4856_v2, %v4553_v18 }
 0x47d   : > { %v4920_v19 = vmul.f32 %v4771_v3, %v4536_v7 }
 0x47e   : > { %5001 = vst.msk [vmem:[%s9592_s29 + $0x1d8] sm:$0xff] %vm439_vm0, %v4937_v29 }
 0x47f   : > { %4984 = vst.msk [vmem:[%s9592_s29 + $0x150] sm:$0xff] %vm439_vm0, %v4920_v19  ;;  %v4786_v32 = vpop.permute.xlu0 %4785 }
 0x480   : > { %v4851_v21 = vpop.permute.xlu1 %4850  ;;  %v4923_v20 = vmul.f32 %v4786_v32, %v4539_v31 }
 0x481   : > { %v4936_v62 = vmul.f32 %v4851_v21, %v4552_v28 }
 0x482   : > { %4987 = vst.msk [vmem:[%s9592_s29 + $0x168] sm:$0xff] %vm439_vm0, %v4923_v20 }
 0x483   : > { %5000 = vst.msk [vmem:[%s9592_s29 + $0x1d0] sm:$0xff] %vm439_vm0, %v4936_v62  ;;  %v4866_v44 = vpop.permute.xlu0 %4865 }
 0x484   : > { %v4781_v4 = vpop.permute.xlu1 %4780  ;;  %v4939_v53 = vmul.f32 %v4866_v44, %v4555_v61 }
 0x485   : > { %v4922_v13 = vmul.f32 %v4781_v4, %v4538_v42 }
 0x486   : > { %5003 = vst.msk [vmem:[%s9592_s29 + $0x1e8] sm:$0xff] %vm439_vm0, %v4939_v53 }
 0x487   : > { %4986 = vst.msk [vmem:[%s9592_s29 + $0x160] sm:$0xff] %vm439_vm0, %v4922_v13  ;;  %v4796_v37 = vpop.permute.xlu0 %4795 }
 0x488   : > { %v4861_v30 = vpop.permute.xlu1 %4860  ;;  %v4925_v24 = vmul.f32 %v4796_v37, %v4541_v43 }
 0x489   : > { %v4938_v40 = vmul.f32 %v4861_v30, %v4554_v0 }
 0x48a   : > { %4989 = vst.msk [vmem:[%s9592_s29 + $0x178] sm:$0xff] %vm439_vm0, %v4925_v24 }
 0x48b   : > { %5002 = vst.msk [vmem:[%s9592_s29 + $0x1e0] sm:$0xff] %vm439_vm0, %v4938_v40  ;;  %v4876_v33 = vpop.permute.xlu0 %4875 }
 0x48c   : > { %v4791_v10 = vpop.permute.xlu1 %4790  ;;  %v4941_v46 = vmul.f32 %v4876_v33, %v4557_v12 }
 0x48d   : > { %v4924_v25 = vmul.f32 %v4791_v10, %v4540_v6 }
 0x48e   : > { %5005 = vst.msk [vmem:[%s9592_s29 + $0x1f8] sm:$0xff] %vm439_vm0, %v4941_v46 }
 0x48f   : > { %4988 = vst.msk [vmem:[%s9592_s29 + $0x170] sm:$0xff] %vm439_vm0, %v4924_v25 }
 0x490   : > { %v4871_v59 = vpop.permute.xlu1 %4870 }
 0x491   : > { %v4940_v58 = vmul.f32 %v4871_v59, %v4556_v38 }
 0x493   : > { %5004 = vst.msk [vmem:[%s9592_s29 + $0x1f0] sm:$0xff] %vm439_vm0, %v4940_v58 }
 0x494 PF: > { %s13_s14 = sadd.s32 1, %s6745_s14   ;;  %s10258_s12 = smov %s6741_s13 }
 0x495   : > { %p10_p5 = scmp.ge.s32.totalorder %s13_s14, 4   ;;  %s10259_s13 = smov %s10261_s15 }
 0x497   :  { %12 = sbr.rel (!%p10_p5) target bundleno = 2 (0x2), region = 76 }

</bundles_post_ra>
